<compile_context>
chip_gen: v7x
topology: tpu7x:2x2x1
jax: 0.10.0
libtpu: 0.0.40
codegen_flags: <defaults>
</compile_context>

<pallas_src>
import functools

import jax
import jax.numpy as jnp
import numpy as np
from jax.experimental import pallas as pl
from jax.experimental.pallas import tpu as pltpu

FORGET_BIAS = 1.0
_HI = jax.lax.Precision.HIGHEST


# ----------------------------------------------------------------------------
# Pallas kernels
# ----------------------------------------------------------------------------
def _gates_spatial_kernel(xu_ref, w1_ref, b1_ref, x_ref, ws_ref, bs_ref,
                          c_ref, m_ref, out_ref, *, k, W, TH, NH):
    """Fused conv_x+conv_h+conv_c matmul, i/f/g gates, c_new, spatial gate.

    xu_ref : ((H+2p)*W, k*Kc)  bf16  channel-concat [x|h|c], dx taps in K
    w1_ref : (k, k*Kc, 4*NH)   bf16  stacked weights, indexed by dy tap
    b1_ref : (1, 4*NH)         f32   bx + bh + [bc, 0]
    x_ref  : (TH*W, Cin)       bf16  raw x_t rows (spatial-gate operand)
    ws_ref : (2*NH+Cin, NH)    bf16  rows ordered [c_new | m | x]
    c_ref/m_ref : (TH*W, NH)   f32
    out_ref: (TH*W, 3*NH)      f32   [c_new | m_new | o_x + o_h]
    """
    Mt = TH * W
    row0 = pl.program_id(1) * TH

    # Fused k x k conv over [x_t | h_t | c_t]: vertical taps reduced here.
    acc = jnp.zeros((Mt, 4 * NH), jnp.float32)
    for dy in range(k):
        start = (row0 + dy) * W
        if W % 8 == 0:
            start = pl.multiple_of(start, 8)
        band = xu_ref[pl.ds(start, Mt), :]                     # (Mt, k*Kc) bf16
        acc = acc + jnp.dot(band, w1_ref[dy],
                            preferred_element_type=jnp.float32)
    acc = acc + b1_ref[...]                                    # bias once

    i_t = jax.nn.sigmoid(acc[:, 0 * NH:1 * NH])
    f_t = jax.nn.sigmoid(acc[:, 1 * NH:2 * NH] + FORGET_BIAS)
    g_t = jnp.tanh(acc[:, 2 * NH:3 * NH])
    o_xh = acc[:, 3 * NH:4 * NH]

    c_prev = c_ref[...]                                        # f32
    m_prev = m_ref[...]                                        # f32
    c_new = f_t * c_prev + i_t * g_t

    # SpatialBlock stand-in: sigmoid(1x1 conv over [c_new, m_t, x_t]) gates m.
    pre = (jnp.dot(c_new.astype(jnp.bfloat16), ws_ref[0:NH, :],
                   preferred_element_type=jnp.float32)
           + jnp.dot(m_prev.astype(jnp.bfloat16), ws_ref[NH:2 * NH, :],
                     preferred_element_type=jnp.float32)
           + jnp.dot(x_ref[...], ws_ref[2 * NH:, :],
                     preferred_element_type=jnp.float32))
    m_mask = jax.nn.sigmoid(pre + bs_ref[...])
    m_new = m_prev * m_mask

    out_ref[:, 0 * NH:1 * NH] = c_new
    out_ref[:, 1 * NH:2 * NH] = m_new
    out_ref[:, 2 * NH:3 * NH] = o_xh


def _output_kernel(mu_ref, w2_ref, b2_ref, pk_ref, h_ref, *, k, W, TH, NH):
    """Fused conv_o + conv_last matmul with the output gate epilogue.

    mu_ref : ((H+2p)*W, k*2*NH)  bf16  mem = [c_new|m_new], dx taps in K
    w2_ref : (k, k*2*NH, 3*NH)   bf16  [conv_o | conv_last (centre tap only)]
    b2_ref : (1, 3*NH)           f32   [bo | bl]
    pk_ref : (TH*W, 3*NH)        f32   packed kernel-1 output (o_xh at 2NH:)
    h_ref  : (TH*W, NH)          f32
    """
    Mt = TH * W
    row0 = pl.program_id(1) * TH

    acc = jnp.zeros((Mt, 3 * NH), jnp.float32)
    for dy in range(k):
        start = (row0 + dy) * W
        if W % 8 == 0:
            start = pl.multiple_of(start, 8)
        band = mu_ref[pl.ds(start, Mt), :]
        acc = acc + jnp.dot(band, w2_ref[dy],
                            preferred_element_type=jnp.float32)
    acc = acc + b2_ref[...]

    o_xh = pk_ref[:, 2 * NH:3 * NH]
    o_t = jnp.tanh(o_xh + acc[:, 0:NH] + acc[:, NH:2 * NH])
    h_ref[...] = o_t * jnp.tanh(acc[:, 2 * NH:3 * NH])


# ----------------------------------------------------------------------------
# STLSTMCell forward (Pallas-backed)
# ----------------------------------------------------------------------------
@functools.partial(jax.jit, static_argnums=(5, 6))
def stlstm_cell_forward(params, x_t, h_t, c_t, m_t, num_hidden, filter_size):
    B, Cin, H, W = x_t.shape
    NH = num_hidden
    k = filter_size
    pad = k // 2
    HP = H + 2 * pad
    TH = 8 if H % 8 == 0 else H          # output rows per grid step
    n_j = H // TH
    Mt = TH * W
    f32, bf16 = jnp.float32, jnp.bfloat16

    def nhwc(a):
        return jnp.transpose(a, (0, 2, 3, 1)).astype(f32)

    x_n, h_n, c_n, m_n = nhwc(x_t), nhwc(h_t), nhwc(c_t), nhwc(m_t)

    def unroll_dx(img):
        # (B,H,W,C) -> (B, HP*W, k*C): zero-pad spatially and fold the k
        # horizontal taps into channels (vertical taps handled in-kernel).
        p = jnp.pad(img, ((0, 0), (pad, pad), (pad, pad), (0, 0)))
        u = jnp.concatenate([p[:, :, dx:dx + W, :] for dx in range(k)],
                            axis=-1)
        return u.reshape(B, HP * W, k * img.shape[-1])

    def tapw(w):                          # OIHW -> (kh, kw, I, O)
        return jnp.transpose(w, (2, 3, 1, 0))

    # ---- kernel 1 operands --------------------------------------------------
    Kc = Cin + 2 * NH
    xhc_u = unroll_dx(jnp.concatenate([x_n, h_n, c_n], axis=-1)).astype(bf16)

    wc_p = jnp.concatenate(
        [tapw(params["wc"]), jnp.zeros((k, k, NH, NH), f32)], axis=-1)
    w1 = jnp.concatenate([tapw(params["wx"]), tapw(params["wh"]), wc_p],
                         axis=2).reshape(k, k * Kc, 4 * NH).astype(bf16)
    b1 = (params["bx"] + params["bh"]
          + jnp.concatenate([params["bc"], jnp.zeros((NH,), f32)])
          ).reshape(1, 4 * NH).astype(f32)
    ws = params["ws"].astype(bf16)
    bs = params["bs"].reshape(1, NH).astype(f32)

    x_flat = x_n.reshape(B, H * W, Cin).astype(bf16)
    c_flat = c_n.reshape(B, H * W, NH)
    m_flat = m_n.reshape(B, H * W, NH)

    grid = (B, n_j)
    cparams = pltpu.CompilerParams(
        dimension_semantics=("parallel", "parallel"))

    def row_spec(C):
        return pl.BlockSpec((None, Mt, C), lambda b, j: (b, j, 0))

    def full_spec(shape):
        return pl.BlockSpec(shape, lambda b, j: (0,) * len(shape))

    flops1 = 2 * B * H * W * (k * k * Kc * 4 * NH + Kc * NH)
    bytes1 = (xhc_u.size * 2 + w1.size * 2 + x_flat.size * 2
              + (c_flat.size + m_flat.size) * 4 + B * H * W * 3 * NH * 4)
    packed = pl.pallas_call(
        functools.partial(_gates_spatial_kernel, k=k, W=W, TH=TH, NH=NH),
        grid=grid,
        in_specs=[
            pl.BlockSpec((None, HP * W, k * Kc), lambda b, j: (b, 0, 0)),
            full_spec((k, k * Kc, 4 * NH)),
            full_spec((1, 4 * NH)),
            row_spec(Cin),
            full_spec((Kc, NH)),
            full_spec((1, NH)),
            row_spec(NH),
            row_spec(NH),
        ],
        out_specs=row_spec(3 * NH),
        out_shape=jax.ShapeDtypeStruct((B, H * W, 3 * NH), f32),
        compiler_params=cparams,
        cost_estimate=pl.CostEstimate(
            flops=flops1, transcendentals=B * H * W * 4 * NH,
            bytes_accessed=bytes1),
    )(xhc_u, w1, b1, x_flat, ws, bs, c_flat, m_flat)

    # ---- kernel 2 operands --------------------------------------------------
    Kc2 = 2 * NH
    mem_u = unroll_dx(
        packed[:, :, 0:2 * NH].reshape(B, H, W, 2 * NH)).astype(bf16)

    wl_mat = jnp.transpose(params["wl"][:, :, 0, 0], (1, 0))   # (2NH, NH)
    wl_t = jnp.zeros((k, k, 2 * NH, NH), f32).at[pad, pad].set(wl_mat)
    w2 = jnp.concatenate([tapw(params["wo"]), wl_t],
                         axis=3).reshape(k, k * Kc2, 3 * NH).astype(bf16)
    b2 = jnp.concatenate([params["bo"], params["bl"]]
                         ).reshape(1, 3 * NH).astype(f32)

    flops2 = 2 * B * H * W * k * k * Kc2 * 3 * NH
    bytes2 = (mem_u.size * 2 + w2.size * 2 + packed.size * 4
              + B * H * W * NH * 4)
    h_flat = pl.pallas_call(
        functools.partial(_output_kernel, k=k, W=W, TH=TH, NH=NH),
        grid=grid,
        in_specs=[
            pl.BlockSpec((None, HP * W, k * Kc2), lambda b, j: (b, 0, 0)),
            full_spec((k, k * Kc2, 3 * NH)),
            full_spec((1, 3 * NH)),
            row_spec(3 * NH),
        ],
        out_specs=row_spec(NH),
        out_shape=jax.ShapeDtypeStruct((B, H * W, NH), f32),
        compiler_params=cparams,
        cost_estimate=pl.CostEstimate(
            flops=flops2, transcendentals=B * H * W * 2 * NH,
            bytes_accessed=bytes2),
    )(mem_u, w2, b2, packed)

    def to_nchw(flat):
        return jnp.transpose(flat.reshape(B, H, W, NH), (0, 3, 1, 2))

    return (to_nchw(h_flat),
            to_nchw(packed[:, :, 0:NH]),
            to_nchw(packed[:, :, NH:2 * NH]))


# ----------------------------------------------------------------------------
# Parameters
# ----------------------------------------------------------------------------
def init_params(key, in_channel, num_hidden, filter_size):
    ks = jax.random.split(key, 12)
    scale = 0.05
    k = filter_size
    nh = num_hidden

    def w(kk, shape):
        return scale * jax.random.normal(kk, shape, dtype=jnp.float32)

    return {
        "wx": w(ks[0], (4 * nh, in_channel, k, k)), "bx": w(ks[1], (4 * nh,)),
        "wh": w(ks[2], (4 * nh, nh, k, k)),         "bh": w(ks[3], (4 * nh,)),
        "wc": w(ks[4], (3 * nh, nh, k, k)),         "bc": w(ks[5], (3 * nh,)),
        "wo": w(ks[6], (2 * nh, 2 * nh, k, k)),     "bo": w(ks[7], (2 * nh,)),
        "wl": w(ks[8], (nh, 2 * nh, 1, 1)),         "bl": w(ks[9], (nh,)),
        # SpatialBlock stand-in weight: rows ordered [c_new | m | x]
        "ws": w(ks[10], (2 * nh + in_channel, nh)), "bs": w(ks[11], (nh,)),
    }


# ----------------------------------------------------------------------------
# Pure-JAX reference (same bf16-operand / f32-accumulate numerics)
# ----------------------------------------------------------------------------
def _conv_ref(x, w, b, pad):
    xb = x.astype(jnp.bfloat16).astype(jnp.float32)
    wb = w.astype(jnp.bfloat16).astype(jnp.float32)
    out = jax.lax.conv_general_dilated(
        xb, wb, window_strides=(1, 1), padding=[(pad, pad), (pad, pad)],
        dimension_numbers=("NCHW", "OIHW", "NCHW"), precision=_HI)
    return out + b.reshape(1, -1, 1, 1)


def stlstm_cell_ref(params, x_t, h_t, c_t, m_t, num_hidden, filter_size):
    NH = num_hidden
    p = filter_size // 2
    B, Cin, H, W = x_t.shape

    xc = _conv_ref(x_t, params["wx"], params["bx"], p)
    hc = _conv_ref(h_t, params["wh"], params["bh"], p)
    cc = _conv_ref(c_t, params["wc"], params["bc"], p)
    i_x, f_x, g_x, o_x = jnp.split(xc, 4, axis=1)
    i_h, f_h, g_h, o_h = jnp.split(hc, 4, axis=1)
    i_c, f_c, g_c = jnp.split(cc, 3, axis=1)
    i_t = jax.nn.sigmoid(i_x + i_h + i_c)
    f_t = jax.nn.sigmoid(f_x + f_h + f_c + FORGET_BIAS)
    g_t = jnp.tanh(g_x + g_h + g_c)
    c_new = f_t * c_t + i_t * g_t

    # SpatialBlock stand-in (matches the kernel): [c_new | m | x] @ ws
    def flat(a):
        return jnp.transpose(a, (0, 2, 3, 1)).reshape(B * H * W, -1)

    feat = jnp.concatenate([flat(c_new), flat(m_t), flat(x_t)], axis=-1)
    feat_b = feat.astype(jnp.bfloat16).astype(jnp.float32)
    ws_b = params["ws"].astype(jnp.bfloat16).astype(jnp.float32)
    mask = jax.nn.sigmoid(jnp.dot(feat_b, ws_b, precision=_HI) + params["bs"])
    mask = jnp.transpose(mask.reshape(B, H, W, NH), (0, 3, 1, 2))
    m_new = m_t * mask

    mem = jnp.concatenate([c_new, m_new], axis=1)
    cm = _conv_ref(mem, params["wo"], params["bo"], p)
    o_c, o_m = jnp.split(cm, 2, axis=1)
    o_t = jnp.tanh(o_x + o_h + o_c + o_m)
    last = _conv_ref(mem, params["wl"], params["bl"], 0)
    h_new = o_t * jnp.tanh(last)
    return h_new, c_new, m_new


# ----------------------------------------------------------------------------
if __name__ == "__main__":
    B, C_IN, W_IMG = 2, 4, 16
    NUM_HIDDEN, FILTER_SIZE = 32, 3

    key = jax.random.PRNGKey(0)
    kp, kx, kh, kc, km = jax.random.split(key, 5)

    params = init_params(kp, C_IN, NUM_HIDDEN, FILTER_SIZE)
    x_t = jax.random.normal(kx, (B, C_IN, W_IMG, W_IMG), dtype=jnp.float32)
    h_t = jax.random.normal(kh, (B, NUM_HIDDEN, W_IMG, W_IMG), dtype=jnp.float32)
    c_t = jax.random.normal(kc, (B, NUM_HIDDEN, W_IMG, W_IMG), dtype=jnp.float32)
    m_t = jax.random.normal(km, (B, NUM_HIDDEN, W_IMG, W_IMG), dtype=jnp.float32)

    h_new, c_new, m_new = stlstm_cell_forward(
        params, x_t, h_t, c_t, m_t, NUM_HIDDEN, FILTER_SIZE)
    jax.block_until_ready((h_new, c_new, m_new))

    h_ref, c_ref, m_ref = stlstm_cell_ref(
        params, x_t, h_t, c_t, m_t, NUM_HIDDEN, FILTER_SIZE)

    np.testing.assert_allclose(np.asarray(h_new), np.asarray(h_ref),
                               rtol=2e-3, atol=2e-3)
    np.testing.assert_allclose(np.asarray(c_new), np.asarray(c_ref),
                               rtol=2e-3, atol=2e-3)
    np.testing.assert_allclose(np.asarray(m_new), np.asarray(m_ref),
                               rtol=2e-3, atol=2e-3)

    assert h_new.shape == (B, NUM_HIDDEN, W_IMG, W_IMG)
    assert c_new.shape == (B, NUM_HIDDEN, W_IMG, W_IMG)
    assert m_new.shape == (B, NUM_HIDDEN, W_IMG, W_IMG)
    print("KERNEL_OK")
</pallas_src>

<mosaic_0001>
module attributes {stable_mosaic.version = 11 : i64} {
  func.func @_gates_spatial_kernel(%arg0: i32, %arg1: i32, %arg2: memref<1x288x204xbf16, #tpu.memory_space<vmem>>, %arg3: memref<3x204x128xbf16, #tpu.memory_space<vmem>>, %arg4: memref<1x128xf32, #tpu.memory_space<vmem>>, %arg5: memref<1x128x4xbf16, #tpu.memory_space<vmem>>, %arg6: memref<68x32xbf16, #tpu.memory_space<vmem>>, %arg7: memref<1x32xf32, #tpu.memory_space<vmem>>, %arg8: memref<1x128x32xf32, #tpu.memory_space<vmem>>, %arg9: memref<1x128x32xf32, #tpu.memory_space<vmem>>, %arg10: memref<1x128x96xf32, #tpu.memory_space<vmem>>) attributes {dimension_semantics = [#tpu.dimension_semantics<parallel>, #tpu.dimension_semantics<parallel>], iteration_bounds = array<i64: 2, 2>, scalar_prefetch = 0 : i64, scratch_operands = 0 : i64, tpu.core_type = #tpu.core_type<tc>, window_params = [{transform_indices = @transform_0, window_bounds = array<i64: 1, 288, 204>}, {pipeline_mode = #tpu.pipeline_mode<synchronous>, transform_indices = @transform_1, window_bounds = array<i64: 3, 204, 128>}, {pipeline_mode = #tpu.pipeline_mode<synchronous>, transform_indices = @transform_2, window_bounds = array<i64: 1, 128>}, {transform_indices = @transform_3, window_bounds = array<i64: 1, 128, 4>}, {pipeline_mode = #tpu.pipeline_mode<synchronous>, transform_indices = @transform_4, window_bounds = array<i64: 68, 32>}, {pipeline_mode = #tpu.pipeline_mode<synchronous>, transform_indices = @transform_5, window_bounds = array<i64: 1, 32>}, {transform_indices = @transform_6, window_bounds = array<i64: 1, 128, 32>}, {transform_indices = @transform_7, window_bounds = array<i64: 1, 128, 32>}, {transform_indices = @transform_8, window_bounds = array<i64: 1, 128, 96>}]} {
    %c8_i32 = arith.constant 8 : i32
    %0 = arith.muli %arg1, %c8_i32 : i32
    %cst = arith.constant 0.000000e+00 : f32
    %1 = vector.broadcast %cst : f32 to vector<128x128xf32>
    %c0_i32 = arith.constant 0 : i32
    %2 = arith.addi %0, %c0_i32 : i32
    %c16_i32 = arith.constant 16 : i32
    %3 = arith.muli %2, %c16_i32 : i32
    %4 = tpu.assume_multiple %3, 8 : i32
    %c0 = arith.constant 0 : index
    %5 = arith.index_cast %4 : i32 to index
    %c0_0 = arith.constant 0 : index
    %6 = vector.load %arg2[%c0, %5, %c0_0] : memref<1x288x204xbf16, #tpu.memory_space<vmem>>, vector<1x128x204xbf16>
    %7 = vector.shape_cast %6 : vector<1x128x204xbf16> to vector<128x204xbf16>
    %c0_1 = arith.constant 0 : index
    %c0_2 = arith.constant 0 : index
    %c0_3 = arith.constant 0 : index
    %8 = vector.load %arg3[%c0_1, %c0_2, %c0_3] : memref<3x204x128xbf16, #tpu.memory_space<vmem>>, vector<1x204x128xbf16>
    %9 = vector.shape_cast %8 : vector<1x204x128xbf16> to vector<204x128xbf16>
    %cst_4 = arith.constant dense<0.000000e+00> : vector<128x128xf32>
    %10 = tpu.matmul %7, %9, %cst_4 {dimension_numbers = #tpu.dot_dimension_numbers<[1], [0], [0], [1], [0, 0, 1, 1], [], []>} : vector<128x204xbf16>, vector<204x128xbf16>, vector<128x128xf32> -> vector<128x128xf32>
    %11 = arith.addf %1, %10 : vector<128x128xf32>
    %c1_i32 = arith.constant 1 : i32
    %12 = arith.addi %0, %c1_i32 : i32
    %c16_i32_5 = arith.constant 16 : i32
    %13 = arith.muli %12, %c16_i32_5 : i32
    %14 = tpu.assume_multiple %13, 8 : i32
    %c0_6 = arith.constant 0 : index
    %15 = arith.index_cast %14 : i32 to index
    %c0_7 = arith.constant 0 : index
    %16 = vector.load %arg2[%c0_6, %15, %c0_7] : memref<1x288x204xbf16, #tpu.memory_space<vmem>>, vector<1x128x204xbf16>
    %17 = vector.shape_cast %16 : vector<1x128x204xbf16> to vector<128x204xbf16>
    %c1 = arith.constant 1 : index
    %c0_8 = arith.constant 0 : index
    %c0_9 = arith.constant 0 : index
    %18 = vector.load %arg3[%c1, %c0_8, %c0_9] : memref<3x204x128xbf16, #tpu.memory_space<vmem>>, vector<1x204x128xbf16>
    %19 = vector.shape_cast %18 : vector<1x204x128xbf16> to vector<204x128xbf16>
    %cst_10 = arith.constant dense<0.000000e+00> : vector<128x128xf32>
    %20 = tpu.matmul %17, %19, %cst_10 {dimension_numbers = #tpu.dot_dimension_numbers<[1], [0], [0], [1], [0, 0, 1, 1], [], []>} : vector<128x204xbf16>, vector<204x128xbf16>, vector<128x128xf32> -> vector<128x128xf32>
    %21 = arith.addf %11, %20 : vector<128x128xf32>
    %c2_i32 = arith.constant 2 : i32
    %22 = arith.addi %0, %c2_i32 : i32
    %c16_i32_11 = arith.constant 16 : i32
    %23 = arith.muli %22, %c16_i32_11 : i32
    %24 = tpu.assume_multiple %23, 8 : i32
    %c0_12 = arith.constant 0 : index
    %25 = arith.index_cast %24 : i32 to index
    %c0_13 = arith.constant 0 : index
    %26 = vector.load %arg2[%c0_12, %25, %c0_13] : memref<1x288x204xbf16, #tpu.memory_space<vmem>>, vector<1x128x204xbf16>
    %27 = vector.shape_cast %26 : vector<1x128x204xbf16> to vector<128x204xbf16>
    %c2 = arith.constant 2 : index
    %c0_14 = arith.constant 0 : index
    %c0_15 = arith.constant 0 : index
    %28 = vector.load %arg3[%c2, %c0_14, %c0_15] : memref<3x204x128xbf16, #tpu.memory_space<vmem>>, vector<1x204x128xbf16>
    %29 = vector.shape_cast %28 : vector<1x204x128xbf16> to vector<204x128xbf16>
    %cst_16 = arith.constant dense<0.000000e+00> : vector<128x128xf32>
    %30 = tpu.matmul %27, %29, %cst_16 {dimension_numbers = #tpu.dot_dimension_numbers<[1], [0], [0], [1], [0, 0, 1, 1], [], []>} : vector<128x204xbf16>, vector<204x128xbf16>, vector<128x128xf32> -> vector<128x128xf32>
    %31 = arith.addf %21, %30 : vector<128x128xf32>
    %c0_17 = arith.constant 0 : index
    %c0_18 = arith.constant 0 : index
    %32 = vector.load %arg4[%c0_17, %c0_18] : memref<1x128xf32, #tpu.memory_space<vmem>>, vector<1x128xf32>
    %33 = vector.broadcast %32 : vector<1x128xf32> to vector<128x128xf32>
    %34 = arith.addf %31, %33 : vector<128x128xf32>
    %35 = vector.extract_strided_slice %34 {offsets = [0, 0], sizes = [128, 32], strides = [1, 1]} : vector<128x128xf32> to vector<128x32xf32>
    %36 = arith.negf %35 : vector<128x32xf32>
    %37 = math.exp %36 : vector<128x32xf32>
    %cst_19 = arith.constant 1.000000e+00 : f32
    %38 = vector.broadcast %cst_19 : f32 to vector<128x32xf32>
    %39 = arith.addf %38, %37 : vector<128x32xf32>
    %40 = arith.divf %38, %39 : vector<128x32xf32>
    %41 = vector.extract_strided_slice %34 {offsets = [0, 32], sizes = [128, 32], strides = [1, 1]} : vector<128x128xf32> to vector<128x32xf32>
    %cst_20 = arith.constant 1.000000e+00 : f32
    %42 = vector.broadcast %cst_20 : f32 to vector<128x32xf32>
    %43 = arith.addf %41, %42 : vector<128x32xf32>
    %44 = arith.negf %43 : vector<128x32xf32>
    %45 = math.exp %44 : vector<128x32xf32>
    %cst_21 = arith.constant 1.000000e+00 : f32
    %46 = vector.broadcast %cst_21 : f32 to vector<128x32xf32>
    %47 = arith.addf %46, %45 : vector<128x32xf32>
    %48 = arith.divf %46, %47 : vector<128x32xf32>
    %49 = vector.extract_strided_slice %34 {offsets = [0, 64], sizes = [128, 32], strides = [1, 1]} : vector<128x128xf32> to vector<128x32xf32>
    %50 = math.tanh %49 : vector<128x32xf32>
    %51 = vector.extract_strided_slice %34 {offsets = [0, 96], sizes = [128, 32], strides = [1, 1]} : vector<128x128xf32> to vector<128x32xf32>
    %c0_22 = arith.constant 0 : index
    %c0_23 = arith.constant 0 : index
    %c0_24 = arith.constant 0 : index
    %52 = vector.load %arg8[%c0_22, %c0_23, %c0_24] : memref<1x128x32xf32, #tpu.memory_space<vmem>>, vector<1x128x32xf32>
    %53 = vector.shape_cast %52 : vector<1x128x32xf32> to vector<128x32xf32>
    %c0_25 = arith.constant 0 : index
    %c0_26 = arith.constant 0 : index
    %c0_27 = arith.constant 0 : index
    %54 = vector.load %arg9[%c0_25, %c0_26, %c0_27] : memref<1x128x32xf32, #tpu.memory_space<vmem>>, vector<1x128x32xf32>
    %55 = vector.shape_cast %54 : vector<1x128x32xf32> to vector<128x32xf32>
    %56 = arith.mulf %48, %53 : vector<128x32xf32>
    %57 = arith.mulf %40, %50 : vector<128x32xf32>
    %58 = arith.addf %56, %57 : vector<128x32xf32>
    %59 = arith.truncf %58 : vector<128x32xf32> to vector<128x32xbf16>
    %c0_28 = arith.constant 0 : index
    %c0_29 = arith.constant 0 : index
    %60 = vector.load %arg6[%c0_28, %c0_29] : memref<68x32xbf16, #tpu.memory_space<vmem>>, vector<32x32xbf16>
    %cst_30 = arith.constant dense<0.000000e+00> : vector<128x32xf32>
    %61 = tpu.matmul %59, %60, %cst_30 {dimension_numbers = #tpu.dot_dimension_numbers<[1], [0], [0], [1], [0, 0, 1, 1], [], []>} : vector<128x32xbf16>, vector<32x32xbf16>, vector<128x32xf32> -> vector<128x32xf32>
    %62 = arith.truncf %55 : vector<128x32xf32> to vector<128x32xbf16>
    %c32 = arith.constant 32 : index
    %c0_31 = arith.constant 0 : index
    %63 = vector.load %arg6[%c32, %c0_31] : memref<68x32xbf16, #tpu.memory_space<vmem>>, vector<32x32xbf16>
    %cst_32 = arith.constant dense<0.000000e+00> : vector<128x32xf32>
    %64 = tpu.matmul %62, %63, %cst_32 {dimension_numbers = #tpu.dot_dimension_numbers<[1], [0], [0], [1], [0, 0, 1, 1], [], []>} : vector<128x32xbf16>, vector<32x32xbf16>, vector<128x32xf32> -> vector<128x32xf32>
    %65 = arith.addf %61, %64 : vector<128x32xf32>
    %c0_33 = arith.constant 0 : index
    %c0_34 = arith.constant 0 : index
    %c0_35 = arith.constant 0 : index
    %66 = vector.load %arg5[%c0_33, %c0_34, %c0_35] : memref<1x128x4xbf16, #tpu.memory_space<vmem>>, vector<1x128x4xbf16>
    %67 = vector.shape_cast %66 : vector<1x128x4xbf16> to vector<128x4xbf16>
    %c64 = arith.constant 64 : index
    %c0_36 = arith.constant 0 : index
    %68 = vector.load %arg6[%c64, %c0_36] : memref<68x32xbf16, #tpu.memory_space<vmem>>, vector<4x32xbf16>
    %cst_37 = arith.constant dense<0.000000e+00> : vector<128x32xf32>
    %69 = tpu.matmul %67, %68, %cst_37 {dimension_numbers = #tpu.dot_dimension_numbers<[1], [0], [0], [1], [0, 0, 1, 1], [], []>} : vector<128x4xbf16>, vector<4x32xbf16>, vector<128x32xf32> -> vector<128x32xf32>
    %70 = arith.addf %65, %69 : vector<128x32xf32>
    %c0_38 = arith.constant 0 : index
    %c0_39 = arith.constant 0 : index
    %71 = vector.load %arg7[%c0_38, %c0_39] : memref<1x32xf32, #tpu.memory_space<vmem>>, vector<1x32xf32>
    %72 = vector.broadcast %71 : vector<1x32xf32> to vector<128x32xf32>
    %73 = arith.addf %70, %72 : vector<128x32xf32>
    %74 = arith.negf %73 : vector<128x32xf32>
    %75 = math.exp %74 : vector<128x32xf32>
    %cst_40 = arith.constant 1.000000e+00 : f32
    %76 = vector.broadcast %cst_40 : f32 to vector<128x32xf32>
    %77 = arith.addf %76, %75 : vector<128x32xf32>
    %78 = arith.divf %76, %77 : vector<128x32xf32>
    %79 = arith.mulf %55, %78 : vector<128x32xf32>
    %c0_41 = arith.constant 0 : index
    %c0_42 = arith.constant 0 : index
    %c0_43 = arith.constant 0 : index
    %80 = vector.load %arg10[%c0_41, %c0_42, %c0_43] : memref<1x128x96xf32, #tpu.memory_space<vmem>>, vector<1x128x32xf32>
    %81 = vector.shape_cast %80 : vector<1x128x32xf32> to vector<128x32xf32>
    %82 = vector.shape_cast %58 : vector<128x32xf32> to vector<1x128x32xf32>
    tpu.vector_store %arg10[%c0_41, %c0_42, %c0_43], %82 {strides = array<i32>} : memref<1x128x96xf32, #tpu.memory_space<vmem>>, vector<1x128x32xf32>,
    %c0_44 = arith.constant 0 : index
    %c0_45 = arith.constant 0 : index
    %c32_46 = arith.constant 32 : index
    %83 = vector.load %arg10[%c0_44, %c0_45, %c32_46] : memref<1x128x96xf32, #tpu.memory_space<vmem>>, vector<1x128x32xf32>
    %84 = vector.shape_cast %83 : vector<1x128x32xf32> to vector<128x32xf32>
    %85 = vector.shape_cast %79 : vector<128x32xf32> to vector<1x128x32xf32>
    tpu.vector_store %arg10[%c0_44, %c0_45, %c32_46], %85 {strides = array<i32>} : memref<1x128x96xf32, #tpu.memory_space<vmem>>, vector<1x128x32xf32>,
    %c0_47 = arith.constant 0 : index
    %c0_48 = arith.constant 0 : index
    %c64_49 = arith.constant 64 : index
    %86 = vector.load %arg10[%c0_47, %c0_48, %c64_49] : memref<1x128x96xf32, #tpu.memory_space<vmem>>, vector<1x128x32xf32>
    %87 = vector.shape_cast %86 : vector<1x128x32xf32> to vector<128x32xf32>
    %88 = vector.shape_cast %51 : vector<128x32xf32> to vector<1x128x32xf32>
    tpu.vector_store %arg10[%c0_47, %c0_48, %c64_49], %88 {strides = array<i32>} : memref<1x128x96xf32, #tpu.memory_space<vmem>>, vector<1x128x32xf32>,
    return
  }
  func.func @transform_0(%arg0: i32, %arg1: i32) -> (i32, i32, i32) {
    %c0_i32 = arith.constant 0 : i32
    %c0_i32_0 = arith.constant 0 : i32
    %c0_i32_1 = arith.constant 0 : i32
    return %arg0, %c0_i32, %c0_i32_0 : i32, i32, i32
  }
  func.func @transform_1(%arg0: i32, %arg1: i32) -> (i32, i32, i32) {
    %c0_i32 = arith.constant 0 : i32
    %c0_i32_0 = arith.constant 0 : i32
    %c0_i32_1 = arith.constant 0 : i32
    %c0_i32_2 = arith.constant 0 : i32
    return %c0_i32, %c0_i32_0, %c0_i32_1 : i32, i32, i32
  }
  func.func @transform_2(%arg0: i32, %arg1: i32) -> (i32, i32) {
    %c0_i32 = arith.constant 0 : i32
    %c0_i32_0 = arith.constant 0 : i32
    %c0_i32_1 = arith.constant 0 : i32
    return %c0_i32, %c0_i32_0 : i32, i32
  }
  func.func @transform_3(%arg0: i32, %arg1: i32) -> (i32, i32, i32) {
    %c0_i32 = arith.constant 0 : i32
    %c0_i32_0 = arith.constant 0 : i32
    return %arg0, %arg1, %c0_i32 : i32, i32, i32
  }
  func.func @transform_4(%arg0: i32, %arg1: i32) -> (i32, i32) {
    %c0_i32 = arith.constant 0 : i32
    %c0_i32_0 = arith.constant 0 : i32
    %c0_i32_1 = arith.constant 0 : i32
    return %c0_i32, %c0_i32_0 : i32, i32
  }
  func.func @transform_5(%arg0: i32, %arg1: i32) -> (i32, i32) {
    %c0_i32 = arith.constant 0 : i32
    %c0_i32_0 = arith.constant 0 : i32
    %c0_i32_1 = arith.constant 0 : i32
    return %c0_i32, %c0_i32_0 : i32, i32
  }
  func.func @transform_6(%arg0: i32, %arg1: i32) -> (i32, i32, i32) {
    %c0_i32 = arith.constant 0 : i32
    %c0_i32_0 = arith.constant 0 : i32
    return %arg0, %arg1, %c0_i32 : i32, i32, i32
  }
  func.func @transform_7(%arg0: i32, %arg1: i32) -> (i32, i32, i32) {
    %c0_i32 = arith.constant 0 : i32
    %c0_i32_0 = arith.constant 0 : i32
    return %arg0, %arg1, %c0_i32 : i32, i32, i32
  }
  func.func @transform_8(%arg0: i32, %arg1: i32) -> (i32, i32, i32) {
    %c0_i32 = arith.constant 0 : i32
    %c0_i32_0 = arith.constant 0 : i32
    return %arg0, %arg1, %c0_i32 : i32, i32, i32
  }
}

module attributes {stable_mosaic.version = 11 : i64} {
  func.func @_output_kernel(%arg0: i32, %arg1: i32, %arg2: memref<1x288x192xbf16, #tpu.memory_space<vmem>>, %arg3: memref<3x192x96xbf16, #tpu.memory_space<vmem>>, %arg4: memref<1x96xf32, #tpu.memory_space<vmem>>, %arg5: memref<1x128x96xf32, #tpu.memory_space<vmem>>, %arg6: memref<1x128x32xf32, #tpu.memory_space<vmem>>) attributes {dimension_semantics = [#tpu.dimension_semantics<parallel>, #tpu.dimension_semantics<parallel>], iteration_bounds = array<i64: 2, 2>, scalar_prefetch = 0 : i64, scratch_operands = 0 : i64, tpu.core_type = #tpu.core_type<tc>, window_params = [{transform_indices = @transform_0, window_bounds = array<i64: 1, 288, 192>}, {pipeline_mode = #tpu.pipeline_mode<synchronous>, transform_indices = @transform_1, window_bounds = array<i64: 3, 192, 96>}, {pipeline_mode = #tpu.pipeline_mode<synchronous>, transform_indices = @transform_2, window_bounds = array<i64: 1, 96>}, {transform_indices = @transform_3, window_bounds = array<i64: 1, 128, 96>}, {transform_indices = @transform_4, window_bounds = array<i64: 1, 128, 32>}]} {
    %c8_i32 = arith.constant 8 : i32
    %0 = arith.muli %arg1, %c8_i32 : i32
    %cst = arith.constant 0.000000e+00 : f32
    %1 = vector.broadcast %cst : f32 to vector<128x96xf32>
    %c0_i32 = arith.constant 0 : i32
    %2 = arith.addi %0, %c0_i32 : i32
    %c16_i32 = arith.constant 16 : i32
    %3 = arith.muli %2, %c16_i32 : i32
    %4 = tpu.assume_multiple %3, 8 : i32
    %c0 = arith.constant 0 : index
    %5 = arith.index_cast %4 : i32 to index
    %c0_0 = arith.constant 0 : index
    %6 = vector.load %arg2[%c0, %5, %c0_0] : memref<1x288x192xbf16, #tpu.memory_space<vmem>>, vector<1x128x192xbf16>
    %7 = vector.shape_cast %6 : vector<1x128x192xbf16> to vector<128x192xbf16>
    %c0_1 = arith.constant 0 : index
    %c0_2 = arith.constant 0 : index
    %c0_3 = arith.constant 0 : index
    %8 = vector.load %arg3[%c0_1, %c0_2, %c0_3] : memref<3x192x96xbf16, #tpu.memory_space<vmem>>, vector<1x192x96xbf16>
    %9 = vector.shape_cast %8 : vector<1x192x96xbf16> to vector<192x96xbf16>
    %cst_4 = arith.constant dense<0.000000e+00> : vector<128x96xf32>
    %10 = tpu.matmul %7, %9, %cst_4 {dimension_numbers = #tpu.dot_dimension_numbers<[1], [0], [0], [1], [0, 0, 1, 1], [], []>} : vector<128x192xbf16>, vector<192x96xbf16>, vector<128x96xf32> -> vector<128x96xf32>
    %11 = arith.addf %1, %10 : vector<128x96xf32>
    %c1_i32 = arith.constant 1 : i32
    %12 = arith.addi %0, %c1_i32 : i32
    %c16_i32_5 = arith.constant 16 : i32
    %13 = arith.muli %12, %c16_i32_5 : i32
    %14 = tpu.assume_multiple %13, 8 : i32
    %c0_6 = arith.constant 0 : index
    %15 = arith.index_cast %14 : i32 to index
    %c0_7 = arith.constant 0 : index
    %16 = vector.load %arg2[%c0_6, %15, %c0_7] : memref<1x288x192xbf16, #tpu.memory_space<vmem>>, vector<1x128x192xbf16>
    %17 = vector.shape_cast %16 : vector<1x128x192xbf16> to vector<128x192xbf16>
    %c1 = arith.constant 1 : index
    %c0_8 = arith.constant 0 : index
    %c0_9 = arith.constant 0 : index
    %18 = vector.load %arg3[%c1, %c0_8, %c0_9] : memref<3x192x96xbf16, #tpu.memory_space<vmem>>, vector<1x192x96xbf16>
    %19 = vector.shape_cast %18 : vector<1x192x96xbf16> to vector<192x96xbf16>
    %cst_10 = arith.constant dense<0.000000e+00> : vector<128x96xf32>
    %20 = tpu.matmul %17, %19, %cst_10 {dimension_numbers = #tpu.dot_dimension_numbers<[1], [0], [0], [1], [0, 0, 1, 1], [], []>} : vector<128x192xbf16>, vector<192x96xbf16>, vector<128x96xf32> -> vector<128x96xf32>
    %21 = arith.addf %11, %20 : vector<128x96xf32>
    %c2_i32 = arith.constant 2 : i32
    %22 = arith.addi %0, %c2_i32 : i32
    %c16_i32_11 = arith.constant 16 : i32
    %23 = arith.muli %22, %c16_i32_11 : i32
    %24 = tpu.assume_multiple %23, 8 : i32
    %c0_12 = arith.constant 0 : index
    %25 = arith.index_cast %24 : i32 to index
    %c0_13 = arith.constant 0 : index
    %26 = vector.load %arg2[%c0_12, %25, %c0_13] : memref<1x288x192xbf16, #tpu.memory_space<vmem>>, vector<1x128x192xbf16>
    %27 = vector.shape_cast %26 : vector<1x128x192xbf16> to vector<128x192xbf16>
    %c2 = arith.constant 2 : index
    %c0_14 = arith.constant 0 : index
    %c0_15 = arith.constant 0 : index
    %28 = vector.load %arg3[%c2, %c0_14, %c0_15] : memref<3x192x96xbf16, #tpu.memory_space<vmem>>, vector<1x192x96xbf16>
    %29 = vector.shape_cast %28 : vector<1x192x96xbf16> to vector<192x96xbf16>
    %cst_16 = arith.constant dense<0.000000e+00> : vector<128x96xf32>
    %30 = tpu.matmul %27, %29, %cst_16 {dimension_numbers = #tpu.dot_dimension_numbers<[1], [0], [0], [1], [0, 0, 1, 1], [], []>} : vector<128x192xbf16>, vector<192x96xbf16>, vector<128x96xf32> -> vector<128x96xf32>
    %31 = arith.addf %21, %30 : vector<128x96xf32>
    %c0_17 = arith.constant 0 : index
    %c0_18 = arith.constant 0 : index
    %32 = vector.load %arg4[%c0_17, %c0_18] : memref<1x96xf32, #tpu.memory_space<vmem>>, vector<1x96xf32>
    %33 = vector.broadcast %32 : vector<1x96xf32> to vector<128x96xf32>
    %34 = arith.addf %31, %33 : vector<128x96xf32>
    %c0_19 = arith.constant 0 : index
    %c0_20 = arith.constant 0 : index
    %c64 = arith.constant 64 : index
    %35 = vector.load %arg5[%c0_19, %c0_20, %c64] : memref<1x128x96xf32, #tpu.memory_space<vmem>>, vector<1x128x32xf32>
    %36 = vector.shape_cast %35 : vector<1x128x32xf32> to vector<128x32xf32>
    %37 = vector.extract_strided_slice %34 {offsets = [0, 0], sizes = [128, 32], strides = [1, 1]} : vector<128x96xf32> to vector<128x32xf32>
    %38 = arith.addf %36, %37 : vector<128x32xf32>
    %39 = vector.extract_strided_slice %34 {offsets = [0, 32], sizes = [128, 32], strides = [1, 1]} : vector<128x96xf32> to vector<128x32xf32>
    %40 = arith.addf %38, %39 : vector<128x32xf32>
    %41 = math.tanh %40 : vector<128x32xf32>
    %42 = vector.extract_strided_slice %34 {offsets = [0, 64], sizes = [128, 32], strides = [1, 1]} : vector<128x96xf32> to vector<128x32xf32>
    %43 = math.tanh %42 : vector<128x32xf32>
    %44 = arith.mulf %41, %43 : vector<128x32xf32>
    %c0_21 = arith.constant 0 : index
    %c0_22 = arith.constant 0 : index
    %c0_23 = arith.constant 0 : index
    %45 = vector.load %arg6[%c0_21, %c0_22, %c0_23] : memref<1x128x32xf32, #tpu.memory_space<vmem>>, vector<1x128x32xf32>
    %46 = vector.shape_cast %45 : vector<1x128x32xf32> to vector<128x32xf32>
    %47 = vector.shape_cast %44 : vector<128x32xf32> to vector<1x128x32xf32>
    tpu.vector_store %arg6[%c0_21, %c0_22, %c0_23], %47 {strides = array<i32>} : memref<1x128x32xf32, #tpu.memory_space<vmem>>, vector<1x128x32xf32>,
    return
  }
  func.func @transform_0(%arg0: i32, %arg1: i32) -> (i32, i32, i32) {
    %c0_i32 = arith.constant 0 : i32
    %c0_i32_0 = arith.constant 0 : i32
    %c0_i32_1 = arith.constant 0 : i32
    return %arg0, %c0_i32, %c0_i32_0 : i32, i32, i32
  }
  func.func @transform_1(%arg0: i32, %arg1: i32) -> (i32, i32, i32) {
    %c0_i32 = arith.constant 0 : i32
    %c0_i32_0 = arith.constant 0 : i32
    %c0_i32_1 = arith.constant 0 : i32
    %c0_i32_2 = arith.constant 0 : i32
    return %c0_i32, %c0_i32_0, %c0_i32_1 : i32, i32, i32
  }
  func.func @transform_2(%arg0: i32, %arg1: i32) -> (i32, i32) {
    %c0_i32 = arith.constant 0 : i32
    %c0_i32_0 = arith.constant 0 : i32
    %c0_i32_1 = arith.constant 0 : i32
    return %c0_i32, %c0_i32_0 : i32, i32
  }
  func.func @transform_3(%arg0: i32, %arg1: i32) -> (i32, i32, i32) {
    %c0_i32 = arith.constant 0 : i32
    %c0_i32_0 = arith.constant 0 : i32
    return %arg0, %arg1, %c0_i32 : i32, i32, i32
  }
  func.func @transform_4(%arg0: i32, %arg1: i32) -> (i32, i32, i32) {
    %c0_i32 = arith.constant 0 : i32
    %c0_i32_0 = arith.constant 0 : i32
    return %arg0, %arg1, %c0_i32 : i32, i32, i32
  }
}

</mosaic_0001>

<bundles_post_ra>
// kernel: stlstm_cell_forward.3
= control target key start
LH: loop header
LB: loop body
LE: loop exit
PB: predicated region body
PF: predicated region fallthrough
CT: control target
= control target key end

     0   :  { %9 = vsyncpa [#allocation3], 0  ;;  %s2854_s0 = inlined_call_operand.vmem [shape: bf16[2,288,192], index: 0, kind: input, shape index: {}]   ;;  %s2855_s1 = inlined_call_operand.vmem [shape: bf16[3,192,96], index: 1, kind: input, shape index: {}]   ;;  %s2856_s2 = inlined_call_operand.vmem [shape: f32[1,96], index: 2, kind: input, shape index: {}]   ;;  %s2857_s3 = inlined_call_operand.vmem [shape: f32[2,256,96], index: 3, kind: input, shape index: {}]   ;;  %s2858_s4 = inlined_call_operand.hbm [shape: f32[2,256,32], index: 4, kind: output, shape index: {}]  }
   0x1   :  { %11 = vsyncpa [#allocation3 + $0x1], 0  ;;  %s2223_s15 = smov 0   ;;  %s2225_s16 = smov 0  }
   0x2   :  { %s2227_s17 = smov 0   ;;  %s2229_s18 = smov 0  }
   0x3   :  { %s2231_s19 = smov 0   ;;  %s2233_s20 = smov 0  }
   0x4   :  { %s2235_s21 = smov 0   ;;  %s2237_s22 = smov 0  }
   0x5 LB: > { %s1631_s23 = sadd.s32 4294967295, %s2190_s22   ;;  %s1632_s24 = sadd.s32 4294967294, %s2190_s22   ;;  %s2190_s22 = sphi %s2237_s22, %s17_s22   ;;  %s2186_s21 = sphi %s2235_s21, %s2867_s21   ;;  %s2182_s20 = sphi %s2233_s20, %s2866_s20   ;;  %s2178_s19 = sphi %s2231_s19, %s2865_s19   ;;  %s2174_s18 = sphi %s2229_s18, %s2864_s18   ;;  %s2170_s17 = sphi %s2227_s17, %s2863_s17   ;;  %s2166_s16 = sphi %s2225_s16, %s2862_s16   ;;  %s2162_s15 = sphi %s2223_s15, %s2861_s15  }
   0x6   : > { %s26_s25 = sadd.s32 1, %s2182_s20  ;;  %s29_s26 = sadd.s32 1, %s2186_s21 }
   0x7   : > { %p27_p0 = scmp.ge.s32.totalorder %s26_s25, 2  ;;  %p144_p1 = scmp.ne.s32.totalorder %s2170_s17, %s2166_s16 }
   0x8   : > { %p145_p2 = scmp.eq.s32.totalorder %s1631_s23, 3  ;;  %p150_p5 = scmp.ne.s32.totalorder %s2166_s16, %s2162_s15 }
   0x9   : > { %s2869_s25 = smov (%p27_p0, %s26_s25), 0  ;;  %s2871_s26 = smov (!%p27_p0, %s29_s26), %s2186_s21 }
   0xa   : > { %s130_s27 = ssub.s32 %s2182_s20, %s2869_s25  ;;  %p2274_p3 = por %p145_p2, %p144_p1 }
   0xb   : > { %p31_p4 = scmp.ge.s32.totalorder %s2871_s26, 2  ;;  %p151_p6 = scmp.eq.s32.totalorder %s1632_s24, 3 }
   0xc   : > { %p1635_p7 = scmp.ge.s32.totalorder %s2190_s22, 1  ;;  %p196_p9 = scmp.lt.s32.totalorder %s2190_s22, 5 }
   0xd   : > { %s2873_s26 = smov (%p31_p4, %s2871_s26), 0  ;;  %p2283_p8 = por %p151_p6, %p150_p5 }
   0xe   : > { %s129_s30 = ssub.s32 %s2186_s21, %s2873_s26  ;;  %s134_s5 = sadd.s32 1, %s2170_s17 }
   0xf   : > { %s131_s6 = sor.u32 %s130_s27, %s129_s30  ;;  %p197_p10 = pnand %p1635_p7, %p196_p9 }
  0x10   : > { %p132_p11 = scmp.eq.s32.totalorder %s131_s6, 0  ;;  %v1924_v0 = vld [vmem:[%s2855_s1 + $0x60] sm:$0xff] (!%p197_p10)   ;;  %v2192_v1 = vmov (!%p197_p10), 0   ;;  %v1926_v3 = vld [vmem:[%s2855_s1 + $0x68] sm:$0xff] (!%p197_p10)   ;;  %v1928_v5 = vld [vmem:[%s2855_s1 + $0x70] sm:$0xff] (!%p197_p10)   ;;  %p231_p12 = scmp.lt.s32.totalorder (!%p197_p10), %s2178_s19, 1 }
  0x11   : > { %200 = sbr.rel (%p197_p10) target bundleno = 669 (0x29d), region = 36  ;;  %512 = vmatprep.subr.bf16.mxu0 (!%p197_p10), %v2192_v1  ;;  %777 = vmatprep.subr.bf16.mxu1 (!%p197_p10), %v2192_v1  ;;  %v1925_v2 = vld [vmem:[%s2855_s1] sm:$0xff] (!%p197_p10)   ;;  %v1927_v4 = vld [vmem:[%s2855_s1 + $0x8] sm:$0xff] (!%p197_p10)   ;;  %v1929_v6 = vld [vmem:[%s2855_s1 + $0x10] sm:$0xff] (!%p197_p10)   ;;  %s2323_s9 = sshll.u32 (!%p197_p10), %s2174_s18, 7  ;;  %vm487_vm0 = vcmask (!%p197_p10), 523264  }
  0x12   : > { %s2292_s7 = scalar_select %p132_p11, %s2170_s17, %s134_s5  }
  0x13   : > { %513 = vmatpush1.bf16.msra.mxu0 (!%p197_p10), %v1924_v0  ;;  %778 = vmatpush1.bf16.msra.mxu1 (!%p197_p10), %v1925_v2  ;;  %v1930_v7 = vld [vmem:[%s2855_s1 + $0x78] sm:$0xff] (!%p197_p10)   ;;  %s1816_s13 = sadd.s32 (!%p197_p10), 16, %s2323_s9  ;;  %v1932_v9 = vld [vmem:[%s2855_s1 + $0x80] sm:$0xff] (!%p197_p10)   ;;  %v1934_v11 = vld [vmem:[%s2855_s1 + $0x88] sm:$0xff] (!%p197_p10)   ;;  %s1819_s10 = sadd.s32 (!%p197_p10), 32, %s2323_s9  ;;  %vm1498_vm1 = vcmask (!%p197_p10), 261120  }
  0x14   : > { %514 = vmatprep.subr.bf16.mxu0 (!%p197_p10), %v2192_v1  ;;  %779 = vmatprep.subr.bf16.mxu1 (!%p197_p10), %v2192_v1  ;;  %v1931_v8 = vld [vmem:[%s2855_s1 + $0x18] sm:$0xff] (!%p197_p10)   ;;  %v1933_v10 = vld [vmem:[%s2855_s1 + $0x20] sm:$0xff] (!%p197_p10)   ;;  %s297_s5 = sshra.s32 (!%p197_p10), %s1816_s13, 3  ;;  %v1935_v12 = vld [vmem:[%s2855_s1 + $0x28] sm:$0xff] (!%p197_p10)   ;;  %s876_s11 = sshra.s32 (!%p197_p10), %s1819_s10, 3 }
  0x15   : > { %s1817_s13 = sshll.u32 (!%p197_p10), %s297_s5, 3  ;;  %v1936_v13 = vld [vmem:[%s2855_s1 + $0x90] sm:$0xff] (!%p197_p10)   ;;  %v1938_v16 = vld [vmem:[%s2855_s1 + $0x98] sm:$0xff] (!%p197_p10)   ;;  %v1940_v19 = vld [vmem:[%s2855_s1 + $0xa0] sm:$0xff] (!%p197_p10)   ;;  %s2194_s6 = smov (!%p197_p10), 32  }
  0x16   : > { %v1937_v14 = vld [vmem:[%s2855_s1 + $0x30] sm:$0xff] (!%p197_p10)   ;;  %v1939_v18 = vld [vmem:[%s2855_s1 + $0x38] sm:$0xff] (!%p197_p10)   ;;  %v1941_v20 = vld [vmem:[%s2855_s1 + $0x40] sm:$0xff] (!%p197_p10)   ;;  %s2695_s10 = sshll.u32 (!%p197_p10), %s2174_s18, 4  ;;  %s228_s18 = sand.u32 (!%p197_p10), 1, %s2166_s16  }
  0x17   : > { %515 = vmatpush1.bf16.msra.mxu0 (!%p197_p10), %v1926_v3  ;;  %780 = vmatpush1.bf16.msra.mxu1 (!%p197_p10), %v1927_v4  ;;  %v1942_v21 = vld [vmem:[%s2855_s1 + $0xa8] sm:$0xff] (!%p197_p10)   ;;  %v1944_v23 = vld [vmem:[%s2855_s1 + $0xb0] sm:$0xff] (!%p197_p10)   ;;  %v1946_v25 = vld [vmem:[%s2855_s1 + $0xb8] sm:$0xff] (!%p197_p10)   ;;  %p239_p13 = scmp.lt.s32.totalorder (!%p197_p10), %s2695_s10, 31 }
  0x18   : > { %516 = vmatprep.subr.bf16.mxu0 %v2192_v1  ;;  %781 = vmatprep.subr.bf16.mxu1 %v2192_v1  ;;  %s2330_s12 = scalar_select %p231_p12, %s2178_s19, 1  ;;  %v1943_v22 = vld [vmem:[%s2855_s1 + $0x48] sm:$0xff]   ;;  %v1945_v24 = vld [vmem:[%s2855_s1 + $0x50] sm:$0xff]   ;;  %v1947_v26 = vld [vmem:[%s2855_s1 + $0x58] sm:$0xff]  }
  0x19   : > { %v1954_v29 = vld [vmem:[%s2855_s1 + $0xc0] sm:$0xff]   ;;  %v1959_v32 = vld [vmem:[%s2855_s1 + $0xc8] sm:$0xff]   ;;  %v1962_v35 = vld [vmem:[%s2855_s1 + $0xd0] sm:$0xff]  }
  0x1a   : > { %s1847_s30 = smul.u32 288, %s2330_s12  ;;  %v1969_v38 = vld [vmem:[%s2855_s1 + $0xd8] sm:$0xff]   ;;  %v1974_v43 = vld [vmem:[%s2855_s1 + $0xe0] sm:$0xff]   ;;  %v1977_v44 = vld [vmem:[%s2855_s1 + $0xe8] sm:$0xff]  }
  0x1b   : > { %517 = vmatpush1.bf16.msra.mxu0 %v1928_v5  ;;  %782 = vmatpush1.bf16.msra.mxu1 %v1929_v6  ;;  %v1984_v49 = vld [vmem:[%s2855_s1 + $0xf0] sm:$0xff]   ;;  %v1989_v50 = vld [vmem:[%s2855_s1 + $0xf8] sm:$0xff]   ;;  %v1992_v55 = vld [vmem:[%s2855_s1 + $0x100] sm:$0xff]  }
  0x1c   : > { %518 = vmatprep.subr.bf16.mxu0 %v2192_v1  ;;  %783 = vmatprep.subr.bf16.mxu1 %v2192_v1  ;;  %s2353_s24 = scalar_lea.vmem %s2854_s0, %s1847_s30  ;;  %v1999_v56 = vld [vmem:[%s2855_s1 + $0x108] sm:$0xff]   ;;  %v2004_v61 = vld [vmem:[%s2855_s1 + $0x110] sm:$0xff]   ;;  %v2007_v62 = vld [vmem:[%s2855_s1 + $0x118] sm:$0xff]  }
  0x1d   : > { %s2360_s8 = scalar_lea.vmem %s2353_s24, %s1817_s13  ;;  %s2368_s30 = scalar_lea.vmem %s2353_s24, %s2323_s9 }
  0x1e   : > { %v1950_v15 = vld [vmem:[%s2360_s8 + $0x4] ss:$8 sps:$4 sm:$0xff]   ;;  %v1948_v27 = vld [vmem:[%s2360_s8] ss:$8 sps:$4 sm:$0xff]   ;;  %v1955_v30 = vld [vmem:[%s2360_s8 + $0x14] ss:$8 sps:$4 sm:$0xff]  }
  0x1f   : > { %519 = vmatpush1.bf16.msra.mxu0 %v1930_v7  ;;  %784 = vmatpush1.bf16.msra.mxu1 %v1931_v8  ;;  %v1953_v17 = vld [vmem:[%s2368_s30 + $0x4] ss:$8 sps:$4 sm:$0xff]   ;;  %v1951_v28 = vld [vmem:[%s2368_s30] ss:$8 sps:$4 sm:$0xff]   ;;  %v1957_v31 = vld [vmem:[%s2368_s30 + $0x14] ss:$8 sps:$4 sm:$0xff]  }
  0x20   : > { %520 = vmatprep.subr.bf16.mxu0 %v2192_v1  ;;  %785 = vmatprep.subr.bf16.mxu1 %v2192_v1  ;;  %v1960_v33 = vld [vmem:[%s2360_s8 + $0x10] ss:$8 sps:$4 sm:$0xff]   ;;  %s1820_s9 = sshll.u32 %s876_s11, 3  ;;  %v1963_v36 = vld [vmem:[%s2360_s8 + $0x24] ss:$8 sps:$4 sm:$0xff]   ;;  %s1639_s11 = sshll.u32 %s2330_s12, 5 }
  0x21   : > { %1700 = vmatprep.mubr.msk.bf16.mxu0 %vm487_vm0, %v1950_v15  ;;  %1736 = vmatprep.mubr.msk.bf16.mxu1 %vm487_vm0, %v1953_v17  ;;  %v1961_v34 = vld [vmem:[%s2368_s30 + $0x10] ss:$8 sps:$4 sm:$0xff]   ;;  %s2440_s27 = scalar_lea.vmem %s2353_s24, %s1820_s9  ;;  %v1965_v37 = vld [vmem:[%s2368_s30 + $0x24] ss:$8 sps:$4 sm:$0xff]   ;;  %v1967_v39 = vld [vmem:[%s2360_s8 + $0x20] ss:$8 sps:$4 sm:$0xff]  }
  0x22   : > { %v1968_v40 = vld [vmem:[%s2368_s30 + $0x20] ss:$8 sps:$4 sm:$0xff]   ;;  %v1970_v41 = vld [vmem:[%s2360_s8 + $0x34] ss:$8 sps:$4 sm:$0xff]   ;;  %v1975_v45 = vld [vmem:[%s2360_s8 + $0x30] ss:$8 sps:$4 sm:$0xff]  }
  0x23   : > { %521 = vmatpush1.bf16.msra.mxu0 %v1932_v9  ;;  %786 = vmatpush1.bf16.msra.mxu1 %v1933_v10  ;;  %v1972_v42 = vld [vmem:[%s2368_s30 + $0x34] ss:$8 sps:$4 sm:$0xff]   ;;  %v1976_v46 = vld [vmem:[%s2368_s30 + $0x30] ss:$8 sps:$4 sm:$0xff]   ;;  %v1978_v47 = vld [vmem:[%s2360_s8 + $0x44] ss:$8 sps:$4 sm:$0xff]  }
  0x24   : > { %522 = vmatprep.subr.bf16.mxu0 %v2192_v1  ;;  %787 = vmatprep.subr.bf16.mxu1 %v2192_v1  ;;  %v1980_v48 = vld [vmem:[%s2368_s30 + $0x44] ss:$8 sps:$4 sm:$0xff]   ;;  %v1982_v51 = vld [vmem:[%s2360_s8 + $0x40] ss:$8 sps:$4 sm:$0xff]   ;;  %v1985_v53 = vld [vmem:[%s2360_s8 + $0x54] ss:$8 sps:$4 sm:$0xff]  }
  0x25   : > { %v1983_v52 = vld [vmem:[%s2368_s30 + $0x40] ss:$8 sps:$4 sm:$0xff]   ;;  %v1987_v54 = vld [vmem:[%s2368_s30 + $0x54] ss:$8 sps:$4 sm:$0xff]   ;;  %v1990_v57 = vld [vmem:[%s2360_s8 + $0x50] ss:$8 sps:$4 sm:$0xff]  }
  0x26   : > { %v1991_v58 = vld [vmem:[%s2368_s30 + $0x50] ss:$8 sps:$4 sm:$0xff]   ;;  %v1993_v59 = vld [vmem:[%s2360_s8 + $0x64] ss:$8 sps:$4 sm:$0xff]   ;;  %v1997_v63 = vld [vmem:[%s2360_s8 + $0x60] ss:$8 sps:$4 sm:$0xff]  }
  0x27   : > { %523 = vmatpush1.bf16.msra.mxu0 %v1934_v11  ;;  %788 = vmatpush1.bf16.msra.mxu1 %v1935_v12  ;;  %v1995_v60 = vld [vmem:[%s2368_s30 + $0x64] ss:$8 sps:$4 sm:$0xff]   ;;  %v1998_v0 = vld [vmem:[%s2368_s30 + $0x60] ss:$8 sps:$4 sm:$0xff]   ;;  %v2000_v2 = vld [vmem:[%s2360_s8 + $0x74] ss:$8 sps:$4 sm:$0xff]  }
  0x28   : > { %524 = vmatprep.subr.bf16.mxu0 %v2192_v1  ;;  %789 = vmatprep.subr.bf16.mxu1 %v2192_v1  ;;  %v2002_v3 = vld [vmem:[%s2368_s30 + $0x74] ss:$8 sps:$4 sm:$0xff]   ;;  %v2005_v4 = vld [vmem:[%s2360_s8 + $0x70] ss:$8 sps:$4 sm:$0xff]   ;;  %v2013_v6 = vld [vmem:[%s2440_s27 + $0x44] ss:$8 sps:$4 sm:$0xff]  }
  0x29   : > { %v2006_v5 = vld [vmem:[%s2368_s30 + $0x70] ss:$8 sps:$4 sm:$0xff]   ;;  %v2008_v7 = vld [vmem:[%s2440_s27] ss:$8 sps:$4 sm:$0xff]   ;;  %v2014_v9 = vld [vmem:[%s2440_s27 + $0x14] ss:$8 sps:$4 sm:$0xff]  }
  0x2a   : > { %v2011_v8 = vld [vmem:[%s2440_s27 + $0x40] ss:$8 sps:$4 sm:$0xff]   ;;  %v2016_v10 = vld [vmem:[%s2440_s27 + $0x54] ss:$8 sps:$4 sm:$0xff]   ;;  %v2018_v11 = vld [vmem:[%s2440_s27 + $0x10] ss:$8 sps:$4 sm:$0xff]  }
  0x2b   : > { %525 = vmatpush1.bf16.msra.mxu0 %v1936_v13  ;;  %790 = vmatpush1.bf16.msra.mxu1 %v1937_v14  ;;  %v2019_v12 = vld [vmem:[%s2440_s27 + $0x50] ss:$8 sps:$4 sm:$0xff]   ;;  %v2020_v13 = vld [vmem:[%s2440_s27 + $0x24] ss:$8 sps:$4 sm:$0xff]   ;;  %v2024_v15 = vld [vmem:[%s2440_s27 + $0x20] ss:$8 sps:$4 sm:$0xff]  }
  0x2c   : > { %526 = vmatprep.subr.bf16.mxu0 %v2192_v1  ;;  %791 = vmatprep.subr.bf16.mxu1 %v2192_v1  ;;  %v2022_v14 = vld [vmem:[%s2440_s27 + $0x64] ss:$8 sps:$4 sm:$0xff]   ;;  %v2026_v17 = vld [vmem:[%s2440_s27 + $0x34] ss:$8 sps:$4 sm:$0xff]   ;;  %s240_s24 = scalar_select %p239_p13, %s2695_s10, 31 }
  0x2d   : > { %s1636_s12 = sshll.u32 %s228_s18, 7  ;;  %s1810_s30 = sshll.u32 %s2178_s19, 5 }
  0x2e   : > { %s242_s5 = sadd.s32 %s1639_s11, %s240_s24  ;;  %s2756_s8 = scalar_lea.vmem [#allocation2], %s1636_s12 }
  0x2f   : > { %527 = vmatpush1.bf16.msra.mxu0 %v1938_v16  ;;  %792 = vmatpush1.bf16.msra.mxu1 %v1939_v18  ;;  %v2025_v16 = vld [vmem:[%s2440_s27 + $0x60] ss:$8 sps:$4 sm:$0xff]   ;;  %v2028_v18 = vld [vmem:[%s2440_s27 + $0x74] ss:$8 sps:$4 sm:$0xff]   ;;  %s1640_s14 = sshll.u32 %s242_s5, 3  ;;  %s1531_s24 = sshll.u32 %s2756_s8, 4  ;;  %s2796_s24 = int_to_ptr.vmem [resolvable:$true] %s1531_s24 }
  0x30   : > { %528 = vmatprep.subr.bf16.mxu0 %v2192_v1  ;;  %793 = vmatprep.subr.bf16.mxu1 %v2192_v1  ;;  %s2703_s13 = scalar_lea.vmem %s2857_s3, %s1640_s14  ;;  %s2802_s19 = scalar_lea.sflag [#allocation3], %s228_s18 }
  0x31   : > { %s2195_s9 = smov [#allocation2]  }
  0x32   : > { %s2100_s23 = sshll.u32 %s2195_s9, 4  ;;  %s2101_s23 = int_to_ptr.vmem [resolvable:$false] %s2100_s23 }
  0x33   : > { %529 = vmatpush1.bf16.msra.mxu0 %v1940_v19  ;;  %794 = vmatpush1.bf16.msra.mxu1 %v1941_v20  ;;  %v2030_v19 = vld [vmem:[%s2440_s27 + $0x30] ss:$8 sps:$4 sm:$0xff]   ;;  %p2103_p4 = scmp.lt.s32.totalorder %s2796_s24, %s2101_s23 }
  0x34   : > { %530 = vmatprep.subr.bf16.mxu0 %v2192_v1  ;;  %795 = vmatprep.subr.bf16.mxu1 %v2192_v1  ;;  %v2031_v20 = vld [vmem:[%s2440_s27 + $0x70] ss:$8 sps:$4 sm:$0xff]  }
  0x37   : > { %531 = vmatpush1.bf16.msra.mxu0 %v1942_v21  ;;  %796 = vmatpush1.bf16.msra.mxu1 %v1943_v22 }
  0x38   : > { %532 = vmatprep.subr.bf16.mxu0 %v2192_v1  ;;  %797 = vmatprep.subr.bf16.mxu1 %v2192_v1 }
  0x3b   : > { %533 = vmatpush1.bf16.msra.mxu0 %v1944_v23  ;;  %798 = vmatpush1.bf16.msra.mxu1 %v1945_v24 }
  0x3c   : > { %534 = vmatprep.subr.bf16.mxu0 %v2192_v1  ;;  %799 = vmatprep.subr.bf16.mxu1 %v2192_v1 }
  0x3f   : > { %535 = vmatpush1.bf16.msra.mxu0 %v1946_v25  ;;  %800 = vmatpush1.bf16.msra.mxu1 %v1947_v26 }
  0x40   : > { %1090 = vmatprep.subr.bf16.mxu0 %v2192_v1  ;;  %1823 = vmatprep.subr.bf16.mxu1 %v2192_v1 }
  0x42   : > { %545 = vmatmul.mubr.bf16.vlgmr.msra.gmra.mrb[0].mxu0 %v1948_v27  ;;  %810 = vmatmul.mubr.bf16.vlgmr.msra.gmra.mrb[0].mxu1 %v1951_v28 }
  0x43   : > { %1091 = vmatpush1.bf16.msra.mxu0 %v1954_v29  ;;  %1835 = vmatpush1.bf16.msra.mxu1 %v1954_v29 }
  0x44   : > { %1701 = vmatprep.mubr.msk.bf16.mxu0 %vm487_vm0, %v1955_v30  ;;  %1824 = vmatprep.subr.bf16.mxu1 %v2192_v1 }
  0x45   : > { %1737 = vmatprep.mubr.msk.bf16.mxu1 %vm487_vm0, %v1957_v31  ;;  %1092 = vmatprep.subr.bf16.mxu0 %v2192_v1 }
  0x47   : > { %1093 = vmatpush1.bf16.msra.mxu0 %v1959_v32  ;;  %1836 = vmatpush1.bf16.msra.mxu1 %v1959_v32 }
  0x48   : > { %1094 = vmatprep.subr.bf16.mxu0 %v2192_v1  ;;  %1825 = vmatprep.subr.bf16.mxu1 %v2192_v1 }
  0x4a   : > { %553 = vmatmul.mubr.bf16.gmra.mrb[4].mxu0 %v1960_v33  ;;  %818 = vmatmul.mubr.bf16.gmra.mrb[4].mxu1 %v1961_v34 }
  0x4b   : > { %1095 = vmatpush1.bf16.msra.mxu0 %v1962_v35  ;;  %1837 = vmatpush1.bf16.msra.mxu1 %v1962_v35 }
  0x4c   : > { %1702 = vmatprep.mubr.msk.bf16.mxu0 %vm487_vm0, %v1963_v36  ;;  %1738 = vmatprep.mubr.msk.bf16.mxu1 %vm487_vm0, %v1965_v37 }
  0x4d   : > { %1826 = vmatprep.subr.bf16.mxu1 %v2192_v1  ;;  %1096 = vmatprep.subr.bf16.mxu0 %v2192_v1 }
  0x4f   : > { %1097 = vmatpush1.bf16.msra.mxu0 %v1969_v38  ;;  %1838 = vmatpush1.bf16.msra.mxu1 %v1969_v38 }
  0x50   : > { %1098 = vmatprep.subr.bf16.mxu0 %v2192_v1  ;;  %1827 = vmatprep.subr.bf16.mxu1 %v2192_v1 }
  0x52   : > { %561 = vmatmul.mubr.bf16.gmra.mrb[8].mxu0 %v1967_v39  ;;  %826 = vmatmul.mubr.bf16.gmra.mrb[8].mxu1 %v1968_v40 }
  0x53   : > { %1703 = vmatprep.mubr.msk.bf16.mxu0 %vm487_vm0, %v1970_v41  ;;  %1739 = vmatprep.mubr.msk.bf16.mxu1 %vm487_vm0, %v1972_v42 }
  0x54   : > { %1839 = vmatpush1.bf16.msra.mxu1 %v1974_v43  ;;  %1099 = vmatpush1.bf16.msra.mxu0 %v1974_v43 }
  0x55   : > { %1828 = vmatprep.subr.bf16.mxu1 %v2192_v1  ;;  %1100 = vmatprep.subr.bf16.mxu0 %v2192_v1 }
  0x58   : > { %1840 = vmatpush1.bf16.msra.mxu1 %v1977_v44  ;;  %1101 = vmatpush1.bf16.msra.mxu0 %v1977_v44 }
  0x59   : > { %1829 = vmatprep.subr.bf16.mxu1 %v2192_v1  ;;  %1102 = vmatprep.subr.bf16.mxu0 %v2192_v1 }
  0x5a   : > { %569 = vmatmul.mubr.bf16.gmra.mrb[12].mxu0 %v1975_v45  ;;  %834 = vmatmul.mubr.bf16.gmra.mrb[12].mxu1 %v1976_v46 }
  0x5b   : > { %1704 = vmatprep.mubr.msk.bf16.mxu0 %vm487_vm0, %v1978_v47  ;;  %1740 = vmatprep.mubr.msk.bf16.mxu1 %vm487_vm0, %v1980_v48 }
  0x5c   : > { %1841 = vmatpush1.bf16.msra.mxu1 %v1984_v49  ;;  %1103 = vmatpush1.bf16.msra.mxu0 %v1984_v49 }
  0x5d   : > { %1830 = vmatprep.subr.bf16.mxu1 %v2192_v1  ;;  %1104 = vmatprep.subr.bf16.mxu0 %v2192_v1 }
  0x60   : > { %1842 = vmatpush1.bf16.msra.mxu1 %v1989_v50  ;;  %1105 = vmatpush1.bf16.msra.mxu0 %v1989_v50 }
  0x61   : > { %1831 = vmatprep.subr.bf16.mxu1 %v2192_v1  ;;  %1106 = vmatprep.subr.bf16.mxu0 %v2192_v1 }
  0x62   : > { %577 = vmatmul.mubr.bf16.gmra.mrb[16].mxu0 %v1982_v51  ;;  %842 = vmatmul.mubr.bf16.gmra.mrb[16].mxu1 %v1983_v52 }
  0x63   : > { %1705 = vmatprep.mubr.msk.bf16.mxu0 %vm487_vm0, %v1985_v53  ;;  %1741 = vmatprep.mubr.msk.bf16.mxu1 %vm487_vm0, %v1987_v54 }
  0x64   : > { %1843 = vmatpush1.bf16.msra.mxu1 %v1992_v55  ;;  %1107 = vmatpush1.bf16.msra.mxu0 %v1992_v55 }
  0x65   : > { %1832 = vmatprep.subr.bf16.mxu1 %v2192_v1  ;;  %1108 = vmatprep.subr.bf16.mxu0 %v2192_v1 }
  0x68   : > { %1844 = vmatpush1.bf16.msra.mxu1 %v1999_v56  ;;  %1109 = vmatpush1.bf16.msra.mxu0 %v1999_v56 }
  0x69   : > { %1833 = vmatprep.subr.bf16.mxu1 %v2192_v1  ;;  %1110 = vmatprep.subr.bf16.mxu0 %v2192_v1 }
  0x6a   : > { %585 = vmatmul.mubr.bf16.gmra.mrb[20].mxu0 %v1990_v57  ;;  %850 = vmatmul.mubr.bf16.gmra.mrb[20].mxu1 %v1991_v58 }
  0x6b   : > { %1706 = vmatprep.mubr.msk.bf16.mxu0 %vm487_vm0, %v1993_v59  ;;  %1742 = vmatprep.mubr.msk.bf16.mxu1 %vm487_vm0, %v1995_v60 }
  0x6c   : > { %1845 = vmatpush1.bf16.msra.mxu1 %v2004_v61  ;;  %1111 = vmatpush1.bf16.msra.mxu0 %v2004_v61 }
  0x6d   : > { %1834 = vmatprep.subr.bf16.mxu1 %v2192_v1  ;;  %1112 = vmatprep.subr.bf16.mxu0 %v2192_v1  ;;  %v2010_v1 = vld [vmem:[%s2440_s27 + $0x4] ss:$8 sps:$4 sm:$0xff]   ;;  %s2193_s27 = smov 64  }
  0x70   : > { %1846 = vmatpush1.bf16.msra.mxu1 %v2007_v62  ;;  %1113 = vmatpush1.bf16.msra.mxu0 %v2007_v62 }
  0x72   : > { %593 = vmatmul.mubr.bf16.gmra.mrb[24].mxu0 %v1997_v63  ;;  %858 = vmatmul.mubr.bf16.gmra.mrb[24].mxu1 %v1998_v0 }
  0x73   : > { %1707 = vmatprep.mubr.msk.bf16.mxu0 %vm487_vm0, %v2000_v2  ;;  %1743 = vmatprep.mubr.msk.bf16.mxu1 %vm487_vm0, %v2002_v3 }
  0x7a   : > { %601 = vmatmul.mubr.bf16.gmra.mrb[28].mxu0 %v2005_v4  ;;  %866 = vmatmul.mubr.bf16.gmra.mrb[28].mxu1 %v2006_v5 }
  0x7b   : > { %1799 = vmatprep.mubr.msk.bf16.mxu0 %vm487_vm0, %v2010_v1  ;;  %1803 = vmatprep.mubr.msk.bf16.mxu1 %vm487_vm0, %v2013_v6 }
  0x82   : > { %1123 = vmatmul.mubr.bf16.vlgmr.msra.gmra.mrb[32].mxu0 %v2008_v7  ;;  %1155 = vmatmul.mubr.bf16.vlgmr.msra.gmra.mrb[32].mxu1 %v2011_v8 }
  0x83   : > { %1800 = vmatprep.mubr.msk.bf16.mxu0 %vm487_vm0, %v2014_v9  ;;  %1804 = vmatprep.mubr.msk.bf16.mxu1 %vm487_vm0, %v2016_v10 }
  0x8a   : > { %1131 = vmatmul.mubr.bf16.gmra.mrb[36].mxu0 %v2018_v11  ;;  %1163 = vmatmul.mubr.bf16.gmra.mrb[36].mxu1 %v2019_v12 }
  0x8b   : > { %1801 = vmatprep.mubr.msk.bf16.mxu0 %vm487_vm0, %v2020_v13  ;;  %1805 = vmatprep.mubr.msk.bf16.mxu1 %vm487_vm0, %v2022_v14 }
  0x92   : > { %1139 = vmatmul.mubr.bf16.gmra.mrb[40].mxu0 %v2024_v15  ;;  %1171 = vmatmul.mubr.bf16.gmra.mrb[40].mxu1 %v2025_v16 }
  0x93   : > { %1802 = vmatprep.mubr.msk.bf16.mxu0 %vm487_vm0, %v2026_v17  ;;  %1806 = vmatprep.mubr.msk.bf16.mxu1 %vm487_vm0, %v2028_v18 }
  0x9a   : > { %1147 = vmatmul.mubr.bf16.gmra.mrb[44].mxu0 %v2030_v19  ;;  %1179 = vmatmul.mubr.bf16.gmra.mrb[44].mxu1 %v2031_v20 }
 0x115   : > { %v546_v21 = vpop.f32.mrb[0].mxu0  ;;  %v811_v22 = vpop.f32.mrb[0].mxu1 }
 0x116   : > { %v548_v23 = vpop.f32.mrb[1].mxu0  ;;  %v2547_v24 = vadd.f32 %v811_v22, %v546_v21  ;;  %v813_v25 = vpop.f32.mrb[1].mxu1 }
 0x117   : > { %v549_v26 = vpop.f32.mrb[2].mxu0  ;;  %v814_v27 = vpop.f32.mrb[2].mxu1 }
 0x118   : > { %v551_v28 = vpop.f32.mrb[3].mxu0  ;;  %v2549_v29 = vadd.f32 %v814_v27, %v549_v26  ;;  %v816_v30 = vpop.f32.mrb[3].mxu1 }
 0x11d   : > { %v554_v31 = vpop.f32.mrb[4].mxu0  ;;  %v819_v32 = vpop.f32.mrb[4].mxu1 }
 0x11e   : > { %v556_v33 = vpop.f32.mrb[5].mxu0  ;;  %v2551_v34 = vadd.f32 %v819_v32, %v554_v31  ;;  %v821_v35 = vpop.f32.mrb[5].mxu1 }
 0x11f   : > { %v557_v36 = vpop.f32.mrb[6].mxu0  ;;  %v822_v37 = vpop.f32.mrb[6].mxu1 }
 0x120   : > { %v559_v38 = vpop.f32.mrb[7].mxu0  ;;  %v2553_v39 = vadd.f32 %v822_v37, %v557_v36  ;;  %v824_v40 = vpop.f32.mrb[7].mxu1 }
 0x125   : > { %v562_v41 = vpop.f32.mrb[8].mxu0  ;;  %v827_v42 = vpop.f32.mrb[8].mxu1 }
 0x126   : > { %v564_v43 = vpop.f32.mrb[9].mxu0  ;;  %v2555_v44 = vadd.f32 %v827_v42, %v562_v41  ;;  %v829_v45 = vpop.f32.mrb[9].mxu1  ;;  %v2570_v42 = vld [vmem:[%s2856_s2] ss:$0 sm:$0xff] }
 0x127   : > { %v565_v46 = vpop.f32.mrb[10].mxu0  ;;  %v830_v47 = vpop.f32.mrb[10].mxu1 }
 0x128   : > { %v567_v48 = vpop.f32.mrb[11].mxu0  ;;  %v2557_v49 = vadd.f32 %v830_v47, %v565_v46  ;;  %v832_v50 = vpop.f32.mrb[11].mxu1 }
 0x12d   : > { %v570_v51 = vpop.f32.mrb[12].mxu0  ;;  %v835_v52 = vpop.f32.mrb[12].mxu1 }
 0x12e   : > { %v572_v53 = vpop.f32.mrb[13].mxu0  ;;  %v2559_v54 = vadd.f32 %v835_v52, %v570_v51  ;;  %v837_v55 = vpop.f32.mrb[13].mxu1 }
 0x12f   : > { %v573_v56 = vpop.f32.mrb[14].mxu0  ;;  %v838_v57 = vpop.f32.mrb[14].mxu1 }
 0x130   : > { %v575_v58 = vpop.f32.mrb[15].mxu0  ;;  %v2561_v59 = vadd.f32 %v838_v57, %v573_v56  ;;  %v840_v60 = vpop.f32.mrb[15].mxu1 }
 0x135   : > { %v578_v61 = vpop.f32.mrb[16].mxu0  ;;  %v843_v62 = vpop.f32.mrb[16].mxu1 }
 0x136   : > { %v580_v63 = vpop.f32.mrb[17].mxu0  ;;  %v844_v0 = vadd.f32 %v843_v62, %v578_v61  ;;  %v845_v2 = vpop.f32.mrb[17].mxu1 }
 0x137   : > { %v581_v3 = vpop.f32.mrb[18].mxu0  ;;  %v846_v4 = vpop.f32.mrb[18].mxu1 }
 0x138   : > { %v583_v5 = vpop.f32.mrb[19].mxu0  ;;  %v847_v1 = vadd.f32 %v846_v4, %v581_v3  ;;  %v848_v6 = vpop.f32.mrb[19].mxu1 }
 0x13d   : > { %v586_v7 = vpop.f32.mrb[20].mxu0  ;;  %v851_v8 = vpop.f32.mrb[20].mxu1 }
 0x13e   : > { %v588_v9 = vpop.f32.mrb[21].mxu0  ;;  %v852_v10 = vadd.f32 %v851_v8, %v586_v7  ;;  %v853_v11 = vpop.f32.mrb[21].mxu1 }
 0x13f   : > { %v589_v12 = vpop.f32.mrb[22].mxu0  ;;  %v854_v13 = vpop.f32.mrb[22].mxu1 }
 0x140   : > { %v591_v14 = vpop.f32.mrb[23].mxu0  ;;  %v855_v15 = vadd.f32 %v854_v13, %v589_v12  ;;  %v856_v16 = vpop.f32.mrb[23].mxu1 }
 0x145   : > { %v594_v17 = vpop.f32.mrb[24].mxu0  ;;  %v859_v18 = vpop.f32.mrb[24].mxu1 }
 0x146   : > { %v596_v19 = vpop.f32.mrb[25].mxu0  ;;  %v860_v20 = vadd.f32 %v859_v18, %v594_v17  ;;  %v861_v21 = vpop.f32.mrb[25].mxu1 }
 0x147   : > { %v597_v22 = vpop.f32.mrb[26].mxu0  ;;  %v862_v23 = vpop.f32.mrb[26].mxu1 }
 0x148   : > { %v599_v25 = vpop.f32.mrb[27].mxu0  ;;  %v863_v26 = vadd.f32 %v862_v23, %v597_v22  ;;  %v864_v27 = vpop.f32.mrb[27].mxu1 }
 0x14d   : > { %v602_v28 = vpop.f32.mrb[28].mxu0  ;;  %v867_v30 = vpop.f32.mrb[28].mxu1 }
 0x14e   : > { %v604_v31 = vpop.f32.mrb[29].mxu0  ;;  %v2563_v32 = vadd.f32 %v867_v30, %v602_v28  ;;  %v869_v33 = vpop.f32.mrb[29].mxu1 }
 0x14f   : > { %v605_v35 = vpop.f32.mrb[30].mxu0  ;;  %v870_v36 = vpop.f32.mrb[30].mxu1 }
 0x150   : > { %v607_v37 = vpop.f32.mrb[31].mxu0  ;;  %v2565_v38 = vadd.f32 %v870_v36, %v605_v35  ;;  %v872_v40 = vpop.f32.mrb[31].mxu1 }
 0x155   : > { %v1124_v41 = vpop.f32.mrb[32].mxu0  ;;  %v1156_v45 = vpop.f32.mrb[32].mxu1 }
 0x156   : > { %v1187_v43 = vadd.f32 %v1124_v41, %v2547_v24  ;;  %v1126_v46 = vpop.f32.mrb[33].mxu0  ;;  %v1195_v47 = vadd.f32 %v1156_v45, %v844_v0  ;;  %v1158_v48 = vpop.f32.mrb[33].mxu1  ;;  %v1226_v45 = vld [vmem:[%s2703_s13] sm:$0xff] }
 0x157   : > { %v1127_v50 = vpop.f32.mrb[34].mxu0  ;;  %v1159_v53 = vpop.f32.mrb[34].mxu1 }
 0x158   : > { %v2574_v51 = vadd.f32 %v2570_v42, %v1187_v43  ;;  %v1188_v52 = vadd.f32 %v1127_v50, %v2549_v29  ;;  %v1129_v55 = vpop.f32.mrb[35].mxu0  ;;  %v1196_v56 = vadd.f32 %v1159_v53, %v847_v1  ;;  %v1161_v57 = vpop.f32.mrb[35].mxu1  ;;  %v2583_v58 = vadd.f32 %v2570_v42, %v1195_v47  ;;  %v1234_v50 = vld [vmem:[%s2703_s13 + $0x40] sm:$0xff] }
 0x15a   : > { %1258 = vrot.lane.b32.xlu0 %v2574_v51, %s2193_s27  ;;  %v2580_v24 = vadd.f32 %v2570_v42, %v1196_v56  ;;  %v2591_v63 = vadd.f32 %v2570_v42, %v1188_v52  ;;  %2032 = vtanh.f32 %v2574_v51 }
 0x15c   : > { %1276 = vrot.lane.b32.xlu1 %v2580_v24, %s2193_s27 }
 0x15d   : > { %v1132_v60 = vpop.f32.mrb[36].mxu0  ;;  %v1164_v61 = vpop.f32.mrb[36].mxu1 }
 0x15e   : > { %v1189_v29 = vadd.f32 %v1132_v60, %v2551_v34  ;;  %v1134_v62 = vpop.f32.mrb[37].mxu0  ;;  %1274 = vrot.lane.b32.xlu0 %v2583_v58, %s2193_s27  ;;  %v1197_v0 = vadd.f32 %v1164_v61, %v852_v10  ;;  %v1166_v2 = vpop.f32.mrb[37].mxu1  ;;  %v1227_v61 = vld [vmem:[%s2703_s13 + $0x8] sm:$0xff] }
 0x15f   : > { %v1135_v3 = vpop.f32.mrb[38].mxu0  ;;  %v1167_v5 = vpop.f32.mrb[38].mxu1 }
 0x160   : > { %v1190_v4 = vadd.f32 %v1135_v3, %v2553_v39  ;;  %v1137_v1 = vpop.f32.mrb[39].mxu0  ;;  %v1198_v6 = vadd.f32 %v1167_v5, %v855_v15  ;;  %1324 = vrot.lane.b32.xlu1 %v2591_v63, %s2194_s6  ;;  %v1169_v34 = vpop.f32.mrb[39].mxu1  ;;  %v2604_v39 = vadd.f32 %v2570_v42, %v1189_v29  ;;  %v2615_v19 = vadd.f32 %v2570_v42, %v1197_v0  ;;  %v1235_v29 = vld [vmem:[%s2703_s13 + $0x48] sm:$0xff] }
 0x162   : > { %1322 = vrot.lane.b32.xlu0 %v2574_v51, %s2194_s6  ;;  %v2612_v18 = vadd.f32 %v2570_v42, %v1190_v4  ;;  %v2623_v23 = vadd.f32 %v2570_v42, %v1198_v6  ;;  %v1228_v6 = vld [vmem:[%s2703_s13 + $0x10] sm:$0xff] }
 0x164   : > { %1340 = vrot.lane.b32.xlu1 %v2580_v24, %s2194_s6  ;;  %v2033_v1 = vpop.eup %2032 }
 0x165   : > { %v1140_v7 = vpop.f32.mrb[40].mxu0  ;;  %v1172_v9 = vpop.f32.mrb[40].mxu1 }
 0x166   : > { %v1191_v8 = vadd.f32 %v1140_v7, %v2555_v44  ;;  %v1142_v10 = vpop.f32.mrb[41].mxu0  ;;  %1338 = vrot.lane.b32.xlu0 %v2583_v58, %s2194_s6  ;;  %v1199_v11 = vadd.f32 %v1172_v9, %v860_v20  ;;  %v1174_v12 = vpop.f32.mrb[41].mxu1  ;;  %v1229_v9 = vld [vmem:[%s2703_s13 + $0x18] sm:$0xff] }
 0x167   : > { %v1143_v13 = vpop.f32.mrb[42].mxu0  ;;  %v1175_v15 = vpop.f32.mrb[42].mxu1  ;;  %v1236_v12 = vld [vmem:[%s2703_s13 + $0x50] sm:$0xff] }
 0x168   : > { %v1192_v14 = vadd.f32 %v1143_v13, %v2557_v49  ;;  %v1145_v16 = vpop.f32.mrb[43].mxu0  ;;  %v1200_v17 = vadd.f32 %v1175_v15, %v863_v26  ;;  %1262 = vrot.lane.b32.xlu1 %v2604_v39, %s2193_s27  ;;  %v1177_v44 = vpop.f32.mrb[43].mxu1  ;;  %v2647_v35 = vadd.f32 %v2570_v42, %v1199_v11 }
 0x169   : > { %v1237_v44 = vld [vmem:[%s2703_s13 + $0x58] sm:$0xff] }
 0x16a   : > { %1260 = vrot.lane.b32.xlu0 %v2591_v63, %s2193_s27  ;;  %v2654_v36 = vadd.f32 %v2570_v42, %v1200_v17 }
 0x16c   : > { %1264 = vrot.lane.b32.xlu1 %v2612_v18, %s2193_s27 }
 0x16d   : > { %v1148_v49 = vpop.f32.mrb[44].mxu0  ;;  %v1180_v21 = vpop.f32.mrb[44].mxu1 }
 0x16e   : > { %v1193_v20 = vadd.f32 %v1148_v49, %v2559_v54  ;;  %v1150_v22 = vpop.f32.mrb[45].mxu0  ;;  %1278 = vrot.lane.b32.xlu0 %v2615_v19, %s2193_s27  ;;  %v1201_v25 = vadd.f32 %v1180_v21, %v2563_v32  ;;  %v1182_v26 = vpop.f32.mrb[45].mxu1  ;;  %v2637_v32 = vadd.f32 %v2570_v42, %v1191_v8 }
 0x16f   : > { %v1151_v27 = vpop.f32.mrb[46].mxu0  ;;  %v1183_v30 = vpop.f32.mrb[46].mxu1 }
 0x170   : > { %v1194_v28 = vadd.f32 %v1151_v27, %v2561_v59  ;;  %v1153_v31 = vpop.f32.mrb[47].mxu0  ;;  %v1202_v33 = vadd.f32 %v1183_v30, %v2565_v38  ;;  %1280 = vrot.lane.b32.xlu1 %v2623_v23, %s2193_s27  ;;  %v1185_v54 = vpop.f32.mrb[47].mxu1  ;;  %v2644_v59 = vadd.f32 %v2570_v42, %v1192_v14  ;;  %v2665_v37 = vadd.f32 %v2570_v42, %v1193_v20 }
 0x171   : > { %v2675_v40 = vadd.f32 %v2570_v42, %v1201_v25  ;;  %v1230_v54 = vld [vmem:[%s2703_s13 + $0x20] sm:$0xff] }
 0x172   : > { %1326 = vrot.lane.b32.xlu0 %v2604_v39, %s2194_s6  ;;  %v2672_v38 = vadd.f32 %v2570_v42, %v1194_v28  ;;  %v2682_v41 = vadd.f32 %v2570_v42, %v1202_v33 }
 0x174   : > { %1328 = vrot.lane.b32.xlu1 %v2612_v18, %s2194_s6 }
 0x176   : > { %1342 = vrot.lane.b32.xlu0 %v2615_v19, %s2194_s6 }
 0x178   : > { %1344 = vrot.lane.b32.xlu1 %v2623_v23, %s2194_s6 }
 0x17a   : > { %1266 = vrot.lane.b32.xlu0 %v2637_v32, %s2193_s27 }
 0x17c   : > { %1268 = vrot.lane.b32.xlu1 %v2644_v59, %s2193_s27 }
 0x17e   : > { %1282 = vrot.lane.b32.xlu0 %v2647_v35, %s2193_s27 }
 0x180   : > { %1284 = vrot.lane.b32.xlu1 %v2654_v36, %s2193_s27 }
 0x182   : > { %1330 = vrot.lane.b32.xlu0 %v2637_v32, %s2194_s6 }
 0x184   : > { %1332 = vrot.lane.b32.xlu1 %v2644_v59, %s2194_s6 }
 0x186   : > { %1346 = vrot.lane.b32.xlu0 %v2647_v35, %s2194_s6 }
 0x188   : > { %1348 = vrot.lane.b32.xlu1 %v2654_v36, %s2194_s6 }
 0x18a   : > { %1270 = vrot.lane.b32.xlu0 %v2665_v37, %s2193_s27 }
 0x18c   : > { %1272 = vrot.lane.b32.xlu1 %v2672_v38, %s2193_s27 }
 0x18e   : > { %1286 = vrot.lane.b32.xlu0 %v2675_v40, %s2193_s27 }
 0x190   : > { %1288 = vrot.lane.b32.xlu1 %v2682_v41, %s2193_s27 }
 0x192   : > { %1334 = vrot.lane.b32.xlu0 %v2665_v37, %s2194_s6 }
 0x194   : > { %1336 = vrot.lane.b32.xlu1 %v2672_v38, %s2194_s6 }
 0x196   : > { %1350 = vrot.lane.b32.xlu0 %v2675_v40, %s2194_s6 }
 0x198   : > { %1352 = vrot.lane.b32.xlu1 %v2682_v41, %s2194_s6 }
 0x1cc   : > { %v1259_v42 = vpop.permute.xlu0 %1258 }
 0x1cd   : > { %v1306_v47 = vadd.f32 %v1259_v42, %v1226_v45 }
 0x1ce   : > { %v1277_v43 = vpop.permute.xlu1 %1276 }
 0x1cf   : > { %v1315_v2 = vadd.f32 %v1277_v43, %v1235_v29 }
 0x1d0   : > { %v1275_v46 = vpop.permute.xlu0 %1274 }
 0x1d1   : > { %v1314_v55 = vadd.f32 %v1275_v46, %v1234_v50 }
 0x1d2   : > { %v1325_v48 = vpop.permute.xlu1 %1324 }
 0x1d4   : > { %v1323_v52 = vpop.permute.xlu0 %1322 }
 0x1d5   : > { %v1370_v53 = vadd.f32 %v1323_v52, %v1306_v47  ;;  %v1231_v52 = vld [vmem:[%s2703_s13 + $0x28] sm:$0xff] }
 0x1d6   : > { %v1341_v56 = vpop.permute.xlu1 %1340 }
 0x1d7   : > { %2034 = vtanh.f32 %v1370_v53  ;;  %v1379_v4 = vadd.f32 %v1341_v56, %v1315_v2 }
 0x1d8   : > { %v1339_v57 = vpop.permute.xlu0 %1338  ;;  %2036 = vtanh.f32 %v2583_v58 }
 0x1d9   : > { %v1378_v60 = vadd.f32 %v1339_v57, %v1314_v55  ;;  %v1238_v55 = vld [vmem:[%s2703_s13 + $0x60] sm:$0xff] }
 0x1da   : > { %v1263_v62 = vpop.permute.xlu1 %1262 }
 0x1db   : > { %2038 = vtanh.f32 %v1378_v60  ;;  %v1308_v8 = vadd.f32 %v1263_v62, %v1228_v6 }
 0x1dc   : > { %v1261_v0 = vpop.permute.xlu0 %1260  ;;  %2040 = vtanh.f32 %v2591_v63 }
 0x1dd   : > { %v1307_v3 = vadd.f32 %v1261_v0, %v1227_v61 }
 0x1de   : > { %v1265_v51 = vpop.permute.xlu1 %1264 }
 0x1df   : > { %v1371_v5 = vadd.f32 %v1325_v48, %v1307_v3  ;;  %v1309_v63 = vadd.f32 %v1265_v51, %v1229_v9  ;;  %v1239_v3 = vld [vmem:[%s2703_s13 + $0x68] sm:$0xff] }
 0x1e0   : > { %v1279_v34 = vpop.permute.xlu0 %1278 }
 0x1e1   : > { %v2035_v7 = vpop.eup %2034  ;;  %2042 = vtanh.f32 %v1371_v5  ;;  %v1316_v17 = vadd.f32 %v1279_v34, %v1236_v12 }
 0x1e2   : > { %v1418_v58 = vmul.f32 %v2035_v7, %v2033_v1  ;;  %2044 = vtanh.f32 %v1379_v4  ;;  %v1281_v10 = vpop.permute.xlu1 %1280  ;;  %v2037_v11 = vpop.eup %2036 }
 0x1e3   : > { %2046 = vtanh.f32 %v2580_v24  ;;  %v1317_v24 = vadd.f32 %v1281_v10, %v1237_v44  ;;  %v1232_v10 = vld [vmem:[%s2703_s13 + $0x30] sm:$0xff] }
 0x1e4   : > { %v1327_v13 = vpop.permute.xlu0 %1326  ;;  %1450 = vrot.lane.b32.xlu0 %v1418_v58, %s2193_s27  ;;  %2048 = vtanh.f32 %v2604_v39  ;;  %v1240_v44 = vld [vmem:[%s2703_s13 + $0x70] sm:$0xff] }
 0x1e5   : > { %v2039_v14 = vpop.eup %2038  ;;  %v1372_v15 = vadd.f32 %v1327_v13, %v1308_v8 }
 0x1e6   : > { %v1426_v16 = vmul.f32 %v2039_v14, %v2037_v11  ;;  %v1329_v49 = vpop.permute.xlu1 %1328  ;;  %v2041_v25 = vpop.eup %2040 }
 0x1e7   : > { %2050 = vtanh.f32 %v1372_v15  ;;  %v1373_v20 = vadd.f32 %v1329_v49, %v1309_v63  ;;  %v1233_v63 = vld [vmem:[%s2703_s13 + $0x38] sm:$0xff] }
 0x1e8   : > { %2052 = vtanh.f32 %v2615_v19  ;;  %v1343_v21 = vpop.permute.xlu0 %1342  ;;  %1466 = vrot.lane.b32.xlu0 %v1426_v16, %s2193_s27 }
 0x1e9   : > { %2054 = vtanh.f32 %v2612_v18  ;;  %v1380_v22 = vadd.f32 %v1343_v21, %v1316_v17 }
 0x1ea   : > { %2056 = vtanh.f32 %v1373_v20  ;;  %v1345_v26 = vpop.permute.xlu1 %1344 }
 0x1eb   : > { %v2043_v39 = vpop.eup %2042  ;;  %2058 = vtanh.f32 %v1380_v22  ;;  %v1381_v27 = vadd.f32 %v1345_v26, %v1317_v24  ;;  %v1241_v26 = vld [vmem:[%s2703_s13 + $0x78] sm:$0xff]  ;;  %s2102_s13 = scalar_lea.vmem %s2101_s23, 4096 }
 0x1ec   : > { %v1267_v28 = vpop.permute.xlu0 %1266  ;;  %v1419_v30 = vmul.f32 %v2043_v39, %v2041_v25  ;;  %v2045_v31 = vpop.eup %2044  ;;  %2060 = vtanh.f32 %v2623_v23 }
 0x1ed   : > { %2062 = vtanh.f32 %v1381_v27  ;;  %v2047_v18 = vpop.eup %2046  ;;  %v1310_v50 = vadd.f32 %v1267_v28, %v1230_v54 }
 0x1ee   : > { %1452 = vrot.lane.b32.xlu1 %v1419_v30, %s2193_s27  ;;  %v1269_v19 = vpop.permute.xlu1 %1268  ;;  %v2049_v33 = vpop.eup %2048  ;;  %v1427_v43 = vmul.f32 %v2047_v18, %v2045_v31  ;;  %2064 = vtanh.f32 %v2637_v32 }
 0x1ef   : > { %v1311_v61 = vadd.f32 %v1269_v19, %v1231_v52 }
 0x1f0   : > { %v1283_v42 = vpop.permute.xlu0 %1282 }
 0x1f1   : > { %v2051_v45 = vpop.eup %2050  ;;  %v1318_v2 = vadd.f32 %v1283_v42, %v1238_v55 }
 0x1f2   : > { %v2053_v46 = vpop.eup %2052  ;;  %1468 = vrot.lane.b32.xlu1 %v1427_v43, %s2193_s27  ;;  %v1420_v47 = vmul.f32 %v2051_v45, %v2049_v33  ;;  %v1285_v23 = vpop.permute.xlu1 %1284 }
 0x1f3   : > { %v2055_v48 = vpop.eup %2054  ;;  %v1319_v34 = vadd.f32 %v1285_v23, %v1239_v3 }
 0x1f4   : > { %v2057_v53 = vpop.eup %2056  ;;  %v1331_v56 = vpop.permute.xlu0 %1330  ;;  %1454 = vrot.lane.b32.xlu0 %v1420_v47, %s2193_s27 }
 0x1f5   : > { %v2059_v57 = vpop.eup %2058  ;;  %v1374_v60 = vadd.f32 %v1331_v56, %v1310_v50  ;;  %v1421_v29 = vmul.f32 %v2057_v53, %v2055_v48 }
 0x1f6   : > { %v1428_v62 = vmul.f32 %v2059_v57, %v2053_v46  ;;  %v2061_v0 = vpop.eup %2060  ;;  %v1333_v4 = vpop.permute.xlu1 %1332 }
 0x1f7   : > { %2066 = vtanh.f32 %v1374_v60  ;;  %1456 = vrot.lane.b32.xlu1 %v1421_v29, %s2193_s27  ;;  %v2063_v5 = vpop.eup %2062  ;;  %v1375_v51 = vadd.f32 %v1333_v4, %v1311_v61 }
 0x1f8   : > { %2068 = vtanh.f32 %v2647_v35  ;;  %v1347_v1 = vpop.permute.xlu0 %1346  ;;  %1470 = vrot.lane.b32.xlu0 %v1428_v62, %s2193_s27  ;;  %v1429_v6 = vmul.f32 %v2063_v5, %v2061_v0  ;;  %v2065_v9 = vpop.eup %2064 }
 0x1f9   : > { %2070 = vtanh.f32 %v2644_v59  ;;  %v1382_v32 = vadd.f32 %v1347_v1, %v1318_v2 }
 0x1fa   : > { %2072 = vtanh.f32 %v1375_v51  ;;  %v1349_v7 = vpop.permute.xlu1 %1348 }
 0x1fb   : > { %2074 = vtanh.f32 %v1382_v32  ;;  %1472 = vrot.lane.b32.xlu1 %v1429_v6, %s2193_s27  ;;  %v1383_v58 = vadd.f32 %v1349_v7, %v1319_v34 }
 0x1fc   : > { %v1271_v8 = vpop.permute.xlu0 %1270  ;;  %2076 = vtanh.f32 %v2654_v36 }
 0x1fd   : > { %2078 = vtanh.f32 %v1383_v58  ;;  %v1312_v15 = vadd.f32 %v1271_v8, %v1232_v10 }
 0x1fe   : > { %v1273_v35 = vpop.permute.xlu1 %1272  ;;  %2080 = vtanh.f32 %v2665_v37 }
 0x1ff   : > { %v1313_v22 = vadd.f32 %v1273_v35, %v1233_v63 }
 0x200   : > { %v1287_v11 = vpop.permute.xlu0 %1286 }
 0x201   : > { %v2067_v59 = vpop.eup %2066  ;;  %v1320_v39 = vadd.f32 %v1287_v11, %v1240_v44 }
 0x202   : > { %v2069_v12 = vpop.eup %2068  ;;  %v1422_v13 = vmul.f32 %v2067_v59, %v2065_v9  ;;  %v1289_v16 = vpop.permute.xlu1 %1288 }
 0x203   : > { %v2071_v14 = vpop.eup %2070  ;;  %v1321_v19 = vadd.f32 %v1289_v16, %v1241_v26 }
 0x204   : > { %v2073_v17 = vpop.eup %2072  ;;  %v1335_v49 = vpop.permute.xlu0 %1334  ;;  %1458 = vrot.lane.b32.xlu0 %v1422_v13, %s2193_s27 }
 0x205   : > { %v2075_v20 = vpop.eup %2074  ;;  %v1376_v36 = vadd.f32 %v1335_v49, %v1312_v15  ;;  %v1423_v21 = vmul.f32 %v2073_v17, %v2071_v14 }
 0x206   : > { %v1430_v25 = vmul.f32 %v2075_v20, %v2069_v12  ;;  %v2077_v24 = vpop.eup %2076  ;;  %v1337_v27 = vpop.permute.xlu1 %1336 }
 0x207   : > { %2082 = vtanh.f32 %v1376_v36  ;;  %1460 = vrot.lane.b32.xlu1 %v1423_v21, %s2193_s27  ;;  %v2079_v28 = vpop.eup %2078  ;;  %v1377_v30 = vadd.f32 %v1337_v27, %v1313_v22 }
 0x208   : > { %2084 = vtanh.f32 %v2675_v40  ;;  %v1351_v31 = vpop.permute.xlu0 %1350  ;;  %1474 = vrot.lane.b32.xlu0 %v1430_v25, %s2193_s27  ;;  %v1431_v37 = vmul.f32 %v2079_v28, %v2077_v24  ;;  %v2081_v42 = vpop.eup %2080 }
 0x209   : > { %2086 = vtanh.f32 %v2672_v38  ;;  %v1384_v18 = vadd.f32 %v1351_v31, %v1320_v39 }
 0x20a   : > { %2088 = vtanh.f32 %v1377_v30  ;;  %v1353_v33 = vpop.permute.xlu1 %1352 }
 0x20b   : > { %2090 = vtanh.f32 %v1384_v18  ;;  %1476 = vrot.lane.b32.xlu1 %v1431_v37, %s2193_s27  ;;  %v1385_v54 = vadd.f32 %v1353_v33, %v1321_v19 }
 0x20c   : > { %2092 = vtanh.f32 %v2682_v41 }
 0x20d   : > { %2094 = vtanh.f32 %v1385_v54 }
 0x211   : > { %v2083_v40 = vpop.eup %2082 }
 0x212   : > { %v2085_v43 = vpop.eup %2084  ;;  %v1424_v45 = vmul.f32 %v2083_v40, %v2081_v42 }
 0x213   : > { %v2087_v46 = vpop.eup %2086 }
 0x214   : > { %v2089_v38 = vpop.eup %2088  ;;  %1462 = vrot.lane.b32.xlu0 %v1424_v45, %s2193_s27 }
 0x215   : > { %v2091_v47 = vpop.eup %2090  ;;  %v1425_v48 = vmul.f32 %v2089_v38, %v2087_v46 }
 0x216   : > { %v1432_v50 = vmul.f32 %v2091_v47, %v2085_v43  ;;  %v2093_v52 = vpop.eup %2092 }
 0x217   : > { %1464 = vrot.lane.b32.xlu1 %v1425_v48, %s2193_s27  ;;  %v2095_v23 = vpop.eup %2094 }
 0x218   : > { %1478 = vrot.lane.b32.xlu0 %v1432_v50, %s2193_s27  ;;  %v1433_v41 = vmul.f32 %v2095_v23, %v2093_v52 }
 0x21b   : > { %1480 = vrot.lane.b32.xlu1 %v1433_v41, %s2193_s27  ;;  %s1528_s27 = sadd.s32 %s1810_s30, %s2695_s10  ;;  %s2096_s10 = scalar_lea.vmem %s2796_s24, 2048 }
 0x21c   : > { %s1811_s6 = sshll.u32 %s1528_s27, 7  ;;  %p2097_p0 = scmp.ne.s32.totalorder %s2796_s24, %s2096_s10 }
 0x21d   : > { %s2790_s14 = scalar_lea.hbm %s2858_s4, %s1811_s6  ;;  %p2104_p5 = scmp.lt.s32.totalorder %s2102_s13, %s2096_s10 }
 0x21e   : > { %p2098_p1 = pnand %p2097_p0, %p2274_p3 }
 0x21f   : > { %p2105_p6 = por %p2104_p5, %p2103_p4 }
 0x220   : > { %p2099_p2 = pneg %p2098_p1 }
 0x222   : > { %p2106_p7 = pnand %p2105_p6, %p2099_p2 }
 0x256   : > { %v1451_v53 = vpop.permute.xlu0 %1450 }
 0x257   : > { %1499 = vst.msk [vmem:[%s2756_s8] sm:$0xff] %vm1498_vm1, %v1451_v53 }
 0x25a   : > { %v1467_v55 = vpop.permute.xlu0 %1466 }
 0x25b   : > { %1507 = vst.msk [vmem:[%s2756_s8 + $0x40] sm:$0xff] %vm1498_vm1, %v1467_v55 }
 0x260   : > { %v1453_v56 = vpop.permute.xlu1 %1452 }
 0x261   : > { %1500 = vst.msk [vmem:[%s2756_s8 + $0x8] sm:$0xff] %vm1498_vm1, %v1453_v56 }
 0x264   : > { %v1469_v57 = vpop.permute.xlu1 %1468 }
 0x265   : > { %1508 = vst.msk [vmem:[%s2756_s8 + $0x48] sm:$0xff] %vm1498_vm1, %v1469_v57 }
 0x266   : > { %v1455_v60 = vpop.permute.xlu0 %1454 }
 0x267   : > { %1501 = vst.msk [vmem:[%s2756_s8 + $0x10] sm:$0xff] %vm1498_vm1, %v1455_v60 }
 0x269   : > { %v1457_v29 = vpop.permute.xlu1 %1456 }
 0x26a   : > { %1502 = vst.msk [vmem:[%s2756_s8 + $0x18] sm:$0xff] %vm1498_vm1, %v1457_v29  ;;  %v1471_v61 = vpop.permute.xlu0 %1470 }
 0x26b   : > { %1509 = vst.msk [vmem:[%s2756_s8 + $0x50] sm:$0xff] %vm1498_vm1, %v1471_v61 }
 0x26d   : > { %v1473_v62 = vpop.permute.xlu1 %1472 }
 0x26e   : > { %1510 = vst.msk [vmem:[%s2756_s8 + $0x58] sm:$0xff] %vm1498_vm1, %v1473_v62 }
 0x276   : > { %v1459_v0 = vpop.permute.xlu0 %1458 }
 0x277   : > { %1503 = vst.msk [vmem:[%s2756_s8 + $0x20] sm:$0xff] %vm1498_vm1, %v1459_v0 }
 0x279   : > { %v1461_v2 = vpop.permute.xlu1 %1460 }
 0x27a   : > { %1504 = vst.msk [vmem:[%s2756_s8 + $0x28] sm:$0xff] %vm1498_vm1, %v1461_v2  ;;  %v1475_v3 = vpop.permute.xlu0 %1474 }
 0x27b   : > { %1511 = vst.msk [vmem:[%s2756_s8 + $0x60] sm:$0xff] %vm1498_vm1, %v1475_v3 }
 0x27d   : > { %v1477_v4 = vpop.permute.xlu1 %1476 }
 0x27e   : > { %1512 = vst.msk [vmem:[%s2756_s8 + $0x68] sm:$0xff] %vm1498_vm1, %v1477_v4 }
 0x286   : > { %v1463_v5 = vpop.permute.xlu0 %1462 }
 0x287   : > { %1505 = vst.msk [vmem:[%s2756_s8 + $0x30] sm:$0xff] %vm1498_vm1, %v1463_v5 }
 0x289   : > { %v1465_v51 = vpop.permute.xlu1 %1464 }
 0x28a   : > { %1506 = vst.msk [vmem:[%s2756_s8 + $0x38] sm:$0xff] %vm1498_vm1, %v1465_v51  ;;  %v1479_v1 = vpop.permute.xlu0 %1478 }
 0x28b   : > { %1513 = vst.msk [vmem:[%s2756_s8 + $0x70] sm:$0xff] %vm1498_vm1, %v1479_v1 }
 0x28d   : > { %v1481_v32 = vpop.permute.xlu1 %1480 }
 0x28e   : > { %1514 = vst.msk [vmem:[%s2756_s8 + $0x78] sm:$0xff] %vm1498_vm1, %v1481_v32 }
 0x28f   : > { %2109 = shalt.err (!%p2106_p7)
}
 0x290   : > { %s2110_s18 = scalar_lea.hbm %s2790_s14, 2048  ;;  %s2114_s30 = scalar_lea.hbm %s2858_s4, 8192 }
 0x291   : > { %p2111_p9 = scmp.ne.s32.totalorder %s2790_s14, %s2110_s18  ;;  %p2115_p12 = scmp.lt.u32.totalorder %s2790_s14, %s2858_s4 }
 0x292   : > { %p2116_p13 = scmp.lt.u32.totalorder %s2114_s30, %s2110_s18  ;;  %p2118_p1 = scmp.lt.u32.totalorder %s2110_s18, %s2790_s14 }
 0x293   : > { %p2112_p10 = pnand %p2111_p9, %p2274_p3 }
 0x294   : > { %p2117_p0 = por %p2116_p13, %p2115_p12 }
 0x295   : > { %p2113_p11 = pneg %p2112_p10 }
 0x296   : > { %p2119_p2 = por %p2118_p1, %p2117_p0 }
 0x298   : > { %p2120_p4 = pnand %p2119_p2, %p2113_p11 }
 0x29a   : > { %2123 = shalt.err (!%p2120_p4)
}
 0x29b   : > { %s2196_s11 = smov 128   ;;  %s2197_s5 = smov 8  }
 0x29c   : > { %1848 = dma.vmem_to_hbm [thread:$0]  (%p2274_p3), %s2796_s24, 2048, %s2790_s14, %s2802_s19, %s2196_s11, %s2196_s11, %s2197_s5  }
 0x29d PF: > { %p1854_p5 = scmp.ge.s32.totalorder %s2190_s22, 2  ;;  %s1546_s10 = sand.u32 1, %s2162_s15  }
 0x29e   : > { %s1547_s9 = scalar_lea.sflag [#allocation3], %s1546_s10 }
 0x29f   : > { %p1851_p6 = pnand %p1854_p5, %p2283_p8 }
 0x2a1   : > { %2157 = dma.done.wait (!%p1851_p6), %s1547_s9, 2048  }
 0x2a2   : > { %2159 = vsyncadd (!%p1851_p6), %s1547_s9, 4294965248  ;;  %s17_s22 = sadd.s32 1, %s2190_s22   ;;  %s2861_s15 = smov %s2166_s16 }
 0x2a3   : > { %p14_p7 = scmp.ge.s32.totalorder %s17_s22, 6   ;;  %s2862_s16 = smov %s2170_s17 }
 0x2a4   : > { %s2863_s17 = smov %s2292_s7  ;;  %s2864_s18 = smov %s2182_s20 }
 0x2a5   : > { %s2865_s19 = smov %s2186_s21  ;;  %s2866_s20 = smov %s2869_s25 }
 0x2a6   : > { %s2867_s21 = smov %s2873_s26  ;;  %16 = sbr.rel (!%p14_p7) target bundleno = 5 (0x5), region = 79 }
 0x2ad   :  { %1552 = vsyncpa [#allocation3], 1 }
 0x2ae   :  { %1554 = vsyncpa [#allocation3 + $0x1], 1 }

// kernel: stlstm_cell_forward.2
= control target key start
LH: loop header
LB: loop body
LE: loop exit
PB: predicated region body
PF: predicated region fallthrough
CT: control target
= control target key end

     0   :  { %s3871_s27 = smov 0   ;;  %s3873_s28 = smov 0   ;;  %s4827_s0 = inlined_call_operand.vmem [shape: bf16[2,288,204], index: 0, kind: input, shape index: {}]   ;;  %s4828_s1 = inlined_call_operand.vmem [shape: bf16[3,204,128], index: 1, kind: input, shape index: {}]   ;;  %s4829_s2 = inlined_call_operand.vmem [shape: f32[1,128], index: 2, kind: input, shape index: {}]   ;;  %s4830_s3 = inlined_call_operand.vmem [shape: bf16[2,256,4], index: 3, kind: input, shape index: {}]   ;;  %s4831_s4 = inlined_call_operand.vmem [shape: bf16[68,32], index: 4, kind: input, shape index: {}]   ;;  %s4832_s5 = inlined_call_operand.vmem [shape: f32[1,32], index: 5, kind: input, shape index: {}]   ;;  %s4833_s6 = inlined_call_operand.vmem [shape: f32[2,256,32], index: 6, kind: input, shape index: {}]   ;;  %s4834_s7 = inlined_call_operand.vmem [shape: f32[2,256,32], index: 7, kind: input, shape index: {}]   ;;  %s4835_s8 = inlined_call_operand.vmem [shape: f32[2,256,96], index: 8, kind: output, shape index: {}]  }
   0x1   :  { %s3875_s29 = smov 0   ;;  %s3877_s30 = smov 0  }
   0x2   :  { %s3879_s9 = smov 0  }
   0x3 LB: > { %s27_s10 = sadd.s32 1, %s3812_s29  ;;  %s30_s11 = sadd.s32 1, %s3816_s30  ;;  %s3820_s9 = sphi %s3879_s9, %s18_s9   ;;  %s3816_s30 = sphi %s3877_s30, %s4839_s30   ;;  %s3812_s29 = sphi %s3875_s29, %s4838_s29   ;;  %s3808_s28 = sphi %s3873_s28, %s4837_s28   ;;  %s3804_s27 = sphi %s3871_s27, %s4836_s27  }
   0x4   : > { %p28_p0 = scmp.ge.s32.totalorder %s27_s10, 2  ;;  %p2982_p1 = scmp.ge.s32.totalorder %s3820_s9, 1 }
   0x5   : > { %p327_p2 = scmp.lt.s32.totalorder %s3820_s9, 5 }
   0x6   : > { %s4841_s10 = smov (%p28_p0, %s27_s10), 0  ;;  %s4843_s11 = smov (!%p28_p0, %s30_s11), %s3816_s30 }
   0x7   : > { %p328_p3 = pnand %p2982_p1, %p327_p2  ;;  %p32_p4 = scmp.ge.s32.totalorder %s4843_s11, 2 }
   0x8   : > { %v3435_v0 = vld [vmem:[%s4828_s1 + $0x68] sm:$0xff] (!%p328_p3)   ;;  %v3822_v1 = vmov (!%p328_p3), 0   ;;  %v3436_v2 = vld [vmem:[%s4828_s1] sm:$0xff] (!%p328_p3)   ;;  %v3437_v3 = vld [vmem:[%s4828_s1 + $0x70] sm:$0xff] (!%p328_p3)   ;;  %p392_p5 = scmp.lt.s32.totalorder (!%p328_p3), %s3808_s28, 1  ;;  %s3939_s13 = sshll.u32 (!%p328_p3), %s3804_s27, 7 }
   0x9   : > { %s4845_s11 = smov (%p32_p4, %s4843_s11), 0  ;;  %331 = sbr.rel (%p328_p3) target bundleno = 1165 (0x48d), region = 52 }
   0xa   : > { %715 = vmatprep.subr.bf16.mxu0 (!%p328_p3), %v3822_v1  ;;  %988 = vmatprep.subr.bf16.mxu1 (!%p328_p3), %v3822_v1  ;;  %v3438_v4 = vld [vmem:[%s4828_s1 + $0x8] sm:$0xff] (!%p328_p3)   ;;  %v3439_v5 = vld [vmem:[%s4828_s1 + $0x78] sm:$0xff] (!%p328_p3)   ;;  %v3440_v6 = vld [vmem:[%s4828_s1 + $0x10] sm:$0xff] (!%p328_p3)   ;;  %s3259_s18 = sadd.s32 (!%p328_p3), 16, %s3939_s13  ;;  %vm686_vm0 = vcmask (!%p328_p3), 621568   ;;  %vm711_vm1 = vcmask (!%p328_p3), 1045504  }
   0xb   : > { %716 = vmatpush1.bf16.msra.mxu0 (!%p328_p3), %v3435_v0  ;;  %989 = vmatpush1.bf16.msra.mxu1 (!%p328_p3), %v3436_v2  ;;  %v3441_v7 = vld [vmem:[%s4828_s1 + $0x80] sm:$0xff] (!%p328_p3)   ;;  %v3442_v8 = vld [vmem:[%s4828_s1 + $0x18] sm:$0xff] (!%p328_p3)   ;;  %v3443_v9 = vld [vmem:[%s4828_s1 + $0x88] sm:$0xff] (!%p328_p3)   ;;  %s489_s22 = sshra.s32 (!%p328_p3), %s3259_s18, 3  ;;  %s3262_s23 = sadd.s32 (!%p328_p3), 32, %s3939_s13  ;;  %vm1979_vm2 = vcmask (!%p328_p3), 261120  }
   0xc   : > { %717 = vmatprep.subr.bf16.mxu0 (!%p328_p3), %v3822_v1  ;;  %990 = vmatprep.subr.bf16.mxu1 (!%p328_p3), %v3822_v1  ;;  %v3444_v10 = vld [vmem:[%s4828_s1 + $0x20] sm:$0xff] (!%p328_p3)   ;;  %v3445_v11 = vld [vmem:[%s4828_s1 + $0x90] sm:$0xff] (!%p328_p3)   ;;  %v3446_v12 = vld [vmem:[%s4828_s1 + $0x28] sm:$0xff] (!%p328_p3)   ;;  %s3260_s14 = sshll.u32 (!%p328_p3), %s489_s22, 3  ;;  %s2984_s26 = sshll.u32 (!%p328_p3), %s3804_s27, 4  ;;  %vm2340_vm3 = vcmask (!%p328_p3), 1041408  }
   0xd   : > { %v3447_v13 = vld [vmem:[%s4828_s1 + $0x98] sm:$0xff] (!%p328_p3)   ;;  %v3448_v14 = vld [vmem:[%s4828_s1 + $0x30] sm:$0xff] (!%p328_p3)   ;;  %v3449_v15 = vld [vmem:[%s4828_s1 + $0xa0] sm:$0xff] (!%p328_p3)   ;;  %p400_p6 = scmp.lt.s32.totalorder (!%p328_p3), %s2984_s26, 31  ;;  %s3823_s17 = smov (!%p328_p3), 32   ;;  %vm2315_vm4 = vcmask (!%p328_p3), 31744  }
   0xe   : > { %v3450_v16 = vld [vmem:[%s4828_s1 + $0x38] sm:$0xff] (!%p328_p3)   ;;  %v3451_v19 = vld [vmem:[%s4828_s1 + $0xa8] sm:$0xff] (!%p328_p3)   ;;  %v3452_v20 = vld [vmem:[%s4828_s1 + $0x40] sm:$0xff] (!%p328_p3)   ;;  %vm2736_vm5 = vcmask (!%p328_p3), 523520   ;;  %vm2817_vm6 = vcmask (!%p328_p3), 785920  }
   0xf   : > { %718 = vmatpush1.bf16.msra.mxu0 (!%p328_p3), %v3437_v3  ;;  %991 = vmatpush1.bf16.msra.mxu1 (!%p328_p3), %v3438_v4  ;;  %v3453_v21 = vld [vmem:[%s4828_s1 + $0xb0] sm:$0xff] (!%p328_p3)   ;;  %v3454_v22 = vld [vmem:[%s4828_s1 + $0x48] sm:$0xff] (!%p328_p3)   ;;  %v3455_v23 = vld [vmem:[%s4828_s1 + $0xb8] sm:$0xff] (!%p328_p3)  }
  0x10   : > { %719 = vmatprep.subr.bf16.mxu0 %v3822_v1  ;;  %992 = vmatprep.subr.bf16.mxu1 %v3822_v1  ;;  %s4847_s28 = smov (!%p392_p5, %s3808_s28), 1  ;;  %v3456_v24 = vld [vmem:[%s4828_s1 + $0x50] sm:$0xff]   ;;  %v3457_v25 = vld [vmem:[%s4828_s1 + $0xc0] sm:$0xff]   ;;  %v3458_v26 = vld [vmem:[%s4828_s1 + $0x58] sm:$0xff]   ;;  %s4849_s26 = smov (!%p400_p6, %s2984_s26), 31 }
  0x11   : > { %s3390_s19 = smul.u32 288, %s4847_s28  ;;  %v3459_v27 = vld [vmem:[%s4828_s1 + $0xc8] sm:$0x3f]   ;;  %v3460_v28 = vld [vmem:[%s4828_s1 + $0x60] sm:$0x3f]   ;;  %v3467_v33 = vld [vmem:[%s4828_s1 + $0xd0] sm:$0xff]  }
  0x12   : > { %v713_v29 = vsel %vm711_vm1, %v3459_v27, 0  ;;  %v986_v30 = vsel %vm711_vm1, %v3460_v28, 0  ;;  %v3468_v36 = vld [vmem:[%s4828_s1 + $0xd8] sm:$0xff]   ;;  %v3475_v41 = vld [vmem:[%s4828_s1 + $0xe0] sm:$0xff]   ;;  %v3482_v42 = vld [vmem:[%s4828_s1 + $0xe8] sm:$0xff]  }
  0x13   : > { %720 = vmatpush1.bf16.msra.mxu0 %v3439_v5  ;;  %993 = vmatpush1.bf16.msra.mxu1 %v3440_v6  ;;  %s3965_s12 = scalar_lea.vmem %s4827_s0, %s3390_s19  ;;  %s2985_s19 = sshll.u32 %s4847_s28, 5  ;;  %v3483_v45 = vld [vmem:[%s4828_s1 + $0xf0] sm:$0xff]   ;;  %v3490_v48 = vld [vmem:[%s4828_s1 + $0xf8] sm:$0xff]   ;;  %v3495_v54 = vld [vmem:[%s4828_s1 + $0x100] sm:$0xff]  }
  0x14   : > { %721 = vmatprep.subr.bf16.mxu0 %v3822_v1  ;;  %994 = vmatprep.subr.bf16.mxu1 %v3822_v1  ;;  %s3976_s20 = scalar_lea.vmem %s3965_s12, %s3260_s14  ;;  %s3983_s22 = scalar_lea.vmem %s3965_s12, %s3939_s13  ;;  %v3498_v55 = vld [vmem:[%s4828_s1 + $0x108] sm:$0xff]   ;;  %v3505_v60 = vld [vmem:[%s4828_s1 + $0x110] sm:$0xff]   ;;  %v3506_v61 = vld [vmem:[%s4828_s1 + $0x118] sm:$0xff]  }
  0x15   : > { %v3463_v17 = vld [vmem:[%s3976_s20 + $0x4] ss:$8 sps:$4 sm:$0xff]   ;;  %v3461_v31 = vld [vmem:[%s3976_s20] ss:$8 sps:$4 sm:$0xff]   ;;  %v3469_v34 = vld [vmem:[%s3976_s20 + $0x14] ss:$8 sps:$4 sm:$0xff]   ;;  %s4067_s24 = sadd.s32 %s2985_s19, %s4849_s26 }
  0x16   : > { %v3466_v18 = vld [vmem:[%s3983_s22 + $0x4] ss:$8 sps:$4 sm:$0xff]   ;;  %3058 = vmatprep.mubr.msk.bf16.mxu0 %vm686_vm0, %v3463_v17  ;;  %v3464_v32 = vld [vmem:[%s3983_s22] ss:$8 sps:$4 sm:$0xff]   ;;  %v3471_v35 = vld [vmem:[%s3983_s22 + $0x14] ss:$8 sps:$4 sm:$0xff]  }
  0x17   : > { %722 = vmatpush1.bf16.msra.mxu0 %v3441_v7  ;;  %995 = vmatpush1.bf16.msra.mxu1 %v3442_v8  ;;  %s1087_s14 = sshra.s32 %s3262_s23, 3  ;;  %v3473_v37 = vld [vmem:[%s3976_s20 + $0x10] ss:$8 sps:$4 sm:$0xff]   ;;  %v3476_v39 = vld [vmem:[%s3976_s20 + $0x24] ss:$8 sps:$4 sm:$0xff]   ;;  %s4075_s28 = sshll.u32 %s4067_s24, 3 }
  0x18   : > { %723 = vmatprep.subr.bf16.mxu0 %v3822_v1  ;;  %996 = vmatprep.subr.bf16.mxu1 %v3822_v1  ;;  %s3263_s16 = sshll.u32 %s1087_s14, 3  ;;  %v3474_v38 = vld [vmem:[%s3983_s22 + $0x10] ss:$8 sps:$4 sm:$0xff]   ;;  %v3478_v40 = vld [vmem:[%s3983_s22 + $0x24] ss:$8 sps:$4 sm:$0xff]   ;;  %s4087_s13 = scalar_lea.vmem %s4833_s6, %s4075_s28 }
  0x19   : > { %3095 = vmatprep.mubr.msk.bf16.mxu1 %vm686_vm0, %v3466_v18  ;;  %s4060_s18 = scalar_lea.vmem %s3965_s12, %s3263_s16  ;;  %v3480_v43 = vld [vmem:[%s3976_s20 + $0x20] ss:$8 sps:$4 sm:$0xff]   ;;  %v3484_v46 = vld [vmem:[%s3976_s20 + $0x34] ss:$8 sps:$4 sm:$0xff]   ;;  %s2986_s27 = sshll.u32 %s4067_s24, 2 }
  0x1a   : > { %v3481_v44 = vld [vmem:[%s3983_s22 + $0x20] ss:$8 sps:$4 sm:$0xff]   ;;  %v3486_v47 = vld [vmem:[%s3983_s22 + $0x34] ss:$8 sps:$4 sm:$0xff]   ;;  %v3488_v49 = vld [vmem:[%s3976_s20 + $0x30] ss:$8 sps:$4 sm:$0xff]   ;;  %s4108_s12 = scalar_lea.vmem %s4830_s3, %s2986_s27  ;;  %s4410_s21 = scalar_lea.vmem %s4834_s7, %s4075_s28 }
  0x1b   : > { %724 = vmatpush1.bf16.msra.mxu0 %v3443_v9  ;;  %997 = vmatpush1.bf16.msra.mxu1 %v3444_v10  ;;  %v1672_v50 = vld [vmem:[%s4087_s13 + $0x8] sm:$0xff]  ;;  %v3489_v51 = vld [vmem:[%s3983_s22 + $0x30] ss:$8 sps:$4 sm:$0xff]   ;;  %v3499_v58 = vld [vmem:[%s3976_s20 + $0x54] ss:$8 sps:$4 sm:$0xff]   ;;  %s4640_s15 = scalar_lea.vmem %s4835_s8, %s4075_s28 }
  0x1c   : > { %725 = vmatprep.subr.bf16.mxu0 %v3822_v1  ;;  %998 = vmatprep.subr.bf16.mxu1 %v3822_v1  ;;  %v3491_v52 = vld [vmem:[%s3976_s20 + $0x44] ss:$8 sps:$4 sm:$0xff]   ;;  %v3496_v56 = vld [vmem:[%s3976_s20 + $0x40] ss:$8 sps:$4 sm:$0xff]   ;;  %v3501_v59 = vld [vmem:[%s3983_s22 + $0x54] ss:$8 sps:$4 sm:$0xff]  }
  0x1d   : > { %1721 = vrot.lane.b32.xlu1 %v1672_v50, %s3823_s17  ;;  %v3493_v53 = vld [vmem:[%s3983_s22 + $0x44] ss:$8 sps:$4 sm:$0xff]   ;;  %v3497_v57 = vld [vmem:[%s3983_s22 + $0x40] ss:$8 sps:$4 sm:$0xff]   ;;  %v3503_v62 = vld [vmem:[%s3976_s20 + $0x50] ss:$8 sps:$4 sm:$0xff]  }
  0x1e   : > { %v3504_v63 = vld [vmem:[%s3983_s22 + $0x50] ss:$8 sps:$4 sm:$0xff]   ;;  %v3507_v0 = vld [vmem:[%s3976_s20 + $0x64] ss:$8 sps:$4 sm:$0xff]   ;;  %v3511_v6 = vld [vmem:[%s3976_s20 + $0x60] ss:$8 sps:$4 sm:$0xff]  }
  0x1f   : > { %726 = vmatpush1.bf16.msra.mxu0 %v3445_v11  ;;  %999 = vmatpush1.bf16.msra.mxu1 %v3446_v12  ;;  %v3509_v2 = vld [vmem:[%s3983_s22 + $0x64] ss:$8 sps:$4 sm:$0xff]   ;;  %v3521_v5 = vld [vmem:[%s4828_s1 + $0x130] sm:$0x3f]   ;;  %v3512_v7 = vld [vmem:[%s3983_s22 + $0x60] ss:$8 sps:$4 sm:$0xff]  }
  0x20   : > { %727 = vmatprep.subr.bf16.mxu0 %v3822_v1  ;;  %1000 = vmatprep.subr.bf16.mxu1 %v3822_v1  ;;  %v3513_v3 = vld [vmem:[%s4828_s1 + $0x120] sm:$0xff]   ;;  %v3520_v4 = vld [vmem:[%s4828_s1 + $0x128] sm:$0xff]   ;;  %v3514_v8 = vld [vmem:[%s3976_s20 + $0x74] ss:$8 sps:$4 sm:$0xff]   ;;  %v1309_v10 = vsel %vm711_vm1, %v3521_v5, 0 }
  0x21   : > { %v3516_v9 = vld [vmem:[%s3983_s22 + $0x74] ss:$8 sps:$4 sm:$0xff]   ;;  %v3518_v11 = vld [vmem:[%s3976_s20 + $0x70] ss:$8 sps:$4 sm:$0xff]   ;;  %v3530_v17 = vld [vmem:[%s4060_s18 + $0x20] ss:$8 sps:$4 sm:$0xff]  }
  0x22   : > { %v3519_v12 = vld [vmem:[%s3983_s22 + $0x70] ss:$8 sps:$4 sm:$0xff]   ;;  %v3531_v18 = vld [vmem:[%s4060_s18 + $0x34] ss:$8 sps:$4 sm:$0xff]   ;;  %s3825_s20 = smov 96  }
  0x23   : > { %728 = vmatpush1.bf16.msra.mxu0 %v3447_v13  ;;  %1001 = vmatpush1.bf16.msra.mxu1 %v3448_v14  ;;  %v3524_v13 = vld [vmem:[%s4060_s18 + $0x4] ss:$8 sps:$4 sm:$0xff]   ;;  %v3525_v14 = vld [vmem:[%s4060_s18 + $0x14] ss:$8 sps:$4 sm:$0xff]   ;;  %v3545_v27 = vld [vmem:[%s4060_s18 + $0x70] ss:$8 sps:$4 sm:$0xff]  }
  0x24   : > { %729 = vmatprep.subr.bf16.mxu0 %v3822_v1  ;;  %1002 = vmatprep.subr.bf16.mxu1 %v3822_v1 }
  0x27   : > { %730 = vmatpush1.bf16.msra.mxu0 %v3449_v15  ;;  %1003 = vmatpush1.bf16.msra.mxu1 %v3450_v16  ;;  %v3527_v15 = vld [vmem:[%s4060_s18 + $0x10] ss:$8 sps:$4 sm:$0xff]   ;;  %v3528_v16 = vld [vmem:[%s4060_s18 + $0x24] ss:$8 sps:$4 sm:$0xff]  }
  0x28   : > { %731 = vmatprep.subr.bf16.mxu0 %v3822_v1  ;;  %1004 = vmatprep.subr.bf16.mxu1 %v3822_v1 }
  0x2b   : > { %732 = vmatpush1.bf16.msra.mxu0 %v3451_v19  ;;  %1005 = vmatpush1.bf16.msra.mxu1 %v3452_v20  ;;  %v3533_v19 = vld [vmem:[%s4060_s18 + $0x30] ss:$8 sps:$4 sm:$0xff]   ;;  %v3534_v20 = vld [vmem:[%s4060_s18 + $0x44] ss:$8 sps:$4 sm:$0xff]  }
  0x2c   : > { %733 = vmatprep.subr.bf16.mxu0 %v3822_v1  ;;  %1006 = vmatprep.subr.bf16.mxu1 %v3822_v1 }
  0x2f   : > { %734 = vmatpush1.bf16.msra.mxu0 %v3453_v21  ;;  %1007 = vmatpush1.bf16.msra.mxu1 %v3454_v22  ;;  %v3536_v21 = vld [vmem:[%s4060_s18 + $0x40] ss:$8 sps:$4 sm:$0xff]   ;;  %v3537_v22 = vld [vmem:[%s4060_s18 + $0x54] ss:$8 sps:$4 sm:$0xff]  }
  0x30   : > { %735 = vmatprep.subr.bf16.mxu0 %v3822_v1  ;;  %1008 = vmatprep.subr.bf16.mxu1 %v3822_v1 }
  0x33   : > { %736 = vmatpush1.bf16.msra.mxu0 %v3455_v23  ;;  %1009 = vmatpush1.bf16.msra.mxu1 %v3456_v24  ;;  %v3539_v23 = vld [vmem:[%s4060_s18 + $0x50] ss:$8 sps:$4 sm:$0xff]   ;;  %v3540_v24 = vld [vmem:[%s4060_s18 + $0x64] ss:$8 sps:$4 sm:$0xff]  }
  0x34   : > { %737 = vmatprep.subr.bf16.mxu0 %v3822_v1  ;;  %1010 = vmatprep.subr.bf16.mxu1 %v3822_v1 }
  0x37   : > { %738 = vmatpush1.bf16.msra.mxu0 %v3457_v25  ;;  %1011 = vmatpush1.bf16.msra.mxu1 %v3458_v26  ;;  %v3542_v25 = vld [vmem:[%s4060_s18 + $0x60] ss:$8 sps:$4 sm:$0xff]   ;;  %v3543_v26 = vld [vmem:[%s4060_s18 + $0x74] ss:$8 sps:$4 sm:$0xff]  }
  0x38   : > { %739 = vmatprep.subr.bf16.mxu0 %v3822_v1  ;;  %1012 = vmatprep.subr.bf16.mxu1 %v3822_v1 }
  0x3b   : > { %740 = vmatpush1.bf16.msra.mxu0 %v713_v29  ;;  %1013 = vmatpush1.bf16.msra.mxu1 %v986_v30 }
  0x3c   : > { %1311 = vmatprep.subr.bf16.mxu0 %v3822_v1 }
  0x3e   : > { %748 = vmatmul.mubr.bf16.vlgmr.msra.gmra.mrb[0].mxu0 %v3461_v31  ;;  %1021 = vmatmul.mubr.bf16.vlgmr.msra.gmra.mrb[0].mxu1 %v3464_v32 }
  0x3f   : > { %1312 = vmatpush1.bf16.msra.mxu0 %v3467_v33  ;;  %3059 = vmatprep.mubr.msk.bf16.mxu0 %vm686_vm0, %v3469_v34 }
  0x40   : > { %1313 = vmatprep.subr.bf16.mxu0 %v3822_v1  ;;  %3096 = vmatprep.mubr.msk.bf16.mxu1 %vm686_vm0, %v3471_v35 }
  0x43   : > { %1314 = vmatpush1.bf16.msra.mxu0 %v3468_v36 }
  0x44   : > { %1315 = vmatprep.subr.bf16.mxu0 %v3822_v1 }
  0x46   : > { %756 = vmatmul.mubr.bf16.gmra.mrb[4].mxu0 %v3473_v37  ;;  %1029 = vmatmul.mubr.bf16.gmra.mrb[4].mxu1 %v3474_v38 }
  0x47   : > { %1316 = vmatpush1.bf16.msra.mxu0 %v3475_v41  ;;  %3060 = vmatprep.mubr.msk.bf16.mxu0 %vm686_vm0, %v3476_v39 }
  0x48   : > { %3097 = vmatprep.mubr.msk.bf16.mxu1 %vm686_vm0, %v3478_v40  ;;  %1317 = vmatprep.subr.bf16.mxu0 %v3822_v1 }
  0x4b   : > { %1318 = vmatpush1.bf16.msra.mxu0 %v3482_v42 }
  0x4c   : > { %1319 = vmatprep.subr.bf16.mxu0 %v3822_v1 }
  0x4e   : > { %764 = vmatmul.mubr.bf16.gmra.mrb[8].mxu0 %v3480_v43  ;;  %1037 = vmatmul.mubr.bf16.gmra.mrb[8].mxu1 %v3481_v44 }
  0x4f   : > { %1320 = vmatpush1.bf16.msra.mxu0 %v3483_v45  ;;  %3061 = vmatprep.mubr.msk.bf16.mxu0 %vm686_vm0, %v3484_v46 }
  0x50   : > { %3098 = vmatprep.mubr.msk.bf16.mxu1 %vm686_vm0, %v3486_v47  ;;  %1321 = vmatprep.subr.bf16.mxu0 %v3822_v1 }
  0x53   : > { %1322 = vmatpush1.bf16.msra.mxu0 %v3490_v48 }
  0x54   : > { %1323 = vmatprep.subr.bf16.mxu0 %v3822_v1 }
  0x56   : > { %772 = vmatmul.mubr.bf16.gmra.mrb[12].mxu0 %v3488_v49  ;;  %1045 = vmatmul.mubr.bf16.gmra.mrb[12].mxu1 %v3489_v51 }
  0x57   : > { %3062 = vmatprep.mubr.msk.bf16.mxu0 %vm686_vm0, %v3491_v52  ;;  %3099 = vmatprep.mubr.msk.bf16.mxu1 %vm686_vm0, %v3493_v53 }
  0x58   : > { %1324 = vmatpush1.bf16.msra.mxu0 %v3495_v54 }
  0x59   : > { %1325 = vmatprep.subr.bf16.mxu0 %v3822_v1 }
  0x5c   : > { %1326 = vmatpush1.bf16.msra.mxu0 %v3498_v55 }
  0x5d   : > { %1327 = vmatprep.subr.bf16.mxu0 %v3822_v1 }
  0x5e   : > { %780 = vmatmul.mubr.bf16.gmra.mrb[16].mxu0 %v3496_v56  ;;  %1053 = vmatmul.mubr.bf16.gmra.mrb[16].mxu1 %v3497_v57 }
  0x5f   : > { %3063 = vmatprep.mubr.msk.bf16.mxu0 %vm686_vm0, %v3499_v58  ;;  %3100 = vmatprep.mubr.msk.bf16.mxu1 %vm686_vm0, %v3501_v59 }
  0x60   : > { %1328 = vmatpush1.bf16.msra.mxu0 %v3505_v60 }
  0x61   : > { %1329 = vmatprep.subr.bf16.mxu0 %v3822_v1 }
  0x64   : > { %1330 = vmatpush1.bf16.msra.mxu0 %v3506_v61 }
  0x65   : > { %1331 = vmatprep.subr.bf16.mxu0 %v3822_v1 }
  0x66   : > { %788 = vmatmul.mubr.bf16.gmra.mrb[20].mxu0 %v3503_v62  ;;  %1061 = vmatmul.mubr.bf16.gmra.mrb[20].mxu1 %v3504_v63 }
  0x67   : > { %3064 = vmatprep.mubr.msk.bf16.mxu0 %vm686_vm0, %v3507_v0  ;;  %3101 = vmatprep.mubr.msk.bf16.mxu1 %vm686_vm0, %v3509_v2 }
  0x68   : > { %1332 = vmatpush1.bf16.msra.mxu0 %v3513_v3 }
  0x69   : > { %1333 = vmatprep.subr.bf16.mxu0 %v3822_v1 }
  0x6c   : > { %1334 = vmatpush1.bf16.msra.mxu0 %v3520_v4 }
  0x6d   : > { %1335 = vmatprep.subr.bf16.mxu0 %v3822_v1  ;;  %v3522_v1 = vld [vmem:[%s4060_s18] ss:$8 sps:$4 sm:$0xff]   ;;  %s3824_s18 = smov 64  }
  0x6e   : > { %796 = vmatmul.mubr.bf16.gmra.mrb[24].mxu0 %v3511_v6  ;;  %1069 = vmatmul.mubr.bf16.gmra.mrb[24].mxu1 %v3512_v7 }
  0x6f   : > { %3065 = vmatprep.mubr.msk.bf16.mxu0 %vm686_vm0, %v3514_v8  ;;  %3102 = vmatprep.mubr.msk.bf16.mxu1 %vm686_vm0, %v3516_v9 }
  0x70   : > { %1336 = vmatpush1.bf16.msra.mxu0 %v1309_v10 }
  0x76   : > { %804 = vmatmul.mubr.bf16.gmra.mrb[28].mxu0 %v3518_v11  ;;  %1077 = vmatmul.mubr.bf16.gmra.mrb[28].mxu1 %v3519_v12 }
  0x77   : > { %3161 = vmatprep.mubr.msk.bf16.mxu0 %vm686_vm0, %v3524_v13 }
  0x7e   : > { %1344 = vmatmul.mubr.bf16.vlgmr.msra.gmra.mrb[32].mxu0 %v3522_v1 }
  0x7f   : > { %3162 = vmatprep.mubr.msk.bf16.mxu0 %vm686_vm0, %v3525_v14 }
  0x86   : > { %1352 = vmatmul.mubr.bf16.gmra.mrb[36].mxu0 %v3527_v15 }
  0x87   : > { %3163 = vmatprep.mubr.msk.bf16.mxu0 %vm686_vm0, %v3528_v16 }
  0x8e   : > { %1360 = vmatmul.mubr.bf16.gmra.mrb[40].mxu0 %v3530_v17 }
  0x8f   : > { %3164 = vmatprep.mubr.msk.bf16.mxu0 %vm686_vm0, %v3531_v18 }
  0x96   : > { %1368 = vmatmul.mubr.bf16.gmra.mrb[44].mxu0 %v3533_v19 }
  0x97   : > { %3165 = vmatprep.mubr.msk.bf16.mxu0 %vm686_vm0, %v3534_v20 }
  0x9e   : > { %1376 = vmatmul.mubr.bf16.gmra.mrb[48].mxu0 %v3536_v21 }
  0x9f   : > { %3166 = vmatprep.mubr.msk.bf16.mxu0 %vm686_vm0, %v3537_v22 }
  0xa6   : > { %1384 = vmatmul.mubr.bf16.gmra.mrb[52].mxu0 %v3539_v23 }
  0xa7   : > { %3167 = vmatprep.mubr.msk.bf16.mxu0 %vm686_vm0, %v3540_v24 }
  0xae   : > { %1392 = vmatmul.mubr.bf16.gmra.mrb[56].mxu0 %v3542_v25 }
  0xaf   : > { %3168 = vmatprep.mubr.msk.bf16.mxu0 %vm686_vm0, %v3543_v26 }
  0xb6   : > { %1400 = vmatmul.mubr.bf16.gmra.mrb[60].mxu0 %v3545_v27 }
 0x111   : > { %v749_v28 = vpop.f32.mrb[0].mxu0  ;;  %v1022_v29 = vpop.f32.mrb[0].mxu1 }
 0x112   : > { %v751_v30 = vpop.f32.mrb[1].mxu0  ;;  %v4182_v31 = vadd.f32 %v1022_v29, %v749_v28  ;;  %v1024_v32 = vpop.f32.mrb[1].mxu1 }
 0x113   : > { %v752_v33 = vpop.f32.mrb[2].mxu0  ;;  %v1025_v34 = vpop.f32.mrb[2].mxu1 }
 0x114   : > { %v754_v35 = vpop.f32.mrb[3].mxu0  ;;  %v4184_v36 = vadd.f32 %v1025_v34, %v752_v33  ;;  %v1027_v37 = vpop.f32.mrb[3].mxu1 }
 0x119   : > { %v757_v38 = vpop.f32.mrb[4].mxu0  ;;  %v1030_v39 = vpop.f32.mrb[4].mxu1 }
 0x11a   : > { %v759_v40 = vpop.f32.mrb[5].mxu0  ;;  %v4186_v41 = vadd.f32 %v1030_v39, %v757_v38  ;;  %v1032_v42 = vpop.f32.mrb[5].mxu1 }
 0x11b   : > { %v760_v43 = vpop.f32.mrb[6].mxu0  ;;  %v1033_v44 = vpop.f32.mrb[6].mxu1 }
 0x11c   : > { %v762_v45 = vpop.f32.mrb[7].mxu0  ;;  %v4188_v46 = vadd.f32 %v1033_v44, %v760_v43  ;;  %v1035_v47 = vpop.f32.mrb[7].mxu1 }
 0x121   : > { %v765_v48 = vpop.f32.mrb[8].mxu0  ;;  %v1038_v49 = vpop.f32.mrb[8].mxu1 }
 0x122   : > { %v767_v50 = vpop.f32.mrb[9].mxu0  ;;  %v4190_v51 = vadd.f32 %v1038_v49, %v765_v48  ;;  %v1040_v52 = vpop.f32.mrb[9].mxu1  ;;  %v4217_v49 = vld [vmem:[%s4829_s2] ss:$0 sm:$0xff] }
 0x123   : > { %v768_v53 = vpop.f32.mrb[10].mxu0  ;;  %v1041_v54 = vpop.f32.mrb[10].mxu1 }
 0x124   : > { %v770_v55 = vpop.f32.mrb[11].mxu0  ;;  %v4192_v56 = vadd.f32 %v1041_v54, %v768_v53  ;;  %v1043_v57 = vpop.f32.mrb[11].mxu1 }
 0x129   : > { %v773_v58 = vpop.f32.mrb[12].mxu0  ;;  %v1046_v59 = vpop.f32.mrb[12].mxu1 }
 0x12a   : > { %v775_v60 = vpop.f32.mrb[13].mxu0  ;;  %v4194_v61 = vadd.f32 %v1046_v59, %v773_v58  ;;  %v1048_v62 = vpop.f32.mrb[13].mxu1 }
 0x12b   : > { %v776_v63 = vpop.f32.mrb[14].mxu0  ;;  %v1049_v0 = vpop.f32.mrb[14].mxu1 }
 0x12c   : > { %v778_v2 = vpop.f32.mrb[15].mxu0  ;;  %v4196_v3 = vadd.f32 %v1049_v0, %v776_v63  ;;  %v1051_v4 = vpop.f32.mrb[15].mxu1 }
 0x131   : > { %v781_v5 = vpop.f32.mrb[16].mxu0  ;;  %v1054_v6 = vpop.f32.mrb[16].mxu1 }
 0x132   : > { %v783_v7 = vpop.f32.mrb[17].mxu0  ;;  %v4198_v8 = vadd.f32 %v1054_v6, %v781_v5  ;;  %v1056_v9 = vpop.f32.mrb[17].mxu1 }
 0x133   : > { %v784_v10 = vpop.f32.mrb[18].mxu0  ;;  %v1057_v11 = vpop.f32.mrb[18].mxu1 }
 0x134   : > { %v786_v12 = vpop.f32.mrb[19].mxu0  ;;  %v4200_v13 = vadd.f32 %v1057_v11, %v784_v10  ;;  %v1059_v1 = vpop.f32.mrb[19].mxu1 }
 0x135   : > { %v1671_v1 = vld [vmem:[%s4087_s13] sm:$0xff] }
 0x139   : > { %v789_v14 = vpop.f32.mrb[20].mxu0  ;;  %v1062_v15 = vpop.f32.mrb[20].mxu1 }
 0x13a   : > { %v791_v16 = vpop.f32.mrb[21].mxu0  ;;  %v4202_v17 = vadd.f32 %v1062_v15, %v789_v14  ;;  %v1064_v18 = vpop.f32.mrb[21].mxu1 }
 0x13b   : > { %v792_v19 = vpop.f32.mrb[22].mxu0  ;;  %v1065_v20 = vpop.f32.mrb[22].mxu1 }
 0x13c   : > { %v794_v21 = vpop.f32.mrb[23].mxu0  ;;  %v4204_v22 = vadd.f32 %v1065_v20, %v792_v19  ;;  %v1067_v23 = vpop.f32.mrb[23].mxu1 }
 0x141   : > { %v797_v24 = vpop.f32.mrb[24].mxu0  ;;  %v1070_v25 = vpop.f32.mrb[24].mxu1 }
 0x142   : > { %v799_v26 = vpop.f32.mrb[25].mxu0  ;;  %v4206_v27 = vadd.f32 %v1070_v25, %v797_v24  ;;  %v1072_v28 = vpop.f32.mrb[25].mxu1 }
 0x143   : > { %v800_v29 = vpop.f32.mrb[26].mxu0  ;;  %v1073_v30 = vpop.f32.mrb[26].mxu1 }
 0x144   : > { %v802_v32 = vpop.f32.mrb[27].mxu0  ;;  %v4208_v33 = vadd.f32 %v1073_v30, %v800_v29  ;;  %v1075_v34 = vpop.f32.mrb[27].mxu1 }
 0x149   : > { %v805_v35 = vpop.f32.mrb[28].mxu0  ;;  %v1078_v37 = vpop.f32.mrb[28].mxu1 }
 0x14a   : > { %v807_v38 = vpop.f32.mrb[29].mxu0  ;;  %v4210_v39 = vadd.f32 %v1078_v37, %v805_v35  ;;  %v1080_v40 = vpop.f32.mrb[29].mxu1 }
 0x14b   : > { %v808_v42 = vpop.f32.mrb[30].mxu0  ;;  %v1081_v43 = vpop.f32.mrb[30].mxu1 }
 0x14c   : > { %v810_v44 = vpop.f32.mrb[31].mxu0  ;;  %v4212_v45 = vadd.f32 %v1081_v43, %v808_v42  ;;  %v1083_v47 = vpop.f32.mrb[31].mxu1 }
 0x151   : > { %v1345_v48 = vpop.f32.mrb[32].mxu0 }
 0x152   : > { %v1408_v50 = vadd.f32 %v1345_v48, %v4182_v31  ;;  %v1347_v52 = vpop.f32.mrb[33].mxu0 }
 0x153   : > { %v1348_v53 = vpop.f32.mrb[34].mxu0 }
 0x154   : > { %v4221_v54 = vadd.f32 %v4217_v49, %v1408_v50  ;;  %v1409_v55 = vadd.f32 %v1348_v53, %v4184_v36  ;;  %v1350_v57 = vpop.f32.mrb[35].mxu0 }
 0x156   : > { %v4225_v58 = vadd.f32 %v4217_v49, %v1409_v55  ;;  %3558 = vtanh.f32 %v4221_v54 }
 0x158   : > { %3560 = vtanh.f32 %v4225_v58 }
 0x159   : > { %v1353_v59 = vpop.f32.mrb[36].mxu0 }
 0x15a   : > { %v1410_v60 = vadd.f32 %v1353_v59, %v4186_v41  ;;  %v1355_v62 = vpop.f32.mrb[37].mxu0 }
 0x15b   : > { %v1356_v31 = vpop.f32.mrb[38].mxu0 }
 0x15c   : > { %v4231_v63 = vadd.f32 %v4217_v49, %v1410_v60  ;;  %v1411_v0 = vadd.f32 %v1356_v31, %v4188_v46  ;;  %v1358_v2 = vpop.f32.mrb[39].mxu0 }
 0x15e   : > { %3562 = vtanh.f32 %v4231_v63  ;;  %v4236_v36 = vadd.f32 %v4217_v49, %v1411_v0 }
 0x160   : > { %v3559_v4 = vpop.eup %3558  ;;  %3564 = vtanh.f32 %v4236_v36 }
 0x161   : > { %v1361_v5 = vpop.f32.mrb[40].mxu0  ;;  %1799 = vrot.lane.b32.xlu0 %v3559_v4, %s3824_s18 }
 0x162   : > { %v1412_v41 = vadd.f32 %v1361_v5, %v4190_v51  ;;  %v1363_v6 = vpop.f32.mrb[41].mxu0  ;;  %v3561_v9 = vpop.eup %3560 }
 0x163   : > { %v1364_v7 = vpop.f32.mrb[42].mxu0 }
 0x164   : > { %v4242_v46 = vadd.f32 %v4217_v49, %v1412_v41  ;;  %v1413_v10 = vadd.f32 %v1364_v7, %v4192_v56  ;;  %v1366_v11 = vpop.f32.mrb[43].mxu0 }
 0x165   : > { %1801 = vrot.lane.b32.xlu0 %v3561_v9, %s3824_s18  ;;  %v1673_v9 = vld [vmem:[%s4087_s13 + $0x10] sm:$0xff]  ;;  %v1675_v11 = vld [vmem:[%s4087_s13 + $0x20] sm:$0xff] }
 0x166   : > { %3566 = vtanh.f32 %v4242_v46  ;;  %v4248_v12 = vadd.f32 %v4217_v49, %v1413_v10 }
 0x168   : > { %v3563_v14 = vpop.eup %3562  ;;  %3568 = vtanh.f32 %v4248_v12 }
 0x169   : > { %v1369_v51 = vpop.f32.mrb[44].mxu0  ;;  %1803 = vrot.lane.b32.xlu1 %v3563_v14, %s3824_s18  ;;  %1719 = vrot.lane.b32.xlu0 %v1671_v1, %s3823_s17  ;;  %v1676_v1 = vld [vmem:[%s4087_s13 + $0x28] sm:$0xff]  ;;  %v1677_v14 = vld [vmem:[%s4087_s13 + $0x30] sm:$0xff] }
 0x16a   : > { %v1414_v15 = vadd.f32 %v1369_v51, %v4194_v61  ;;  %v1371_v56 = vpop.f32.mrb[45].mxu0  ;;  %v3565_v18 = vpop.eup %3564  ;;  %v1678_v51 = vld [vmem:[%s4087_s13 + $0x38] sm:$0xff] }
 0x16b   : > { %v1372_v16 = vpop.f32.mrb[46].mxu0  ;;  %v1680_v56 = vld [vmem:[%s4087_s13 + $0x48] sm:$0xff] }
 0x16c   : > { %v4256_v19 = vadd.f32 %v4217_v49, %v1414_v15  ;;  %v1415_v20 = vadd.f32 %v1372_v16, %v4196_v3  ;;  %v1374_v21 = vpop.f32.mrb[47].mxu0  ;;  %v1679_v15 = vld [vmem:[%s4087_s13 + $0x40] sm:$0xff]  ;;  %v1681_v16 = vld [vmem:[%s4087_s13 + $0x50] sm:$0xff] }
 0x16d   : > { %1805 = vrot.lane.b32.xlu1 %v3565_v18, %s3824_s18  ;;  %v1682_v18 = vld [vmem:[%s4087_s13 + $0x58] sm:$0xff]  ;;  %v1684_v21 = vld [vmem:[%s4087_s13 + $0x68] sm:$0xff] }
 0x16e   : > { %3570 = vtanh.f32 %v4256_v19  ;;  %v4262_v23 = vadd.f32 %v4217_v49, %v1415_v20  ;;  %v1683_v20 = vld [vmem:[%s4087_s13 + $0x60] sm:$0xff] }
 0x170   : > { %v3567_v24 = vpop.eup %3566  ;;  %3572 = vtanh.f32 %v4262_v23 }
 0x171   : > { %v1377_v61 = vpop.f32.mrb[48].mxu0  ;;  %1807 = vrot.lane.b32.xlu0 %v3567_v24, %s3824_s18  ;;  %v1685_v24 = vld [vmem:[%s4087_s13 + $0x70] sm:$0xff] }
 0x172   : > { %v1416_v25 = vadd.f32 %v1377_v61, %v4198_v8  ;;  %v1379_v26 = vpop.f32.mrb[49].mxu0  ;;  %v3569_v28 = vpop.eup %3568  ;;  %v3170_v61 = vmul.f32 -1.442695, %v4221_v54 }
 0x173   : > { %v1380_v29 = vpop.f32.mrb[50].mxu0  ;;  %1809 = vrot.lane.b32.xlu1 %v3569_v28, %s3824_s18  ;;  %v3171_v26 = vmul.f32 -1.442695, %v4225_v58  ;;  %v3172_v28 = vmul.f32 -1.442695, %v4231_v63 }
 0x174   : > { %v4268_v3 = vadd.f32 %v4217_v49, %v1416_v25  ;;  %v1417_v30 = vadd.f32 %v1380_v29, %v4200_v13  ;;  %v1382_v32 = vpop.f32.mrb[51].mxu0  ;;  %v1686_v25 = vld [vmem:[%s4087_s13 + $0x78] sm:$0xff]  ;;  %v3173_v29 = vmul.f32 -1.442695, %v4236_v36 }
 0x175   : > { %v3174_v32 = vmul.f32 -1.442695, %v4242_v46 }
 0x176   : > { %3574 = vtanh.f32 %v4268_v3  ;;  %v4274_v34 = vadd.f32 %v4217_v49, %v1417_v30 }
 0x178   : > { %v3571_v35 = vpop.eup %3570  ;;  %3576 = vtanh.f32 %v4274_v34 }
 0x179   : > { %v1385_v8 = vpop.f32.mrb[52].mxu0  ;;  %1811 = vrot.lane.b32.xlu0 %v3571_v35, %s3824_s18 }
 0x17a   : > { %v1418_v37 = vadd.f32 %v1385_v8, %v4202_v17  ;;  %v1387_v38 = vpop.f32.mrb[53].mxu0  ;;  %v3573_v40 = vpop.eup %3572 }
 0x17b   : > { %v1388_v42 = vpop.f32.mrb[54].mxu0  ;;  %1813 = vrot.lane.b32.xlu1 %v3573_v40, %s3824_s18 }
 0x17c   : > { %v4280_v13 = vadd.f32 %v4217_v49, %v1418_v37  ;;  %v1419_v43 = vadd.f32 %v1388_v42, %v4204_v22  ;;  %v1390_v44 = vpop.f32.mrb[55].mxu0  ;;  %v3175_v37 = vmul.f32 -1.442695, %v4248_v12  ;;  %v3176_v42 = vmul.f32 -1.442695, %v4256_v19 }
 0x17e   : > { %3578 = vtanh.f32 %v4280_v13  ;;  %v4286_v47 = vadd.f32 %v4217_v49, %v1419_v43 }
 0x180   : > { %v3575_v48 = vpop.eup %3574  ;;  %3580 = vtanh.f32 %v4286_v47 }
 0x181   : > { %v1393_v17 = vpop.f32.mrb[56].mxu0  ;;  %1815 = vrot.lane.b32.xlu0 %v3575_v48, %s3824_s18  ;;  %v3177_v48 = vmul.f32 -1.442695, %v4262_v23 }
 0x182   : > { %v1420_v50 = vadd.f32 %v1393_v17, %v4206_v27  ;;  %v1395_v52 = vpop.f32.mrb[57].mxu0  ;;  %v3577_v53 = vpop.eup %3576 }
 0x183   : > { %v1396_v55 = vpop.f32.mrb[58].mxu0  ;;  %1817 = vrot.lane.b32.xlu1 %v3577_v53, %s3824_s18 }
 0x184   : > { %v4292_v22 = vadd.f32 %v4217_v49, %v1420_v50  ;;  %v1421_v57 = vadd.f32 %v1396_v55, %v4208_v33  ;;  %v1398_v59 = vpop.f32.mrb[59].mxu0  ;;  %v3178_v55 = vmul.f32 -1.442695, %v4268_v3 }
 0x186   : > { %3582 = vtanh.f32 %v4292_v22  ;;  %v4298_v60 = vadd.f32 %v4217_v49, %v1421_v57 }
 0x188   : > { %v3579_v62 = vpop.eup %3578  ;;  %3584 = vtanh.f32 %v4298_v60 }
 0x189   : > { %v1401_v27 = vpop.f32.mrb[60].mxu0  ;;  %1819 = vrot.lane.b32.xlu0 %v3579_v62, %s3824_s18 }
 0x18a   : > { %v1422_v31 = vadd.f32 %v1401_v27, %v4210_v39  ;;  %v1403_v0 = vpop.f32.mrb[61].mxu0  ;;  %v3581_v2 = vpop.eup %3580 }
 0x18b   : > { %v1404_v33 = vpop.f32.mrb[62].mxu0  ;;  %1821 = vrot.lane.b32.xlu1 %v3581_v2, %s3824_s18  ;;  %v3179_v0 = vmul.f32 -1.442695, %v4274_v34 }
 0x18c   : > { %v4304_v4 = vadd.f32 %v4217_v49, %v1422_v31  ;;  %v1423_v5 = vadd.f32 %v1404_v33, %v4212_v45  ;;  %v1406_v41 = vpop.f32.mrb[63].mxu0  ;;  %v4355_v31 = vpop.permute.xlu1 %1721 }
 0x18e   : > { %3586 = vtanh.f32 %v4304_v4  ;;  %v4310_v6 = vadd.f32 %v4217_v49, %v1423_v5  ;;  %v1674_v49 = vld [vmem:[%s4087_s13 + $0x18] sm:$0xff] }
 0x190   : > { %v3583_v39 = vpop.eup %3582  ;;  %3588 = vtanh.f32 %v4310_v6 }
 0x191   : > { %1823 = vrot.lane.b32.xlu0 %v3583_v39, %s3824_s18  ;;  %3590 = vpow2.f32 %v3170_v61 }
 0x192   : > { %v3585_v7 = vpop.eup %3584  ;;  %3592 = vpow2.f32 %v3171_v26 }
 0x193   : > { %1825 = vrot.lane.b32.xlu1 %v3585_v7, %s3824_s18  ;;  %3594 = vpow2.f32 %v3172_v28 }
 0x194   : > { %3596 = vpow2.f32 %v3173_v29  ;;  %v3183_v29 = vmul.f32 -1.442695, %v4298_v60 }
 0x195   : > { %3598 = vpow2.f32 %v3174_v32 }
 0x198   : > { %v3587_v45 = vpop.eup %3586 }
 0x199   : > { %1827 = vrot.lane.b32.xlu0 %v3587_v45, %s3824_s18  ;;  %v3180_v45 = vmul.f32 -1.442695, %v4280_v13 }
 0x19a   : > { %v3589_v10 = vpop.eup %3588 }
 0x19b   : > { %1829 = vrot.lane.b32.xlu1 %v3589_v10, %s3824_s18  ;;  %v3591_v30 = vpop.eup %3590 }
 0x19c   : > { %v1495_v35 = vadd.f32 1.0, %v3591_v30  ;;  %v3593_v8 = vpop.eup %3592 }
 0x19d   : > { %1723 = vrot.lane.b32.xlu0 %v1673_v9, %s3823_s17  ;;  %v1496_v38 = vadd.f32 1.0, %v3593_v8  ;;  %v3595_v40 = vpop.eup %3594 }
 0x19e   : > { %3600 = vrcp.f32 %v1495_v35  ;;  %v1497_v43 = vadd.f32 1.0, %v3595_v40  ;;  %v3597_v44 = vpop.eup %3596 }
 0x19f   : > { %1725 = vrot.lane.b32.xlu1 %v1674_v49, %s3823_s17  ;;  %3602 = vpow2.f32 %v3175_v37  ;;  %v1498_v17 = vadd.f32 1.0, %v3597_v44  ;;  %v3599_v50 = vpop.eup %3598 }
 0x1a0   : > { %3604 = vrcp.f32 %v1496_v38  ;;  %v1499_v62 = vadd.f32 1.0, %v3599_v50  ;;  %v3184_v38 = vmul.f32 -1.442695, %v4304_v4 }
 0x1a1   : > { %1727 = vrot.lane.b32.xlu0 %v1675_v11, %s3823_s17  ;;  %3606 = vpow2.f32 %v3176_v42 }
 0x1a2   : > { %3608 = vrcp.f32 %v1497_v43 }
 0x1a3   : > { %1729 = vrot.lane.b32.xlu1 %v1676_v1, %s3823_s17  ;;  %3610 = vpow2.f32 %v3177_v48  ;;  %v3181_v1 = vmul.f32 -1.442695, %v4286_v47 }
 0x1a4   : > { %3612 = vrcp.f32 %v1498_v17  ;;  %v3185_v17 = vmul.f32 -1.442695, %v4310_v6 }
 0x1a5   : > { %1731 = vrot.lane.b32.xlu0 %v1677_v14, %s3823_s17  ;;  %3614 = vpow2.f32 %v3178_v55 }
 0x1a6   : > { %3616 = vrcp.f32 %v1499_v62 }
 0x1a7   : > { %1733 = vrot.lane.b32.xlu1 %v1678_v51, %s3823_s17  ;;  %3618 = vpow2.f32 %v3179_v0 }
 0x1a8   : > { %v3601_v52 = vpop.eup %3600 }
 0x1a9   : > { %1735 = vrot.lane.b32.xlu0 %v1679_v15, %s3823_s17  ;;  %v3603_v59 = vpop.eup %3602 }
 0x1aa   : > { %v3605_v27 = vpop.eup %3604  ;;  %v1500_v5 = vadd.f32 1.0, %v3603_v59 }
 0x1ab   : > { %1737 = vrot.lane.b32.xlu1 %v1680_v56, %s3823_s17  ;;  %v3607_v41 = vpop.eup %3606 }
 0x1ac   : > { %v3609_v39 = vpop.eup %3608  ;;  %3620 = vrcp.f32 %v1500_v5  ;;  %v1501_v49 = vadd.f32 1.0, %v3607_v41 }
 0x1ad   : > { %1739 = vrot.lane.b32.xlu0 %v1681_v16, %s3823_s17  ;;  %v3611_v10 = vpop.eup %3610  ;;  %3622 = vpow2.f32 %v3180_v45 }
 0x1ae   : > { %v3613_v11 = vpop.eup %3612  ;;  %v1502_v56 = vadd.f32 1.0, %v3611_v10  ;;  %3624 = vrcp.f32 %v1501_v49 }
 0x1af   : > { %1741 = vrot.lane.b32.xlu1 %v1682_v18, %s3823_s17  ;;  %v3615_v16 = vpop.eup %3614  ;;  %3626 = vpow2.f32 %v3181_v1 }
 0x1b0   : > { %v3617_v18 = vpop.eup %3616  ;;  %3628 = vrcp.f32 %v1502_v56 }
 0x1b1   : > { %1743 = vrot.lane.b32.xlu0 %v1683_v20, %s3823_s17  ;;  %v3619_v61 = vpop.eup %3618 }
 0x1b2   : > { %v1504_v32 = vadd.f32 1.0, %v3619_v61 }
 0x1b3   : > { %1745 = vrot.lane.b32.xlu1 %v1684_v21, %s3823_s17  ;;  %v3182_v21 = vmul.f32 -1.442695, %v4292_v22 }
 0x1b5   : > { %1747 = vrot.lane.b32.xlu0 %v1685_v24, %s3823_s17  ;;  %3630 = vpow2.f32 %v3182_v21 }
 0x1b6   : > { %v3621_v26 = vpop.eup %3620 }
 0x1b7   : > { %1749 = vrot.lane.b32.xlu1 %v1686_v25, %s3823_s17  ;;  %v1503_v25 = vadd.f32 1.0, %v3615_v16  ;;  %v3623_v35 = vpop.eup %3622 }
 0x1b8   : > { %v3625_v8 = vpop.eup %3624  ;;  %v1505_v43 = vadd.f32 1.0, %v3623_v35 }
 0x1b9   : > { %3632 = vrcp.f32 %v1503_v25  ;;  %v3627_v42 = vpop.eup %3626 }
 0x1ba   : > { %3634 = vpow2.f32 %v3183_v29  ;;  %v3629_v44 = vpop.eup %3628 }
 0x1bb   : > { %3636 = vrcp.f32 %v1504_v32 }
 0x1bc   : > { %3638 = vpow2.f32 %v3184_v38 }
 0x1bd   : > { %3640 = vrcp.f32 %v1505_v43 }
 0x1be   : > { %3642 = vpow2.f32 %v3185_v17  ;;  %v1546_v17 = vadd.f32 1.0, %v4236_v36 }
 0x1d3   : > { %v1800_v53 = vpop.permute.xlu0 %1799 }
 0x1d4   : > { %v1847_v57 = vmul.f32 %v3601_v52, %v1800_v53  ;;  %v1506_v52 = vadd.f32 1.0, %v3627_v42  ;;  %v3631_v53 = vpop.eup %3630 }
 0x1d5   : > { %v3633_v55 = vpop.eup %3632 }
 0x1d6   : > { %1879 = vrot.lane.b32.xlu0 %v1847_v57, %s3823_s17  ;;  %3644 = vrcp.f32 %v1506_v52  ;;  %v3635_v62 = vpop.eup %3634  ;;  %v3547_v52 = vld [vmem:[%s4831_s4 + $0x18] sm:$0xff]  }
 0x1d7   : > { %v1802_v2 = vpop.permute.xlu0 %1801  ;;  %v3637_v0 = vpop.eup %3636  ;;  %v1508_v5 = vadd.f32 1.0, %v3635_v62  ;;  %v1548_v62 = vadd.f32 1.0, %v4248_v12 }
 0x1d8   : > { %v1848_v33 = vmul.f32 %v3605_v27, %v1802_v2  ;;  %v1507_v27 = vadd.f32 1.0, %v3631_v53  ;;  %v3639_v41 = vpop.eup %3638 }
 0x1d9   : > { %v1509_v10 = vadd.f32 1.0, %v3639_v41  ;;  %v4422_v41 = vld [vmem:[%s4410_s21 + $0x50] sm:$0xff] }
 0x1da   : > { %1881 = vrot.lane.b32.xlu1 %v1848_v33, %s3823_s17  ;;  %3646 = vrcp.f32 %v1507_v27 }
 0x1db   : > { %v1804_v7 = vpop.permute.xlu1 %1803  ;;  %v4362_v14 = vpop.permute.xlu0 %1719  ;;  %3648 = vrcp.f32 %v1508_v5  ;;  %v4419_v5 = vld [vmem:[%s4410_s21 + $0x48] sm:$0xff] }
 0x1dc   : > { %v1849_v9 = vmul.f32 %v3609_v39, %v1804_v7  ;;  %v3641_v39 = vpop.eup %3640  ;;  %3650 = vrcp.f32 %v1509_v10 }
 0x1de   : > { %1883 = vrot.lane.b32.xlu0 %v1849_v9, %s3823_s17  ;;  %v3643_v9 = vpop.eup %3642 }
 0x1df   : > { %v1806_v51 = vpop.permute.xlu1 %1805 }
 0x1e0   : > { %v1850_v15 = vmul.f32 %v3613_v11, %v1806_v51  ;;  %v3645_v49 = vpop.eup %3644  ;;  %v1510_v51 = vadd.f32 1.0, %v3643_v9  ;;  %v4427_v9 = vld [vmem:[%s4410_s21 + $0x58] sm:$0xff] }
 0x1e2   : > { %1885 = vrot.lane.b32.xlu1 %v1850_v15, %s3823_s17  ;;  %3652 = vrcp.f32 %v1510_v51 }
 0x1e3   : > { %v1808_v20 = vpop.permute.xlu0 %1807 }
 0x1e4   : > { %v1851_v24 = vmul.f32 %v3617_v18, %v1808_v20  ;;  %v3647_v15 = vpop.eup %3646 }
 0x1e5   : > { %v1810_v28 = vpop.permute.xlu1 %1809  ;;  %v3649_v18 = vpop.eup %3648 }
 0x1e6   : > { %1887 = vrot.lane.b32.xlu0 %v1851_v24, %s3823_s17  ;;  %v1852_v30 = vmul.f32 %v3621_v26, %v1810_v28  ;;  %v3651_v24 = vpop.eup %3650 }
 0x1e8   : > { %1889 = vrot.lane.b32.xlu1 %v1852_v30, %s3823_s17  ;;  %v3546_v30 = vld [vmem:[%s4831_s4 + $0x10] sm:$0xff]  }
 0x1e9   : > { %3353 = vmatprep.subr.bf16.mxu1 %v3546_v30  ;;  %3295 = vmatprep.subr.bf16.mxu0 %v3546_v30 }
 0x1ea   : > { %3355 = vmatpush3.bf16.msra.mxu1 %v3546_v30  ;;  %3296 = vmatpush3.bf16.msra.mxu0 %v3546_v30 }
 0x1eb   : > { %v1812_v37 = vpop.permute.xlu0 %1811  ;;  %3354 = vmatprep.subr.bf16.mxu1 %v3547_v52  ;;  %3297 = vmatprep.subr.bf16.mxu0 %v3547_v52 }
 0x1ec   : > { %v1853_v40 = vmul.f32 %v3625_v8, %v1812_v37  ;;  %v3653_v26 = vpop.eup %3652  ;;  %v1544_v8 = vadd.f32 1.0, %v4225_v58  ;;  %v1543_v37 = vadd.f32 1.0, %v4221_v54 }
 0x1ed   : > { %v1814_v48 = vpop.permute.xlu1 %1813 }
 0x1ee   : > { %1891 = vrot.lane.b32.xlu0 %v1853_v40, %s3823_s17  ;;  %v1854_v50 = vmul.f32 %v3629_v44, %v1814_v48  ;;  %v3187_v40 = vmul.f32 -1.442695, %v1544_v8  ;;  %v3186_v43 = vmul.f32 -1.442695, %v1543_v37  ;;  %v1545_v44 = vadd.f32 1.0, %v4231_v63  ;;  %3356 = vmatpush3.bf16.msra.mxu1 %v3547_v52 }
 0x1ef   : > { %3298 = vmatpush3.bf16.msra.mxu0 %v3547_v52  ;;  %v1552_v52 = vadd.f32 1.0, %v4274_v34 }
 0x1f0   : > { %1893 = vrot.lane.b32.xlu1 %v1854_v50, %s3823_s17  ;;  %3654 = vpow2.f32 %v3187_v40  ;;  %v3188_v53 = vmul.f32 -1.442695, %v1545_v44  ;;  %v1551_v40 = vadd.f32 1.0, %v4268_v3  ;;  %v3548_v44 = vld [vmem:[%s4831_s4] sm:$0xff]  }
 0x1f1   : > { %3656 = vpow2.f32 %v3186_v43  ;;  %3315 = vmatprep.subr.bf16.mxu1 %v3548_v44 }
 0x1f2   : > { %3658 = vpow2.f32 %v3188_v53 }
 0x1f3   : > { %v1816_v57 = vpop.permute.xlu0 %1815 }
 0x1f4   : > { %v1855_v59 = vmul.f32 %v3633_v55, %v1816_v57  ;;  %v3189_v55 = vmul.f32 -1.442695, %v1546_v17  ;;  %v1547_v57 = vadd.f32 1.0, %v4242_v46  ;;  %v3549_v17 = vld [vmem:[%s4831_s4 + $0x8] sm:$0xff]  }
 0x1f5   : > { %v1818_v2 = vpop.permute.xlu1 %1817 }
 0x1f6   : > { %1895 = vrot.lane.b32.xlu0 %v1855_v59, %s3823_s17  ;;  %v1856_v33 = vmul.f32 %v3637_v0, %v1818_v2  ;;  %3660 = vpow2.f32 %v3189_v55  ;;  %v3190_v2 = vmul.f32 -1.442695, %v1547_v57 }
 0x1f8   : > { %1897 = vrot.lane.b32.xlu1 %v1856_v33, %s3823_s17  ;;  %v4416_v33 = vld [vmem:[%s4410_s21 + $0x40] sm:$0xff]  ;;  %3662 = vpow2.f32 %v3190_v2 }
 0x1fa   : > { %v3655_v0 = vpop.eup %3654 }
 0x1fb   : > { %v1820_v7 = vpop.permute.xlu0 %1819  ;;  %v1608_v10 = vadd.f32 1.0, %v3655_v0  ;;  %v3194_v0 = vmul.f32 -1.442695, %v1551_v40 }
 0x1fc   : > { %v1857_v45 = vmul.f32 %v3641_v39, %v1820_v7  ;;  %v3657_v39 = vpop.eup %3656  ;;  %v3191_v7 = vmul.f32 -1.442695, %v1548_v62 }
 0x1fd   : > { %v1822_v11 = vpop.permute.xlu1 %1821 }
 0x1fe   : > { %1899 = vrot.lane.b32.xlu0 %v1857_v45, %s3823_s17  ;;  %v1858_v1 = vmul.f32 %v3645_v49, %v1822_v11  ;;  %v1959_v45 = vpack.c.bf16 %v4419_v5, %v4416_v33  ;;  %v1960_v11 = vpack.c.bf16 %v4427_v9, %v4422_v41  ;;  %3664 = vpow2.f32 %v3191_v7 }
 0x1ff   : > { %3666 = vrcp.f32 %v1608_v10 }
 0x200   : > { %1901 = vrot.lane.b32.xlu1 %v1858_v1, %s3823_s17  ;;  %3307 = vmatprep.mubr.msk.bf16.mxu1 %vm1979_vm2, %v1959_v45  ;;  %v1607_v1 = vadd.f32 1.0, %v3657_v39  ;;  %v3195_v39 = vmul.f32 -1.442695, %v1552_v52 }
 0x201   : > { %3308 = vmatmul.mubr.msk.bf16.vlgmr.msra.gmra.mrb[32].mxu1 %vm1979_vm2, %v1960_v11 }
 0x202   : > { %3668 = vrcp.f32 %v1607_v1  ;;  %3316 = vmatpush3.bf16.msra.mxu1 %v3548_v44 }
 0x203   : > { %v1824_v56 = vpop.permute.xlu0 %1823  ;;  %3317 = vmatprep.subr.bf16.mxu1 %v3549_v17 }
 0x204   : > { %v1859_v16 = vmul.f32 %v3647_v15, %v1824_v56  ;;  %v1549_v15 = vadd.f32 1.0, %v4256_v19  ;;  %v1550_v56 = vadd.f32 1.0, %v4262_v23 }
 0x205   : > { %v1826_v20 = vpop.permute.xlu1 %1825 }
 0x206   : > { %1903 = vrot.lane.b32.xlu0 %v1859_v16, %s3823_s17  ;;  %v1860_v21 = vmul.f32 %v3649_v18, %v1826_v20  ;;  %v3659_v16 = vpop.eup %3658  ;;  %v4442_v20 = vld [vmem:[%s4410_s21 + $0x60] sm:$0xff]  ;;  %3318 = vmatpush3.bf16.msra.mxu1 %v3549_v17 }
 0x207   : > { %v1609_v37 = vadd.f32 1.0, %v3659_v16 }
 0x208   : > { %1905 = vrot.lane.b32.xlu1 %v1860_v21, %s3823_s17  ;;  %v4445_v21 = vld [vmem:[%s4410_s21 + $0x68] sm:$0xff] }
 0x20b   : > { %v1828_v61 = vpop.permute.xlu0 %1827 }
 0x20c   : > { %v1861_v25 = vmul.f32 %v3651_v24, %v1828_v61  ;;  %v4448_v24 = vld [vmem:[%s4410_s21 + $0x70] sm:$0xff]  ;;  %v3661_v61 = vpop.eup %3660 }
 0x20d   : > { %v1830_v28 = vpop.permute.xlu1 %1829  ;;  %v1610_v43 = vadd.f32 1.0, %v3661_v61  ;;  %v3663_v53 = vpop.eup %3662  ;;  %v1554_v61 = vadd.f32 1.0, %v4286_v47 }
 0x20e   : > { %1907 = vrot.lane.b32.xlu0 %v1861_v25, %s3823_s17  ;;  %v1862_v29 = vmul.f32 %v3653_v26, %v1830_v28  ;;  %v3192_v25 = vmul.f32 -1.442695, %v1549_v15  ;;  %v1961_v26 = vpack.c.bf16 %v4445_v21, %v4442_v20  ;;  %v4453_v28 = vld [vmem:[%s4410_s21 + $0x78] sm:$0xff]  ;;  %v3665_v57 = vpop.eup %3664  ;;  %v1611_v45 = vadd.f32 1.0, %v3663_v53 }
 0x20f   : > { %v4384_v32 = vpop.permute.xlu0 %1723  ;;  %v1962_v8 = vpack.c.bf16 %v4453_v28, %v4448_v24  ;;  %v3667_v62 = vpop.eup %3666  ;;  %v1612_v15 = vadd.f32 1.0, %v3665_v57  ;;  %v3197_v40 = vmul.f32 -1.442695, %v1554_v61 }
 0x210   : > { %1909 = vrot.lane.b32.xlu1 %v1862_v29, %s3823_s17  ;;  %v3193_v29 = vmul.f32 -1.442695, %v1550_v56  ;;  %3311 = vmatprep.mubr.msk.bf16.mxu1 %vm1979_vm2, %v1961_v26  ;;  %3670 = vpow2.f32 %v3192_v25  ;;  %v3669_v7 = vpop.eup %3668  ;;  %v1768_v11 = vmul.f32 %v3667_v62, %v4355_v31  ;;  %v1553_v56 = vadd.f32 1.0, %v4280_v13 }
 0x211   : > { %v4386_v35 = vpop.permute.xlu1 %1725  ;;  %3312 = vmatmul.mubr.msk.bf16.gmra.mrb[36].mxu1 %vm1979_vm2, %v1962_v8  ;;  %v1767_v1 = vmul.f32 %v3669_v7, %v4362_v14  ;;  %v1555_v62 = vadd.f32 1.0, %v4292_v22 }
 0x212   : > { %3672 = vpow2.f32 %v3193_v29  ;;  %v3196_v8 = vmul.f32 -1.442695, %v1553_v56 }
 0x213   : > { %v4390_v38 = vpop.permute.xlu0 %1727  ;;  %3674 = vrcp.f32 %v1609_v37 }
 0x214   : > { %3676 = vrcp.f32 %v1610_v43 }
 0x215   : > { %v4392_v42 = vpop.permute.xlu1 %1729  ;;  %3678 = vpow2.f32 %v3194_v0 }
 0x216   : > { %3680 = vpow2.f32 %v3195_v39  ;;  %v1556_v39 = vadd.f32 1.0, %v4298_v60 }
 0x217   : > { %v4395_v48 = vpop.permute.xlu0 %1731  ;;  %3682 = vrcp.f32 %v1611_v45 }
 0x218   : > { %3684 = vrcp.f32 %v1612_v15  ;;  %v3199_v56 = vmul.f32 -1.442695, %v1556_v39 }
 0x219   : > { %v4398_v50 = vpop.permute.xlu1 %1733  ;;  %3686 = vpow2.f32 %v3196_v8 }
 0x21a   : > { %v3671_v29 = vpop.eup %3670  ;;  %3688 = vpow2.f32 %v3197_v40 }
 0x21b   : > { %v4404_v59 = vpop.permute.xlu0 %1735  ;;  %v1613_v44 = vadd.f32 1.0, %v3671_v29 }
 0x21c   : > { %v3673_v14 = vpop.eup %3672 }
 0x21d   : > { %v4413_v27 = vpop.permute.xlu1 %1737  ;;  %v3675_v37 = vpop.eup %3674  ;;  %v1614_v57 = vadd.f32 1.0, %v3673_v14  ;;  %3690 = vrcp.f32 %v1613_v44  ;;  %v1558_v44 = vadd.f32 1.0, %v4310_v6 }
 0x21e   : > { %v3677_v43 = vpop.eup %3676  ;;  %v1769_v52 = vmul.f32 %v3675_v37, %v4384_v32  ;;  %v1557_v37 = vadd.f32 1.0, %v4304_v4 }
 0x21f   : > { %v4429_v49 = vpop.permute.xlu0 %1739  ;;  %v1770_v53 = vmul.f32 %v3677_v43, %v4386_v35  ;;  %3692 = vrcp.f32 %v1614_v57 }
 0x221   : > { %v4434_v51 = vpop.permute.xlu1 %1741 }
 0x223   : > { %v4439_v18 = vpop.permute.xlu0 %1743 }
 0x225   : > { %v4455_v30 = vpop.permute.xlu1 %1745 }
 0x227   : > { %v4469_v55 = vpop.permute.xlu0 %1747 }
 0x229   : > { %v4471_v2 = vpop.permute.xlu1 %1749 }
 0x248   : > { %v1880_v10 = vpop.permute.xlu0 %1879 }
 0x249   : > { %v4477_v25 = vadd.f32 %v1880_v10, %v1767_v1  ;;  %v3679_v10 = vpop.eup %3678  ;;  %v3198_v1 = vmul.f32 -1.442695, %v1555_v62  ;;  %v3201_v62 = vmul.f32 -1.442695, %v1558_v44 }
 0x24b   : > { %3694 = vpow2.f32 %v3198_v1  ;;  %v2274_v1 = vld [vmem:[%s4831_s4 + $0x20] sm:$0x3] }
 0x24c   : > { %v1882_v16 = vpop.permute.xlu1 %1881  ;;  %3696 = vpow2.f32 %v3199_v56  ;;  %3389 = vmatprep.subr.msk.bf16.mxu1 %vm2340_vm3, %v2274_v1 }
 0x24d   : > { %v4479_v26 = vadd.f32 %v1882_v16, %v1768_v11  ;;  %v3681_v11 = vpop.eup %3680 }
 0x24e   : > { %v3683_v35 = vpop.eup %3682  ;;  %v1616_v14 = vadd.f32 1.0, %v3681_v11 }
 0x24f   : > { %v1943_v31 = vpack.c.bf16 %v4479_v26, %v4477_v25  ;;  %v3685_v15 = vpop.eup %3684  ;;  %v1771_v61 = vmul.f32 %v3683_v35, %v4390_v38 }
 0x250   : > { %v1884_v17 = vpop.permute.xlu0 %1883  ;;  %v1772_v29 = vmul.f32 %v3685_v15, %v4392_v42 }
 0x251   : > { %2109 = vrot.lane.b32.xlu0 %v1943_v31, %s3825_s20  ;;  %v4488_v7 = vadd.f32 %v1884_v17, %v1769_v52  ;;  %v1615_v31 = vadd.f32 1.0, %v3679_v10  ;;  %v3687_v17 = vpop.eup %3686 }
 0x252   : > { %v3689_v52 = vpop.eup %3688  ;;  %v1617_v11 = vadd.f32 1.0, %v3687_v17 }
 0x253   : > { %3698 = vrcp.f32 %v1615_v31  ;;  %v3691_v42 = vpop.eup %3690 }
 0x254   : > { %v1886_v0 = vpop.permute.xlu1 %1885  ;;  %3700 = vrcp.f32 %v1616_v14  ;;  %v3693_v57 = vpop.eup %3692  ;;  %v1773_v39 = vmul.f32 %v3691_v42, %v4395_v48 }
 0x255   : > { %v4490_v45 = vadd.f32 %v1886_v0, %v1770_v53  ;;  %v3200_v53 = vmul.f32 -1.442695, %v1557_v37  ;;  %v1774_v10 = vmul.f32 %v3693_v57, %v4398_v50  ;;  %v3695_v48 = vpop.eup %3694 }
 0x256   : > { %v1619_v44 = vadd.f32 1.0, %v3695_v48 }
 0x257   : > { %v1944_v32 = vpack.c.bf16 %v4490_v45, %v4488_v7  ;;  %3702 = vpow2.f32 %v3200_v53 }
 0x258   : > { %v1888_v16 = vpop.permute.xlu0 %1887  ;;  %3704 = vpow2.f32 %v3201_v62 }
 0x259   : > { %2111 = vrot.lane.b32.xlu1 %v1944_v32, %s3825_s20  ;;  %v4498_v40 = vadd.f32 %v1888_v16, %v1771_v61  ;;  %v1618_v32 = vadd.f32 1.0, %v3689_v52  ;;  %v4515_v16 = vsel %vm2340_vm3, %v2274_v1, 0  ;;  %3706 = vrcp.f32 %v1617_v11  ;;  %v3697_v61 = vpop.eup %3696 }
 0x25a   : > { %v1890_v8 = vpop.permute.xlu1 %1889  ;;  %v1620_v17 = vadd.f32 1.0, %v3697_v61 }
 0x25b   : > { %v4500_v43 = vadd.f32 %v1890_v8, %v1772_v29  ;;  %3708 = vrcp.f32 %v1618_v32 }
 0x25c   : > { %3710 = vrcp.f32 %v1619_v44 }
 0x25d   : > { %v1945_v38 = vpack.c.bf16 %v4500_v43, %v4498_v40  ;;  %v3699_v29 = vpop.eup %3698  ;;  %3712 = vrcp.f32 %v1620_v17  ;;  %v4535_v17 = vld [vmem:[%s4410_s21] sm:$0xff] }
 0x25e   : > { %v3701_v31 = vpop.eup %3700  ;;  %v1775_v8 = vmul.f32 %v3699_v29, %v4404_v59 }
 0x25f   : > { %2113 = vrot.lane.b32.xlu0 %v1945_v38, %s3825_s20  ;;  %v1776_v37 = vmul.f32 %v3701_v31, %v4413_v27 }
 0x260   : > { %v1892_v0 = vpop.permute.xlu0 %1891 }
 0x261   : > { %v4511_v15 = vadd.f32 %v1892_v0, %v1773_v39  ;;  %v3703_v53 = vpop.eup %3702 }
 0x262   : > { %v1894_v35 = vpop.permute.xlu1 %1893  ;;  %v3705_v62 = vpop.eup %3704  ;;  %v1621_v11 = vadd.f32 1.0, %v3703_v53  ;;  %v4541_v53 = vld [vmem:[%s4410_s21 + $0x10] sm:$0xff] }
 0x263   : > { %v4513_v56 = vadd.f32 %v1894_v35, %v1774_v10  ;;  %v3707_v0 = vpop.eup %3706  ;;  %v1622_v32 = vadd.f32 1.0, %v3705_v62 }
 0x264   : > { %v1777_v27 = vmul.f32 %v3707_v0, %v4429_v49  ;;  %3714 = vrcp.f32 %v1621_v11 }
 0x265   : > { %v1946_v50 = vpack.c.bf16 %v4513_v56, %v4511_v15  ;;  %v3709_v59 = vpop.eup %3708  ;;  %3716 = vrcp.f32 %v1622_v32 }
 0x266   : > { %v1778_v10 = vmul.f32 %v3709_v59, %v4434_v51  ;;  %v3711_v61 = vpop.eup %3710 }
 0x267   : > { %2115 = vrot.lane.b32.xlu1 %v1946_v50, %s3825_s20  ;;  %v3713_v29 = vpop.eup %3712  ;;  %v1779_v49 = vmul.f32 %v3711_v61, %v4439_v18  ;;  %v4561_v61 = vld [vmem:[%s4410_s21 + $0x28] sm:$0xff] }
 0x268   : > { %v1896_v14 = vpop.permute.xlu0 %1895  ;;  %v1780_v51 = vmul.f32 %v3713_v29, %v4455_v30  ;;  %v4547_v30 = vld [vmem:[%s4410_s21 + $0x18] sm:$0xff]  ;;  %v4564_v29 = vld [vmem:[%s4410_s21 + $0x30] sm:$0xff] }
 0x269   : > { %v4522_v52 = vadd.f32 %v1896_v14, %v1775_v8  ;;  %v1956_v59 = vpack.c.bf16 %v4547_v30, %v4541_v53 }
 0x26a   : > { %v1898_v38 = vpop.permute.xlu1 %1897 }
 0x26b   : > { %v4524_v42 = vadd.f32 %v1898_v38, %v1776_v37  ;;  %v4538_v38 = vld [vmem:[%s4410_s21 + $0x8] sm:$0xff] }
 0x26c   : > { %v1955_v18 = vpack.c.bf16 %v4538_v38, %v4535_v17 }
 0x26d   : > { %v1947_v57 = vpack.c.bf16 %v4524_v42, %v4522_v52 }
 0x26e   : > { %3299 = vmatprep.mubr.msk.bf16.mxu0 %vm1979_vm2, %v1955_v18 }
 0x26f   : > { %2117 = vrot.lane.b32.xlu0 %v1947_v57, %s3825_s20  ;;  %v3715_v57 = vpop.eup %3714  ;;  %3300 = vmatmul.mubr.msk.bf16.vlgmr.msra.gmra.mrb[64].mxu0 %vm1979_vm2, %v1956_v59 }
 0x270   : > { %v1900_v39 = vpop.permute.xlu0 %1899  ;;  %v3717_v62 = vpop.eup %3716 }
 0x271   : > { %v1937_v1 = vadd.f32 %v1900_v39, %v1777_v27  ;;  %v1781_v39 = vmul.f32 %v3715_v57, %v4469_v55  ;;  %v1782_v27 = vmul.f32 %v3717_v62, %v4471_v2  ;;  %v4572_v2 = vld [vmem:[%s4410_s21 + $0x38] sm:$0xff] }
 0x272   : > { %v1902_v35 = vpop.permute.xlu1 %1901 }
 0x273   : > { %v1938_v48 = vadd.f32 %v1902_v35, %v1778_v10 }
 0x275   : > { %v1948_v50 = vpack.c.bf16 %v1938_v48, %v1937_v1 }
 0x277   : > { %2119 = vrot.lane.b32.xlu1 %v1948_v50, %s3825_s20  ;;  %v4558_v50 = vld [vmem:[%s4410_s21 + $0x20] sm:$0xff] }
 0x278   : > { %v1904_v31 = vpop.permute.xlu0 %1903  ;;  %v1957_v55 = vpack.c.bf16 %v4561_v61, %v4558_v50 }
 0x279   : > { %v1939_v8 = vadd.f32 %v1904_v31, %v1779_v49  ;;  %v3556_v31 = vld [vmem:[%s4108_s12 + $0x30] sm:$0xff]  }
 0x27a   : > { %v1906_v14 = vpop.permute.xlu1 %1905  ;;  %3303 = vmatprep.mubr.msk.bf16.mxu0 %vm1979_vm2, %v1957_v55 }
 0x27b   : > { %v1940_v37 = vadd.f32 %v1906_v14, %v1780_v51 }
 0x27d   : > { %v1949_v44 = vpack.c.bf16 %v1940_v37, %v1939_v8 }
 0x27f   : > { %2121 = vrot.lane.b32.xlu0 %v1949_v44, %s3825_s20 }
 0x280   : > { %v1908_v0 = vpop.permute.xlu0 %1907 }
 0x281   : > { %v1941_v11 = vadd.f32 %v1908_v0, %v1781_v39 }
 0x282   : > { %v1910_v10 = vpop.permute.xlu1 %1909 }
 0x283   : > { %v1942_v32 = vadd.f32 %v1910_v10, %v1782_v27  ;;  %2608 = vrot.lane.b32.xlu0 %v4477_v25, %s3825_s20  ;;  %v1958_v25 = vpack.c.bf16 %v4572_v2, %v4564_v29 }
 0x285   : > { %v1950_v35 = vpack.c.bf16 %v1942_v32, %v1941_v11  ;;  %3304 = vmatmul.mubr.msk.bf16.gmra.mrb[68].mxu0 %vm1979_vm2, %v1958_v25 }
 0x287   : > { %2612 = vrot.lane.b32.xlu0 %v4488_v7, %s3825_s20  ;;  %2123 = vrot.lane.b32.xlu1 %v1950_v35, %s3825_s20 }
 0x28b   : > { %2616 = vrot.lane.b32.xlu0 %v4498_v40, %s3825_s20  ;;  %2610 = vrot.lane.b32.xlu1 %v4479_v26, %s3825_s20  ;;  %v3552_v26 = vld [vmem:[%s4108_s12 + $0x10] sm:$0xff]  }
 0x28f   : > { %2620 = vrot.lane.b32.xlu0 %v4511_v15, %s3825_s20  ;;  %2614 = vrot.lane.b32.xlu1 %v4490_v45, %s3825_s20  ;;  %v3553_v15 = vld [vmem:[%s4108_s12 + $0x18] sm:$0xff]  }
 0x293   : > { %2624 = vrot.lane.b32.xlu0 %v4522_v52, %s3825_s20  ;;  %2618 = vrot.lane.b32.xlu1 %v4500_v43, %s3825_s20 }
 0x297   : > { %2628 = vrot.lane.b32.xlu0 %v1937_v1, %s3825_s20  ;;  %2622 = vrot.lane.b32.xlu1 %v4513_v56, %s3825_s20  ;;  %v3554_v56 = vld [vmem:[%s4108_s12 + $0x20] sm:$0xff]  }
 0x29b   : > { %2632 = vrot.lane.b32.xlu0 %v1939_v8, %s3825_s20  ;;  %2626 = vrot.lane.b32.xlu1 %v4524_v42, %s3825_s20  ;;  %v3557_v8 = vld [vmem:[%s4108_s12 + $0x38] sm:$0xff]  }
 0x29f   : > { %2636 = vrot.lane.b32.xlu0 %v1941_v11, %s3825_s20  ;;  %2630 = vrot.lane.b32.xlu1 %v1938_v48, %s3825_s20  ;;  %v3555_v48 = vld [vmem:[%s4108_s12 + $0x28] sm:$0xff]   ;;  %v4694_v11 = vld [vmem:[%s4832_s5] ss:$0 sm:$0xff] }
 0x2a3   : > { %2769 = vrot.lane.b32.xlu0 %v4221_v54, %s3825_s20  ;;  %2634 = vrot.lane.b32.xlu1 %v1940_v37, %s3825_s20 }
 0x2a7   : > { %2773 = vrot.lane.b32.xlu0 %v4231_v63, %s3825_s20  ;;  %2638 = vrot.lane.b32.xlu1 %v1942_v32, %s3825_s20 }
 0x2ab   : > { %2777 = vrot.lane.b32.xlu0 %v4242_v46, %s3825_s20  ;;  %2771 = vrot.lane.b32.xlu1 %v4225_v58, %s3825_s20 }
 0x2af   : > { %2781 = vrot.lane.b32.xlu0 %v4256_v19, %s3825_s20  ;;  %2775 = vrot.lane.b32.xlu1 %v4236_v36, %s3825_s20 }
 0x2b3   : > { %2785 = vrot.lane.b32.xlu0 %v4268_v3, %s3825_s20  ;;  %2779 = vrot.lane.b32.xlu1 %v4248_v12, %s3825_s20  ;;  %v3550_v3 = vld [vmem:[%s4108_s12] sm:$0xff]  }
 0x2b7   : > { %2789 = vrot.lane.b32.xlu0 %v4280_v13, %s3825_s20  ;;  %2783 = vrot.lane.b32.xlu1 %v4262_v23, %s3825_s20 }
 0x2bb   : > { %2793 = vrot.lane.b32.xlu0 %v4292_v22, %s3825_s20  ;;  %2787 = vrot.lane.b32.xlu1 %v4274_v34, %s3825_s20 }
 0x2bf   : > { %2791 = vrot.lane.b32.xlu1 %v4286_v47, %s3825_s20 }
 0x2c3   : > { %v2110_v54 = vpop.permute.xlu0 %2109  ;;  %2795 = vrot.lane.b32.xlu1 %v4298_v60, %s3825_s20  ;;  %v3551_v60 = vld [vmem:[%s4108_s12 + $0x8] sm:$0xff]  }
 0x2c4   : > { %3319 = vmatprep.mubr.msk.bf16.mxu1 %vm1979_vm2, %v2110_v54 }
 0x2cb   : > { %v2112_v58 = vpop.permute.xlu1 %2111 }
 0x2cc   : > { %3320 = vmatmul.mubr.msk.bf16.vlgmr.msra.gmra.mrb[40].mxu1 %vm1979_vm2, %v2112_v58 }
 0x2cd   : > { %3336 = vmatpush3.bf16.msra.mxu1 %v4515_v16 }
 0x2d1   : > { %v2114_v63 = vpop.permute.xlu0 %2113 }
 0x2d2   : > { %3323 = vmatprep.mubr.msk.bf16.mxu1 %vm1979_vm2, %v2114_v63 }
 0x2d9   : > { %v2116_v36 = vpop.permute.xlu1 %2115 }
 0x2da   : > { %3324 = vmatmul.mubr.msk.bf16.gmra.mrb[44].mxu1 %vm1979_vm2, %v2116_v36 }
 0x2e1   : > { %v2118_v46 = vpop.permute.xlu0 %2117 }
 0x2e2   : > { %3327 = vmatprep.mubr.msk.bf16.mxu1 %vm1979_vm2, %v2118_v46 }
 0x2e9   : > { %v2120_v12 = vpop.permute.xlu1 %2119 }
 0x2ea   : > { %3328 = vmatmul.mubr.msk.bf16.gmra.mrb[32].mxu1 %vm1979_vm2, %v2120_v12 }
 0x2f1   : > { %v2122_v19 = vpop.permute.xlu0 %2121 }
 0x2f2   : > { %3331 = vmatprep.mubr.msk.bf16.mxu1 %vm1979_vm2, %v2122_v19 }
 0x2f5   : > { %v2609_v23 = vpop.permute.xlu0 %2608 }
 0x2f6   : > { %2656 = vst.msk [vmem:[%s4640_s15] sm:$0xff] %vm1979_vm2, %v2609_v23 }
 0x2f9   : > { %v2124_v34 = vpop.permute.xlu1 %2123  ;;  %v2613_v13 = vpop.permute.xlu0 %2612 }
 0x2fa   : > { %2658 = vst.msk [vmem:[%s4640_s15 + $0x10] sm:$0xff] %vm1979_vm2, %v2613_v13  ;;  %3332 = vmatmul.mubr.msk.bf16.gmra.mrb[36].mxu1 %vm1979_vm2, %v2124_v34 }
 0x2fb   : > { %3337 = vmatprep.mubr.msk.bf16.mxu1 %vm2315_vm4, %v3550_v3 }
 0x2fd   : > { %v2611_v47 = vpop.permute.xlu1 %2610  ;;  %v2617_v22 = vpop.permute.xlu0 %2616 }
 0x2fe   : > { %2657 = vst.msk [vmem:[%s4640_s15 + $0x8] sm:$0xff] %vm1979_vm2, %v2611_v47  ;;  %2660 = vst.msk [vmem:[%s4640_s15 + $0x20] sm:$0xff] %vm1979_vm2, %v2617_v22 }
 0x301   : > { %v2615_v7 = vpop.permute.xlu1 %2614  ;;  %v2621_v45 = vpop.permute.xlu0 %2620 }
 0x302   : > { %2659 = vst.msk [vmem:[%s4640_s15 + $0x18] sm:$0xff] %vm1979_vm2, %v2615_v7  ;;  %2662 = vst.msk [vmem:[%s4640_s15 + $0x30] sm:$0xff] %vm1979_vm2, %v2621_v45  ;;  %3338 = vmatmul.mubr.msk.bf16.vlgmr.msra.gmra.mrb[40].mxu1 %vm2315_vm4, %v3551_v60 }
 0x303   : > { %3341 = vmatprep.mubr.msk.bf16.mxu1 %vm2315_vm4, %v3552_v26 }
 0x305   : > { %v2619_v40 = vpop.permute.xlu1 %2618  ;;  %v2625_v43 = vpop.permute.xlu0 %2624 }
 0x306   : > { %2661 = vst.msk [vmem:[%s4640_s15 + $0x28] sm:$0xff] %vm1979_vm2, %v2619_v40  ;;  %2664 = vst.msk [vmem:[%s4640_s15 + $0x40] sm:$0xff] %vm1979_vm2, %v2625_v43 }
 0x309   : > { %v2623_v16 = vpop.permute.xlu1 %2622  ;;  %v2629_v52 = vpop.permute.xlu0 %2628 }
 0x30a   : > { %2663 = vst.msk [vmem:[%s4640_s15 + $0x38] sm:$0xff] %vm1979_vm2, %v2623_v16  ;;  %2666 = vst.msk [vmem:[%s4640_s15 + $0x50] sm:$0xff] %vm1979_vm2, %v2629_v52  ;;  %3342 = vmatmul.mubr.msk.bf16.gmra.mrb[44].mxu1 %vm2315_vm4, %v3553_v15 }
 0x30b   : > { %3345 = vmatprep.mubr.msk.bf16.mxu1 %vm2315_vm4, %v3554_v56 }
 0x30d   : > { %v2627_v42 = vpop.permute.xlu1 %2626  ;;  %v2633_v1 = vpop.permute.xlu0 %2632 }
 0x30e   : > { %2665 = vst.msk [vmem:[%s4640_s15 + $0x48] sm:$0xff] %vm1979_vm2, %v2627_v42  ;;  %2668 = vst.msk [vmem:[%s4640_s15 + $0x60] sm:$0xff] %vm1979_vm2, %v2633_v1 }
 0x311   : > { %v2631_v49 = vpop.permute.xlu1 %2630  ;;  %v2637_v51 = vpop.permute.xlu0 %2636 }
 0x312   : > { %2667 = vst.msk [vmem:[%s4640_s15 + $0x58] sm:$0xff] %vm1979_vm2, %v2631_v49  ;;  %2670 = vst.msk [vmem:[%s4640_s15 + $0x70] sm:$0xff] %vm1979_vm2, %v2637_v51  ;;  %3346 = vmatmul.mubr.msk.bf16.gmra.mrb[32].mxu1 %vm2315_vm4, %v3555_v48 }
 0x313   : > { %3349 = vmatprep.mubr.msk.bf16.mxu1 %vm2315_vm4, %v3556_v31 }
 0x315   : > { %v2635_v14 = vpop.permute.xlu1 %2634 }
 0x316   : > { %2669 = vst.msk [vmem:[%s4640_s15 + $0x68] sm:$0xff] %vm1979_vm2, %v2635_v14 }
 0x319   : > { %v2639_v37 = vpop.permute.xlu1 %2638 }
 0x31a   : > { %2671 = vst.msk [vmem:[%s4640_s15 + $0x78] sm:$0xff] %vm1979_vm2, %v2639_v37  ;;  %3350 = vmatmul.mubr.msk.bf16.gmra.mrb[36].mxu1 %vm2315_vm4, %v3557_v8 }
 0x342   : > { %v3301_v44 = vpop.f32.mrb[64].mxu0 }
 0x343   : > { %v2038_v57 = vpop.f32.mrb[65].mxu0 }
 0x344   : > { %v3302_v18 = vpop.f32.mrb[66].mxu0 }
 0x345   : > { %v2041_v62 = vpop.f32.mrb[67].mxu0 }
 0x358   : > { %v3305_v0 = vpop.f32.mrb[68].mxu0 }
 0x359   : > { %v2054_v59 = vpop.f32.mrb[69].mxu0 }
 0x35a   : > { %v3306_v39 = vpop.f32.mrb[70].mxu0 }
 0x35b   : > { %v2057_v27 = vpop.f32.mrb[71].mxu0 }
 0x3d5   : > { %v3339_v10 = vpop.f32.mrb[40].mxu1 }
 0x3d6   : > { %v3357_v32 = vadd.f32 %v3339_v10, %v3301_v44  ;;  %v2378_v35 = vpop.f32.mrb[41].mxu1 }
 0x3d7   : > { %v3358_v55 = vadd.f32 %v2378_v35, %v2038_v57  ;;  %v3340_v25 = vpop.f32.mrb[42].mxu1 }
 0x3d8   : > { %v2466_v54 = vadd.f32 %v3357_v32, %v4694_v11  ;;  %v3359_v58 = vadd.f32 %v3340_v25, %v3302_v18  ;;  %v2381_v63 = vpop.f32.mrb[43].mxu1 }
 0x3d9   : > { %v2464_v36 = vadd.f32 %v3358_v55, %v4694_v11  ;;  %v3360_v46 = vadd.f32 %v2381_v63, %v2041_v62 }
 0x3da   : > { %v3241_v12 = vmul.f32 -1.442695, %v2466_v54  ;;  %v2467_v19 = vadd.f32 %v3359_v58, %v4694_v11 }
 0x3db   : > { %v3239_v23 = vmul.f32 -1.442695, %v2464_v36  ;;  %v2465_v3 = vadd.f32 %v3360_v46, %v4694_v11 }
 0x3dc   : > { %3718 = vpow2.f32 %v3241_v12  ;;  %v3242_v34 = vmul.f32 -1.442695, %v2467_v19 }
 0x3dd   : > { %3720 = vpow2.f32 %v3239_v23  ;;  %v3240_v13 = vmul.f32 -1.442695, %v2465_v3  ;;  %v3343_v47 = vpop.f32.mrb[44].mxu1 }
 0x3de   : > { %3722 = vpow2.f32 %v3242_v34  ;;  %v3361_v22 = vadd.f32 %v3343_v47, %v3305_v0  ;;  %v2394_v60 = vpop.f32.mrb[45].mxu1 }
 0x3df   : > { %3724 = vpow2.f32 %v3240_v13  ;;  %v3362_v26 = vadd.f32 %v2394_v60, %v2054_v59  ;;  %v3344_v7 = vpop.f32.mrb[46].mxu1 }
 0x3e0   : > { %v2470_v45 = vadd.f32 %v3361_v22, %v4694_v11  ;;  %v3363_v40 = vadd.f32 %v3344_v7, %v3306_v39  ;;  %v2397_v43 = vpop.f32.mrb[47].mxu1 }
 0x3e1   : > { %v2468_v15 = vadd.f32 %v3362_v26, %v4694_v11  ;;  %v3364_v56 = vadd.f32 %v2397_v43, %v2057_v27 }
 0x3e2   : > { %v3245_v16 = vmul.f32 -1.442695, %v2470_v45  ;;  %v2471_v52 = vadd.f32 %v3363_v40, %v4694_v11 }
 0x3e3   : > { %v3243_v42 = vmul.f32 -1.442695, %v2468_v15  ;;  %v2469_v1 = vadd.f32 %v3364_v56, %v4694_v11 }
 0x3e4   : > { %3726 = vpow2.f32 %v3245_v16  ;;  %v3246_v48 = vmul.f32 -1.442695, %v2471_v52 }
 0x3e5   : > { %3728 = vpow2.f32 %v3243_v42  ;;  %v3244_v31 = vmul.f32 -1.442695, %v2469_v1  ;;  %v3347_v49 = vpop.f32.mrb[32].mxu1 }
 0x3e6   : > { %v3719_v51 = vpop.eup %3718  ;;  %3730 = vpow2.f32 %v3246_v48  ;;  %v2474_v14 = vadd.f32 %v3347_v49, %v4694_v11  ;;  %v2410_v8 = vpop.f32.mrb[33].mxu1 }
 0x3e7   : > { %v3721_v37 = vpop.eup %3720  ;;  %v2530_v44 = vadd.f32 1.0, %v3719_v51  ;;  %3732 = vpow2.f32 %v3244_v31  ;;  %v2472_v57 = vadd.f32 %v4694_v11, %v2410_v8  ;;  %v3348_v18 = vpop.f32.mrb[34].mxu1 }
 0x3e8   : > { %v3723_v62 = vpop.eup %3722  ;;  %v2528_v0 = vadd.f32 1.0, %v3721_v37  ;;  %v2475_v59 = vadd.f32 %v3348_v18, %v4694_v11  ;;  %v2413_v39 = vpop.f32.mrb[35].mxu1  ;;  %v3249_v32 = vmul.f32 -1.442695, %v2474_v14 }
 0x3e9   : > { %v3725_v27 = vpop.eup %3724  ;;  %3734 = vrcp.f32 %v2530_v44  ;;  %v2531_v10 = vadd.f32 1.0, %v3723_v62  ;;  %v2473_v35 = vadd.f32 %v4694_v11, %v2413_v39  ;;  %v3247_v25 = vmul.f32 -1.442695, %v2472_v57 }
 0x3ea   : > { %3736 = vrcp.f32 %v2528_v0  ;;  %v2529_v55 = vadd.f32 1.0, %v3725_v27  ;;  %v3250_v54 = vmul.f32 -1.442695, %v2475_v59 }
 0x3eb   : > { %3738 = vrcp.f32 %v2531_v10  ;;  %v3248_v58 = vmul.f32 -1.442695, %v2473_v35 }
 0x3ec   : > { %3740 = vrcp.f32 %v2529_v55 }
 0x3ed   : > { %3742 = vpow2.f32 %v3249_v32  ;;  %v3351_v63 = vpop.f32.mrb[36].mxu1 }
 0x3ee   : > { %v3727_v36 = vpop.eup %3726  ;;  %3744 = vpow2.f32 %v3247_v25  ;;  %v2478_v46 = vadd.f32 %v3351_v63, %v4694_v11  ;;  %v2426_v12 = vpop.f32.mrb[37].mxu1 }
 0x3ef   : > { %v3729_v19 = vpop.eup %3728  ;;  %v2534_v23 = vadd.f32 1.0, %v3727_v36  ;;  %3746 = vpow2.f32 %v3250_v54  ;;  %v2476_v3 = vadd.f32 %v4694_v11, %v2426_v12  ;;  %v3352_v34 = vpop.f32.mrb[38].mxu1 }
 0x3f0   : > { %v3731_v13 = vpop.eup %3730  ;;  %v2532_v47 = vadd.f32 1.0, %v3729_v19  ;;  %3748 = vpow2.f32 %v3248_v58  ;;  %v2479_v22 = vadd.f32 %v3352_v34, %v4694_v11  ;;  %v2429_v60 = vpop.f32.mrb[39].mxu1  ;;  %v3253_v45 = vmul.f32 -1.442695, %v2478_v46 }
 0x3f1   : > { %v3733_v26 = vpop.eup %3732  ;;  %3750 = vrcp.f32 %v2534_v23  ;;  %v2535_v7 = vadd.f32 1.0, %v3731_v13  ;;  %v2477_v40 = vadd.f32 %v4694_v11, %v2429_v60  ;;  %v3251_v15 = vmul.f32 -1.442695, %v2476_v3 }
 0x3f2   : > { %3752 = vrcp.f32 %v2532_v47  ;;  %v2533_v43 = vadd.f32 1.0, %v3733_v26  ;;  %v3254_v16 = vmul.f32 -1.442695, %v2479_v22  ;;  %v2772_v22 = vpop.permute.xlu1 %2771 }
 0x3f3   : > { %v3735_v56 = vpop.eup %3734  ;;  %3754 = vrcp.f32 %v2535_v7  ;;  %v3252_v42 = vmul.f32 -1.442695, %v2477_v40 }
 0x3f4   : > { %v3737_v52 = vpop.eup %3736  ;;  %3756 = vrcp.f32 %v2533_v43  ;;  %v2578_v1 = vmul.f32 %v3735_v56, %v4541_v53 }
 0x3f5   : > { %v3739_v48 = vpop.eup %3738  ;;  %3758 = vpow2.f32 %v3253_v45  ;;  %v2576_v8 = vmul.f32 %v3737_v52, %v4535_v17 }
 0x3f6   : > { %v3741_v31 = vpop.eup %3740  ;;  %3760 = vpow2.f32 %v3251_v15  ;;  %2692 = vrot.lane.b32.xlu0 %v2578_v1, %s3823_s17  ;;  %v2579_v49 = vmul.f32 %v3739_v48, %v4547_v30  ;;  %v2776_v60 = vpop.permute.xlu1 %2775 }
 0x3f7   : > { %v3743_v11 = vpop.eup %3742  ;;  %3762 = vpow2.f32 %v3254_v16  ;;  %v2577_v18 = vmul.f32 %v3741_v31, %v4538_v38 }
 0x3f8   : > { %v3745_v51 = vpop.eup %3744  ;;  %v2538_v14 = vadd.f32 1.0, %v3743_v11  ;;  %3764 = vpow2.f32 %v3252_v42  ;;  %2694 = vrot.lane.b32.xlu1 %v2579_v49, %s3823_s17 }
 0x3f9   : > { %v3747_v37 = vpop.eup %3746  ;;  %v2536_v44 = vadd.f32 1.0, %v3745_v51 }
 0x3fa   : > { %v3749_v53 = vpop.eup %3748  ;;  %3766 = vrcp.f32 %v2538_v14  ;;  %v2539_v57 = vadd.f32 1.0, %v3747_v37  ;;  %2688 = vrot.lane.b32.xlu0 %v2576_v8, %s3823_s17 }
 0x3fb   : > { %v3751_v62 = vpop.eup %3750  ;;  %3768 = vrcp.f32 %v2536_v44  ;;  %v2537_v30 = vadd.f32 1.0, %v3749_v53 }
 0x3fc   : > { %v3753_v0 = vpop.eup %3752  ;;  %3770 = vrcp.f32 %v2539_v57  ;;  %2690 = vrot.lane.b32.xlu1 %v2577_v18, %s3823_s17  ;;  %v2582_v59 = vmul.f32 %v3751_v62, %v4564_v29 }
 0x3fd   : > { %v3755_v39 = vpop.eup %3754  ;;  %3772 = vrcp.f32 %v2537_v30  ;;  %v2580_v38 = vmul.f32 %v3753_v0, %v4558_v50 }
 0x3fe   : > { %v3757_v17 = vpop.eup %3756  ;;  %2700 = vrot.lane.b32.xlu0 %v2582_v59, %s3823_s17  ;;  %v2583_v27 = vmul.f32 %v3755_v39, %v4572_v2 }
 0x3ff   : > { %v3759_v10 = vpop.eup %3758  ;;  %v2581_v29 = vmul.f32 %v3757_v17, %v4561_v61 }
 0x400   : > { %v3761_v32 = vpop.eup %3760  ;;  %v2542_v35 = vadd.f32 1.0, %v3759_v10  ;;  %2702 = vrot.lane.b32.xlu1 %v2583_v27, %s3823_s17 }
 0x401   : > { %v3763_v55 = vpop.eup %3762  ;;  %v2540_v25 = vadd.f32 1.0, %v3761_v32 }
 0x402   : > { %v3765_v54 = vpop.eup %3764  ;;  %3774 = vrcp.f32 %v2542_v35  ;;  %v2543_v58 = vadd.f32 1.0, %v3763_v55  ;;  %2696 = vrot.lane.b32.xlu0 %v2580_v38, %s3823_s17 }
 0x403   : > { %3776 = vrcp.f32 %v2540_v25  ;;  %v2541_v63 = vadd.f32 1.0, %v3765_v54 }
 0x404   : > { %v3767_v36 = vpop.eup %3766  ;;  %3778 = vrcp.f32 %v2543_v58  ;;  %2698 = vrot.lane.b32.xlu1 %v2581_v29, %s3823_s17 }
 0x405   : > { %v3769_v2 = vpop.eup %3768  ;;  %v2586_v46 = vmul.f32 %v3767_v36, %v4422_v41  ;;  %3780 = vrcp.f32 %v2541_v63 }
 0x406   : > { %v3771_v12 = vpop.eup %3770  ;;  %v2584_v61 = vmul.f32 %v3769_v2, %v4416_v33 }
 0x407   : > { %2708 = vrot.lane.b32.xlu0 %v2586_v46, %s3823_s17  ;;  %v2587_v50 = vmul.f32 %v3771_v12, %v4427_v9  ;;  %v3773_v19 = vpop.eup %3772 }
 0x408   : > { %v2585_v23 = vmul.f32 %v3773_v19, %v4419_v5 }
 0x409   : > { %2710 = vrot.lane.b32.xlu1 %v2587_v50, %s3823_s17 }
 0x40b   : > { %2704 = vrot.lane.b32.xlu0 %v2584_v61, %s3823_s17 }
 0x40c   : > { %v3775_v3 = vpop.eup %3774 }
 0x40d   : > { %v3777_v34 = vpop.eup %3776  ;;  %2706 = vrot.lane.b32.xlu1 %v2585_v23, %s3823_s17  ;;  %v2590_v41 = vmul.f32 %v3775_v3, %v4448_v24  ;;  %v2770_v24 = vpop.permute.xlu0 %2769 }
 0x40e   : > { %v3779_v13 = vpop.eup %3778  ;;  %v2588_v33 = vmul.f32 %v3777_v34, %v4442_v20  ;;  %v2780_v20 = vpop.permute.xlu1 %2779 }
 0x40f   : > { %2716 = vrot.lane.b32.xlu0 %v2590_v41, %s3823_s17  ;;  %v2591_v9 = vmul.f32 %v3779_v13, %v4453_v28  ;;  %v3781_v47 = vpop.eup %3780 }
 0x410   : > { %v2589_v5 = vmul.f32 %v3781_v47, %v4445_v21 }
 0x411   : > { %2718 = vrot.lane.b32.xlu1 %v2591_v9, %s3823_s17  ;;  %v2774_v28 = vpop.permute.xlu0 %2773 }
 0x412   : > { %v2784_v21 = vpop.permute.xlu1 %2783 }
 0x413   : > { %2712 = vrot.lane.b32.xlu0 %v2588_v33, %s3823_s17 }
 0x415   : > { %2714 = vrot.lane.b32.xlu1 %v2589_v5, %s3823_s17  ;;  %v2778_v26 = vpop.permute.xlu0 %2777 }
 0x416   : > { %v2788_v40 = vpop.permute.xlu1 %2787 }
 0x417   : > { %2797 = vrot.lane.b32.xlu0 %v4304_v4, %s3825_s20 }
 0x419   : > { %2799 = vrot.lane.b32.xlu1 %v4310_v6, %s3825_s20  ;;  %v2782_v7 = vpop.permute.xlu0 %2781 }
 0x41a   : > { %v2792_v43 = vpop.permute.xlu1 %2791 }
 0x41d   : > { %v2786_v45 = vpop.permute.xlu0 %2785 }
 0x41e   : > { %v2796_v15 = vpop.permute.xlu1 %2795 }
 0x421   : > { %v2790_v4 = vpop.permute.xlu0 %2789 }
 0x425   : > { %v2794_v6 = vpop.permute.xlu0 %2793 }
 0x468   : > { %v2693_v56 = vpop.permute.xlu0 %2692 }
 0x469   : > { %2739 = vst.msk [vmem:[%s4640_s15 + $0x10] sm:$0xff] %vm2736_vm5, %v2693_v56 }
 0x46a   : > { %2820 = vst.msk [vmem:[%s4640_s15 + $0x10] sm:$0xff] %vm2817_vm6, %v2774_v28  ;;  %v2695_v16 = vpop.permute.xlu1 %2694 }
 0x46b   : > { %2740 = vst.msk [vmem:[%s4640_s15 + $0x18] sm:$0xff] %vm2736_vm5, %v2695_v16 }
 0x46c   : > { %2821 = vst.msk [vmem:[%s4640_s15 + $0x18] sm:$0xff] %vm2817_vm6, %v2776_v60  ;;  %v2689_v52 = vpop.permute.xlu0 %2688 }
 0x46d   : > { %2737 = vst.msk [vmem:[%s4640_s15] sm:$0xff] %vm2736_vm5, %v2689_v52 }
 0x46e   : > { %2818 = vst.msk [vmem:[%s4640_s15] sm:$0xff] %vm2817_vm6, %v2770_v24  ;;  %v2691_v42 = vpop.permute.xlu1 %2690 }
 0x46f   : > { %2738 = vst.msk [vmem:[%s4640_s15 + $0x8] sm:$0xff] %vm2736_vm5, %v2691_v42 }
 0x470   : > { %2819 = vst.msk [vmem:[%s4640_s15 + $0x8] sm:$0xff] %vm2817_vm6, %v2772_v22  ;;  %v2701_v1 = vpop.permute.xlu0 %2700 }
 0x471   : > { %2743 = vst.msk [vmem:[%s4640_s15 + $0x30] sm:$0xff] %vm2736_vm5, %v2701_v1 }
 0x472   : > { %2824 = vst.msk [vmem:[%s4640_s15 + $0x30] sm:$0xff] %vm2817_vm6, %v2782_v7  ;;  %v2703_v48 = vpop.permute.xlu1 %2702 }
 0x473   : > { %2744 = vst.msk [vmem:[%s4640_s15 + $0x38] sm:$0xff] %vm2736_vm5, %v2703_v48 }
 0x474   : > { %2825 = vst.msk [vmem:[%s4640_s15 + $0x38] sm:$0xff] %vm2817_vm6, %v2784_v21  ;;  %v2697_v31 = vpop.permute.xlu0 %2696 }
 0x475   : > { %2741 = vst.msk [vmem:[%s4640_s15 + $0x20] sm:$0xff] %vm2736_vm5, %v2697_v31 }
 0x476   : > { %2822 = vst.msk [vmem:[%s4640_s15 + $0x20] sm:$0xff] %vm2817_vm6, %v2778_v26  ;;  %v2699_v49 = vpop.permute.xlu1 %2698 }
 0x477   : > { %2742 = vst.msk [vmem:[%s4640_s15 + $0x28] sm:$0xff] %vm2736_vm5, %v2699_v49 }
 0x478   : > { %2823 = vst.msk [vmem:[%s4640_s15 + $0x28] sm:$0xff] %vm2817_vm6, %v2780_v20 }
 0x479   : > { %v2709_v11 = vpop.permute.xlu0 %2708 }
 0x47a   : > { %2747 = vst.msk [vmem:[%s4640_s15 + $0x50] sm:$0xff] %vm2736_vm5, %v2709_v11 }
 0x47b   : > { %2828 = vst.msk [vmem:[%s4640_s15 + $0x50] sm:$0xff] %vm2817_vm6, %v2790_v4  ;;  %v2711_v51 = vpop.permute.xlu1 %2710 }
 0x47c   : > { %2748 = vst.msk [vmem:[%s4640_s15 + $0x58] sm:$0xff] %vm2736_vm5, %v2711_v51 }
 0x47d   : > { %2829 = vst.msk [vmem:[%s4640_s15 + $0x58] sm:$0xff] %vm2817_vm6, %v2792_v43  ;;  %v2705_v14 = vpop.permute.xlu0 %2704 }
 0x47e   : > { %2745 = vst.msk [vmem:[%s4640_s15 + $0x40] sm:$0xff] %vm2736_vm5, %v2705_v14 }
 0x47f   : > { %2826 = vst.msk [vmem:[%s4640_s15 + $0x40] sm:$0xff] %vm2817_vm6, %v2786_v45  ;;  %v2707_v8 = vpop.permute.xlu1 %2706 }
 0x480   : > { %2746 = vst.msk [vmem:[%s4640_s15 + $0x48] sm:$0xff] %vm2736_vm5, %v2707_v8 }
 0x481   : > { %2827 = vst.msk [vmem:[%s4640_s15 + $0x48] sm:$0xff] %vm2817_vm6, %v2788_v40  ;;  %v2717_v37 = vpop.permute.xlu0 %2716 }
 0x482   : > { %2751 = vst.msk [vmem:[%s4640_s15 + $0x70] sm:$0xff] %vm2736_vm5, %v2717_v37 }
 0x483   : > { %v2719_v44 = vpop.permute.xlu1 %2718 }
 0x484   : > { %2752 = vst.msk [vmem:[%s4640_s15 + $0x78] sm:$0xff] %vm2736_vm5, %v2719_v44 }
 0x485   : > { %v2713_v53 = vpop.permute.xlu0 %2712 }
 0x486   : > { %2749 = vst.msk [vmem:[%s4640_s15 + $0x60] sm:$0xff] %vm2736_vm5, %v2713_v53 }
 0x487   : > { %2830 = vst.msk [vmem:[%s4640_s15 + $0x60] sm:$0xff] %vm2817_vm6, %v2794_v6  ;;  %v2715_v57 = vpop.permute.xlu1 %2714 }
 0x488   : > { %2750 = vst.msk [vmem:[%s4640_s15 + $0x68] sm:$0xff] %vm2736_vm5, %v2715_v57 }
 0x489   : > { %2831 = vst.msk [vmem:[%s4640_s15 + $0x68] sm:$0xff] %vm2817_vm6, %v2796_v15  ;;  %v2798_v18 = vpop.permute.xlu0 %2797 }
 0x48a   : > { %2832 = vst.msk [vmem:[%s4640_s15 + $0x70] sm:$0xff] %vm2817_vm6, %v2798_v18 }
 0x48b   : > { %v2800_v62 = vpop.permute.xlu1 %2799 }
 0x48c   : > { %2833 = vst.msk [vmem:[%s4640_s15 + $0x78] sm:$0xff] %vm2817_vm6, %v2800_v62 }
 0x48d PF: > { %s18_s9 = sadd.s32 1, %s3820_s9   ;;  %s4836_s27 = smov %s3812_s29 }
 0x48e   : > { %p15_p7 = scmp.ge.s32.totalorder %s18_s9, 6   ;;  %s4837_s28 = smov %s3816_s30 }
 0x48f   : > { %s4838_s29 = smov %s4841_s10  ;;  %s4839_s30 = smov %s4845_s11 }
 0x490   :  { %17 = sbr.rel (!%p15_p7) target bundleno = 3 (0x3), region = 96 }

</bundles_post_ra>
